<compile_context>
chip_gen: v7x
topology: tpu7x:2x2x1
jax: 0.10.0
libtpu: 0.0.40
codegen_flags: <defaults>
</compile_context>

<pallas_src>
import functools

import jax
import jax.numpy as jnp
from jax import lax
from jax.experimental import pallas as pl
from jax.experimental.pallas import tpu as pltpu

BN_EPS = 1e-5
_LANES = 128      # channel padding target (lane-dense last dim)
_TM = 512         # rows (of N*H*W) per grid step for 1x1 / elementwise passes

_PARALLEL = pltpu.CompilerParams(dimension_semantics=("parallel",))


def _round_up(x, m):
    return (x + m - 1) // m * m


def _same_pad(k, s):
    p = max(k - s, 0)
    return p // 2 + p % 2, p // 2


# ---------------------------------------------------------------------------
# Pallas kernels
# ---------------------------------------------------------------------------
def _matmul_stats_kernel(x_ref, w_ref, s_ref, b_ref, y_ref, stats_ref, *,
                         fuse_in, mask_rows, m_valid, tm):
    """1x1-conv-as-matmul on one M tile + per-tile BN partial statistics.

    x_ref : [TM, Kp] f32 activations (optionally normalized in-kernel)
    w_ref : [Kp, Cp] bf16 conv weight matrix
    s_ref/b_ref : [1, Kp] folded scale/shift of the *previous* BN (fuse_in)
    y_ref : [TM, Cp] raw conv output (f32)
    stats_ref : [8, Cp]  row0 = sum(y), row1 = sum(y*y) for this tile
    """
    x = x_ref[...]
    if fuse_in:                       # previous BN + ReLU fused into this matmul
        x = jnp.maximum(x * s_ref[...] + b_ref[...], 0.0)
    if mask_rows:                     # zero padded rows so stats stay exact
        rows = pl.program_id(0) * tm + lax.broadcasted_iota(jnp.int32, x.shape, 0)
        x = jnp.where(rows < m_valid, x, 0.0)
    y = jnp.dot(x.astype(jnp.bfloat16), w_ref[...],
                preferred_element_type=jnp.float32)
    y_ref[...] = y
    stats_ref[0:1, :] = jnp.sum(y, axis=0, keepdims=True)
    stats_ref[1:2, :] = jnp.sum(y * y, axis=0, keepdims=True)
    stats_ref[2:8, :] = jnp.zeros((6, y.shape[1]), jnp.float32)


def _dual_matmul_stats_kernel(x_ref, wa_ref, wb_ref,
                              ya_ref, sta_ref, yb_ref, stb_ref):
    """conv1 (1x1) + projection conv (1x1) sharing one read of x.

    x_ref  : [TM, Kp] f32
    wa_ref : [Kp, Ca] bf16 (conv1), wb_ref : [Kp, Cb] bf16 (projection)
    Outputs: raw conv outputs + per-tile BN partial statistics for each.
    Padded rows of x are zero, so they contribute nothing to either statistic.
    """
    x = x_ref[...].astype(jnp.bfloat16)

    ya = jnp.dot(x, wa_ref[...], preferred_element_type=jnp.float32)
    ya_ref[...] = ya
    sta_ref[0:1, :] = jnp.sum(ya, axis=0, keepdims=True)
    sta_ref[1:2, :] = jnp.sum(ya * ya, axis=0, keepdims=True)
    sta_ref[2:8, :] = jnp.zeros((6, ya.shape[1]), jnp.float32)

    yb = jnp.dot(x, wb_ref[...], preferred_element_type=jnp.float32)
    yb_ref[...] = yb
    stb_ref[0:1, :] = jnp.sum(yb, axis=0, keepdims=True)
    stb_ref[1:2, :] = jnp.sum(yb * yb, axis=0, keepdims=True)
    stb_ref[2:8, :] = jnp.zeros((6, yb.shape[1]), jnp.float32)


def _conv3x3_bnr_stats_kernel(xp_ref, w_ref, sc_ref, sh_ref, y_ref, stats_ref,
                              *, ho, wo, stride):
    """3x3 conv for one image with the previous BN+ReLU fused on the input.

    xp_ref : [1, Hp, Wp, Cip] zero-padded raw conv1 output (f32)
    w_ref  : [3, 3, Cip, Cop] bf16 weights
    sc_ref/sh_ref : [Hp, Wp, Cip] per-position folded BN scale/shift planes;
                    both are exactly zero inside the spatial pad frame so
                    max(0*0+0, 0) == 0 there (no masking needed).
    y_ref  : [1, Ho*Wo, Cop]  raw conv2 output (f32)
    stats_ref : [8, Cop]      row0 = sum, row1 = sum of squares
    """
    cip = xp_ref.shape[-1]
    cop = w_ref.shape[-1]
    xn = jnp.maximum(xp_ref[0] * sc_ref[...] + sh_ref[...], 0.0)   # bnr1 fused
    acc = jnp.zeros((ho * wo, cop), jnp.float32)
    for dy in range(3):
        for dx in range(3):
            if stride == 1:
                win = lax.slice(xn, (dy, dx, 0), (dy + ho, dx + wo, cip))
            else:
                # TODO(synk): strided-window path untested on-device (demo uses stride=1).
                win = lax.slice(xn, (dy, dx, 0),
                                (dy + (ho - 1) * stride + 1,
                                 dx + (wo - 1) * stride + 1, cip),
                                (stride, stride, 1))
            lhs = win.reshape(ho * wo, cip).astype(jnp.bfloat16)
            acc = acc + jnp.dot(lhs, w_ref[dy, dx],
                                preferred_element_type=jnp.float32)
    y_ref[0] = acc
    stats_ref[0:1, :] = jnp.sum(acc, axis=0, keepdims=True)
    stats_ref[1:2, :] = jnp.sum(acc * acc, axis=0, keepdims=True)
    stats_ref[2:8, :] = jnp.zeros((6, cop), jnp.float32)


def _residual_out_kernel(y3_ref, s3_ref, b3_ref, sc_ref, ssc_ref, bsc_ref, o_ref):
    # bnr3 (with ReLU, per reference) + shortcut BN (no ReLU) + add + final ReLU
    h = jnp.maximum(y3_ref[...] * s3_ref[...] + b3_ref[...], 0.0)
    s = sc_ref[...] * ssc_ref[...] + bsc_ref[...]
    o_ref[...] = jnp.maximum(h + s, 0.0)


# ---------------------------------------------------------------------------
# pallas_call wrappers
# ---------------------------------------------------------------------------
def _pick_tile(m):
    tm = _TM if m >= _TM else _round_up(m, 8)
    return tm, _round_up(m, tm)


def _conv1x1_stats(x2d, w_bf16, in_scale=None, in_shift=None):
    m, kp = x2d.shape
    cp = w_bf16.shape[1]
    tm, m_pad = _pick_tile(m)
    if m_pad != m:
        x2d = jnp.pad(x2d, ((0, m_pad - m), (0, 0)))
    fuse_in = in_scale is not None
    if not fuse_in:
        in_scale = jnp.ones((1, kp), jnp.float32)
        in_shift = jnp.zeros((1, kp), jnp.float32)
    mask_rows = fuse_in and (m_pad != m)
    tiles = m_pad // tm
    kern = functools.partial(_matmul_stats_kernel, fuse_in=fuse_in,
                             mask_rows=mask_rows, m_valid=m, tm=tm)
    y, stats = pl.pallas_call(
        kern,
        grid=(tiles,),
        in_specs=[pl.BlockSpec((tm, kp), lambda i: (i, 0)),
                  pl.BlockSpec((kp, cp), lambda i: (0, 0)),
                  pl.BlockSpec((1, kp), lambda i: (0, 0)),
                  pl.BlockSpec((1, kp), lambda i: (0, 0))],
        out_specs=(pl.BlockSpec((tm, cp), lambda i: (i, 0)),
                   pl.BlockSpec((8, cp), lambda i: (i, 0))),
        out_shape=(jax.ShapeDtypeStruct((m_pad, cp), jnp.float32),
                   jax.ShapeDtypeStruct((tiles * 8, cp), jnp.float32)),
        compiler_params=_PARALLEL,
        cost_estimate=pl.CostEstimate(
            flops=2 * m_pad * kp * cp, transcendentals=0,
            bytes_accessed=m_pad * kp * 4 + kp * cp * 2 + m_pad * cp * 4),
    )(x2d, w_bf16, in_scale, in_shift)
    return y[:m], stats


def _conv1x1_dual_stats(x2d, wa_bf16, wb_bf16):
    """conv1 + projection conv fused: one HBM read of x, two matmuls."""
    m, kp = x2d.shape
    ca = wa_bf16.shape[1]
    cb = wb_bf16.shape[1]
    tm, m_pad = _pick_tile(m)
    if m_pad != m:
        x2d = jnp.pad(x2d, ((0, m_pad - m), (0, 0)))
    tiles = m_pad // tm
    ya, sta, yb, stb = pl.pallas_call(
        _dual_matmul_stats_kernel,
        grid=(tiles,),
        in_specs=[pl.BlockSpec((tm, kp), lambda i: (i, 0)),
                  pl.BlockSpec((kp, ca), lambda i: (0, 0)),
                  pl.BlockSpec((kp, cb), lambda i: (0, 0))],
        out_specs=(pl.BlockSpec((tm, ca), lambda i: (i, 0)),
                   pl.BlockSpec((8, ca), lambda i: (i, 0)),
                   pl.BlockSpec((tm, cb), lambda i: (i, 0)),
                   pl.BlockSpec((8, cb), lambda i: (i, 0))),
        out_shape=(jax.ShapeDtypeStruct((m_pad, ca), jnp.float32),
                   jax.ShapeDtypeStruct((tiles * 8, ca), jnp.float32),
                   jax.ShapeDtypeStruct((m_pad, cb), jnp.float32),
                   jax.ShapeDtypeStruct((tiles * 8, cb), jnp.float32)),
        compiler_params=_PARALLEL,
        cost_estimate=pl.CostEstimate(
            flops=2 * m_pad * kp * (ca + cb), transcendentals=0,
            bytes_accessed=m_pad * kp * 4 + kp * (ca + cb) * 2
                           + m_pad * (ca + cb) * 4),
    )(x2d, wa_bf16, wb_bf16)
    return ya[:m], sta, yb[:m], stb


def _conv3x3_bnr_stats(x_nhwc, w_bf16, in_scale, in_shift, stride):
    n, h, w, cip = x_nhwc.shape
    cop = w_bf16.shape[-1]
    pb, pa = _same_pad(3, stride)
    xp = jnp.pad(x_nhwc, ((0, 0), (pb, pa), (pb, pa), (0, 0)))
    hp, wp = xp.shape[1], xp.shape[2]
    ho = (hp - 3) // stride + 1
    wo = (wp - 3) // stride + 1
    # Host-built per-position BN planes: folded bnr1 scale/shift inside the
    # valid frame, exact zeros in the spatial pad frame (keeps pads at zero
    # after the in-kernel normalize+ReLU without any masking).  They have a
    # constant block index, so they are DMA'd into VMEM only once.
    frame = jnp.pad(jnp.ones((h, w, 1), jnp.float32), ((pb, pa), (pb, pa), (0, 0)))
    scale_plane = frame * in_scale.reshape(1, 1, cip)
    shift_plane = frame * in_shift.reshape(1, 1, cip)
    # NOTE: one full padded image per grid step; for very large H*W this block
    # should additionally be tiled over image rows.
    kern = functools.partial(_conv3x3_bnr_stats_kernel, ho=ho, wo=wo, stride=stride)
    y, stats = pl.pallas_call(
        kern,
        grid=(n,),
        in_specs=[pl.BlockSpec((1, hp, wp, cip), lambda i: (i, 0, 0, 0)),
                  pl.BlockSpec((3, 3, cip, cop), lambda i: (0, 0, 0, 0)),
                  pl.BlockSpec((hp, wp, cip), lambda i: (0, 0, 0)),
                  pl.BlockSpec((hp, wp, cip), lambda i: (0, 0, 0))],
        out_specs=(pl.BlockSpec((1, ho * wo, cop), lambda i: (i, 0, 0)),
                   pl.BlockSpec((8, cop), lambda i: (i, 0))),
        out_shape=(jax.ShapeDtypeStruct((n, ho * wo, cop), jnp.float32),
                   jax.ShapeDtypeStruct((n * 8, cop), jnp.float32)),
        compiler_params=_PARALLEL,
        cost_estimate=pl.CostEstimate(
            flops=2 * n * ho * wo * 9 * cip * cop, transcendentals=0,
            bytes_accessed=n * hp * wp * cip * 4 + 9 * cip * cop * 2
                           + 2 * hp * wp * cip * 4 + n * ho * wo * cop * 4),
    )(xp, w_bf16, scale_plane, shift_plane)
    return y.reshape(n * ho * wo, cop), stats, (n, ho, wo)


def _residual_out(y3, s3, b3, shortcut, ssc, bsc):
    m, cp = y3.shape
    tm, m_pad = _pick_tile(m)
    if m_pad != m:
        y3 = jnp.pad(y3, ((0, m_pad - m), (0, 0)))
        shortcut = jnp.pad(shortcut, ((0, m_pad - m), (0, 0)))
    out = pl.pallas_call(
        _residual_out_kernel,
        grid=(m_pad // tm,),
        in_specs=[pl.BlockSpec((tm, cp), lambda i: (i, 0)),
                  pl.BlockSpec((1, cp), lambda i: (0, 0)),
                  pl.BlockSpec((1, cp), lambda i: (0, 0)),
                  pl.BlockSpec((tm, cp), lambda i: (i, 0)),
                  pl.BlockSpec((1, cp), lambda i: (0, 0)),
                  pl.BlockSpec((1, cp), lambda i: (0, 0))],
        out_specs=pl.BlockSpec((tm, cp), lambda i: (i, 0)),
        out_shape=jax.ShapeDtypeStruct((m_pad, cp), jnp.float32),
        compiler_params=_PARALLEL,
    )(y3, s3, b3, shortcut, ssc, bsc)
    return out[:m]


# ---------------------------------------------------------------------------
# Host-side glue (tiny vector math, padding, weight re-layout)
# ---------------------------------------------------------------------------
def _pad_vec(v, cp):
    return jnp.pad(v, (0, cp - v.shape[0]))


def _pad_channels(x, cp):
    return jnp.pad(x, [(0, 0)] * (x.ndim - 1) + [(0, cp - x.shape[-1])])


def _fold_bn(stats, gamma, beta, m, cp):
    """Per-channel folded BN: scale = g*rsqrt(var+eps), shift = b - mean*scale."""
    st = stats.reshape(-1, 8, cp)
    s1 = jnp.sum(st[:, 0, :], axis=0)
    s2 = jnp.sum(st[:, 1, :], axis=0)
    mean = s1 / m
    var = jnp.maximum(s2 / m - mean * mean, 0.0)      # one-pass variance, clamped
    scale = _pad_vec(gamma, cp) * lax.rsqrt(var + BN_EPS)
    shift = _pad_vec(beta, cp) - mean * scale
    return scale.reshape(1, cp), shift.reshape(1, cp)


def _w1x1(w_torch, cin_p, cout_p):
    cout, cin = w_torch.shape[0], w_torch.shape[1]
    wm = jnp.transpose(w_torch[:, :, 0, 0], (1, 0))                   # [Cin, Cout]
    wm = jnp.pad(wm, ((0, cin_p - cin), (0, cout_p - cout)))
    return wm.astype(jnp.bfloat16)


def _w3x3(w_torch, cin_p, cout_p):
    cout, cin = w_torch.shape[0], w_torch.shape[1]
    wr = jnp.transpose(w_torch, (2, 3, 1, 0))                         # [kh,kw,Cin,Cout]
    wr = jnp.pad(wr, ((0, 0), (0, 0), (0, cin_p - cin), (0, cout_p - cout)))
    return wr.astype(jnp.bfloat16)


# ---------------------------------------------------------------------------
# BottleneckBlock (n_dim=2) parameters + forward
# ---------------------------------------------------------------------------
def init_params(key, in_channels, filters, use_projection):
    fo = 4 * filters
    k0, k1, k2, k3 = jax.random.split(key, 4)

    def conv_w(k, cout, cin, ks):
        # torch layout [Cout, Cin, kH, kW]; deterministic synthetic init.
        return 0.1 * jax.random.normal(k, (cout, cin, ks, ks), jnp.float32)

    params = {
        "conv1_w": conv_w(k0, filters, in_channels, 1),
        "conv2_w": conv_w(k1, filters, filters, 3),
        "conv3_w": conv_w(k2, fo, filters, 1),
        "bnr1_g": jnp.ones((filters,), jnp.float32),
        "bnr1_b": jnp.zeros((filters,), jnp.float32),
        "bnr2_g": jnp.ones((filters,), jnp.float32),
        "bnr2_b": jnp.zeros((filters,), jnp.float32),
        "bnr3_g": jnp.ones((fo,), jnp.float32),
        "bnr3_b": jnp.zeros((fo,), jnp.float32),
    }
    if use_projection:
        params["proj_w"] = conv_w(k3, fo, in_channels, 1)
        params["proj_g"] = jnp.ones((fo,), jnp.float32)
        params["proj_b"] = jnp.zeros((fo,), jnp.float32)
    return params


def bottleneck_block(params, x_nchw, *, stride, use_projection):
    x = jnp.transpose(x_nchw, (0, 2, 3, 1)).astype(jnp.float32)       # NHWC
    n, h, w, cin = x.shape
    filters = params["conv1_w"].shape[0]
    fo = 4 * filters
    cin_p = _round_up(cin, _LANES)
    cf_p = _round_up(filters, _LANES)
    co_p = _round_up(fo, _LANES)

    xc = _pad_channels(x, cin_p)                                      # [N,H,W,Cin_p]
    x2 = xc.reshape(n * h * w, cin_p)
    m1 = n * h * w

    # conv1 (1x1, stride 1) + BN statistics; projection conv fused in when its
    # input rows coincide with conv1's (stride == 1).
    w1 = _w1x1(params["conv1_w"], cin_p, cf_p)
    fuse_proj = use_projection and stride == 1
    yp = stp = None
    if fuse_proj:
        y1, st1, yp, stp = _conv1x1_dual_stats(
            x2, w1, _w1x1(params["proj_w"], cin_p, co_p))
    else:
        y1, st1 = _conv1x1_stats(x2, w1)
    s1, b1 = _fold_bn(st1, params["bnr1_g"], params["bnr1_b"], m1, cf_p)

    # conv2 (3x3, stride) with bnr1 (normalize + ReLU) fused on its input side
    y2, st2, (n2, ho, wo) = _conv3x3_bnr_stats(
        y1.reshape(n, h, w, cf_p), _w3x3(params["conv2_w"], cf_p, cf_p),
        s1, b1, stride)
    m2 = n2 * ho * wo
    s2, b2 = _fold_bn(st2, params["bnr2_g"], params["bnr2_b"], m2, cf_p)

    # conv3 (1x1) with bnr2 (normalize + ReLU) fused into its input side
    y3, st3 = _conv1x1_stats(y2, _w1x1(params["conv3_w"], cf_p, co_p),
                             in_scale=s2, in_shift=b2)
    s3, b3 = _fold_bn(st3, params["bnr3_g"], params["bnr3_b"], m2, co_p)

    # shortcut path
    if use_projection:
        if not fuse_proj:
            # stride > 1: 1x1/stride SAME conv == spatial subsampling then 1x1.
            xs = xc[:, ::stride, ::stride, :].reshape(-1, cin_p)
            yp, stp = _conv1x1_stats(xs, _w1x1(params["proj_w"], cin_p, co_p))
        sp, bp = _fold_bn(stp, params["proj_g"], params["proj_b"], m2, co_p)
        shortcut = yp
    else:
        shortcut = x2                             # requires cin == 4*filters, stride == 1
        sp = jnp.ones((1, co_p), jnp.float32)
        bp = jnp.zeros((1, co_p), jnp.float32)

    # bnr3(+ReLU) + shortcut BN + residual add + final ReLU, fused in one pass
    out = _residual_out(y3, s3, b3, shortcut, sp, bp)
    out = out.reshape(n2, ho, wo, co_p)[..., :fo]
    return jnp.transpose(out, (0, 3, 1, 2))                           # NCHW


if __name__ == "__main__":
    key = jax.random.PRNGKey(0)
    k_x, k_p = jax.random.split(key)

    # BottleneckBlock(n_dim=2, in_channels=4, filters=4, stride=1,
    #                 use_projection=True, norm_type='bn')
    batch, in_channels, hw = 2, 4, 16
    filters, stride, use_projection = 4, 1, True

    x = jax.random.normal(k_x, (batch, in_channels, hw, hw), jnp.float32)
    params = init_params(k_p, in_channels, filters, use_projection)

    fwd = jax.jit(functools.partial(bottleneck_block, stride=stride,
                                    use_projection=use_projection))
    y = fwd(params, x)
    jax.block_until_ready(y)

    expected = (batch, 4 * filters, hw // stride, hw // stride)
    assert y.shape == expected, (y.shape, expected)
    assert bool(jnp.all(jnp.isfinite(y)))
    print("KERNEL_OK")
</pallas_src>

<mosaic_0001>
module attributes {stable_mosaic.version = 11 : i64} {
  func.func @_dual_matmul_stats_kernel(%arg0: i32, %arg1: memref<512x128xf32, #tpu.memory_space<vmem>>, %arg2: memref<128x128xbf16, #tpu.memory_space<vmem>>, %arg3: memref<128x128xbf16, #tpu.memory_space<vmem>>, %arg4: memref<512x128xf32, #tpu.memory_space<vmem>>, %arg5: memref<8x128xf32, #tpu.memory_space<vmem>>, %arg6: memref<512x128xf32, #tpu.memory_space<vmem>>, %arg7: memref<8x128xf32, #tpu.memory_space<vmem>>) attributes {dimension_semantics = [#tpu.dimension_semantics<parallel>], iteration_bounds = array<i64: 1>, scalar_prefetch = 0 : i64, scratch_operands = 0 : i64, tpu.core_type = #tpu.core_type<tc>, window_params = [{transform_indices = @transform_0, window_bounds = array<i64: 512, 128>}, {pipeline_mode = #tpu.pipeline_mode<synchronous>, transform_indices = @transform_1, window_bounds = array<i64: 128, 128>}, {pipeline_mode = #tpu.pipeline_mode<synchronous>, transform_indices = @transform_2, window_bounds = array<i64: 128, 128>}, {transform_indices = @transform_3, window_bounds = array<i64: 512, 128>}, {transform_indices = @transform_4, window_bounds = array<i64: 8, 128>}, {transform_indices = @transform_5, window_bounds = array<i64: 512, 128>}, {transform_indices = @transform_6, window_bounds = array<i64: 8, 128>}]} {
    %c0 = arith.constant 0 : index
    %c0_0 = arith.constant 0 : index
    %0 = vector.load %arg1[%c0, %c0_0] : memref<512x128xf32, #tpu.memory_space<vmem>>, vector<512x128xf32>
    %1 = arith.truncf %0 : vector<512x128xf32> to vector<512x128xbf16>
    %c0_1 = arith.constant 0 : index
    %c0_2 = arith.constant 0 : index
    %2 = vector.load %arg2[%c0_1, %c0_2] : memref<128x128xbf16, #tpu.memory_space<vmem>>, vector<128x128xbf16>
    %cst = arith.constant dense<0.000000e+00> : vector<512x128xf32>
    %3 = tpu.matmul %1, %2, %cst {dimension_numbers = #tpu.dot_dimension_numbers<[1], [0], [0], [1], [0, 0, 1, 1], [], []>} : vector<512x128xbf16>, vector<128x128xbf16>, vector<512x128xf32> -> vector<512x128xf32>
    %c0_3 = arith.constant 0 : index
    %c0_4 = arith.constant 0 : index
    %4 = vector.load %arg4[%c0_3, %c0_4] : memref<512x128xf32, #tpu.memory_space<vmem>>, vector<512x128xf32>
    tpu.vector_store %arg4[%c0_3, %c0_4], %3 {strides = array<i32>} : memref<512x128xf32, #tpu.memory_space<vmem>>, vector<512x128xf32>,
    %cst_5 = arith.constant dense<0.000000e+00> : vector<128xf32>
    %5 = vector.multi_reduction <add>, %3, %cst_5 [0] : vector<512x128xf32> to vector<128xf32>
    %6 = vector.shape_cast %5 : vector<128xf32> to vector<1x128xf32>
    %c0_6 = arith.constant 0 : index
    %c0_7 = arith.constant 0 : index
    %7 = vector.load %arg5[%c0_6, %c0_7] : memref<8x128xf32, #tpu.memory_space<vmem>>, vector<1x128xf32>
    tpu.vector_store %arg5[%c0_6, %c0_7], %6 {strides = array<i32>} : memref<8x128xf32, #tpu.memory_space<vmem>>, vector<1x128xf32>,
    %8 = arith.mulf %3, %3 : vector<512x128xf32>
    %cst_8 = arith.constant dense<0.000000e+00> : vector<128xf32>
    %9 = vector.multi_reduction <add>, %8, %cst_8 [0] : vector<512x128xf32> to vector<128xf32>
    %10 = vector.shape_cast %9 : vector<128xf32> to vector<1x128xf32>
    %c1 = arith.constant 1 : index
    %c0_9 = arith.constant 0 : index
    %11 = vector.load %arg5[%c1, %c0_9] : memref<8x128xf32, #tpu.memory_space<vmem>>, vector<1x128xf32>
    tpu.vector_store %arg5[%c1, %c0_9], %10 {strides = array<i32>} : memref<8x128xf32, #tpu.memory_space<vmem>>, vector<1x128xf32>,
    %cst_10 = arith.constant 0.000000e+00 : f32
    %12 = vector.broadcast %cst_10 : f32 to vector<6x128xf32>
    %c2 = arith.constant 2 : index
    %c0_11 = arith.constant 0 : index
    %13 = vector.load %arg5[%c2, %c0_11] : memref<8x128xf32, #tpu.memory_space<vmem>>, vector<6x128xf32>
    tpu.vector_store %arg5[%c2, %c0_11], %12 {strides = array<i32>} : memref<8x128xf32, #tpu.memory_space<vmem>>, vector<6x128xf32>,
    %c0_12 = arith.constant 0 : index
    %c0_13 = arith.constant 0 : index
    %14 = vector.load %arg3[%c0_12, %c0_13] : memref<128x128xbf16, #tpu.memory_space<vmem>>, vector<128x128xbf16>
    %cst_14 = arith.constant dense<0.000000e+00> : vector<512x128xf32>
    %15 = tpu.matmul %1, %14, %cst_14 {dimension_numbers = #tpu.dot_dimension_numbers<[1], [0], [0], [1], [0, 0, 1, 1], [], []>} : vector<512x128xbf16>, vector<128x128xbf16>, vector<512x128xf32> -> vector<512x128xf32>
    %c0_15 = arith.constant 0 : index
    %c0_16 = arith.constant 0 : index
    %16 = vector.load %arg6[%c0_15, %c0_16] : memref<512x128xf32, #tpu.memory_space<vmem>>, vector<512x128xf32>
    tpu.vector_store %arg6[%c0_15, %c0_16], %15 {strides = array<i32>} : memref<512x128xf32, #tpu.memory_space<vmem>>, vector<512x128xf32>,
    %cst_17 = arith.constant dense<0.000000e+00> : vector<128xf32>
    %17 = vector.multi_reduction <add>, %15, %cst_17 [0] : vector<512x128xf32> to vector<128xf32>
    %18 = vector.shape_cast %17 : vector<128xf32> to vector<1x128xf32>
    %c0_18 = arith.constant 0 : index
    %c0_19 = arith.constant 0 : index
    %19 = vector.load %arg7[%c0_18, %c0_19] : memref<8x128xf32, #tpu.memory_space<vmem>>, vector<1x128xf32>
    tpu.vector_store %arg7[%c0_18, %c0_19], %18 {strides = array<i32>} : memref<8x128xf32, #tpu.memory_space<vmem>>, vector<1x128xf32>,
    %20 = arith.mulf %15, %15 : vector<512x128xf32>
    %cst_20 = arith.constant dense<0.000000e+00> : vector<128xf32>
    %21 = vector.multi_reduction <add>, %20, %cst_20 [0] : vector<512x128xf32> to vector<128xf32>
    %22 = vector.shape_cast %21 : vector<128xf32> to vector<1x128xf32>
    %c1_21 = arith.constant 1 : index
    %c0_22 = arith.constant 0 : index
    %23 = vector.load %arg7[%c1_21, %c0_22] : memref<8x128xf32, #tpu.memory_space<vmem>>, vector<1x128xf32>
    tpu.vector_store %arg7[%c1_21, %c0_22], %22 {strides = array<i32>} : memref<8x128xf32, #tpu.memory_space<vmem>>, vector<1x128xf32>,
    %cst_23 = arith.constant 0.000000e+00 : f32
    %24 = vector.broadcast %cst_23 : f32 to vector<6x128xf32>
    %c2_24 = arith.constant 2 : index
    %c0_25 = arith.constant 0 : index
    %25 = vector.load %arg7[%c2_24, %c0_25] : memref<8x128xf32, #tpu.memory_space<vmem>>, vector<6x128xf32>
    tpu.vector_store %arg7[%c2_24, %c0_25], %24 {strides = array<i32>} : memref<8x128xf32, #tpu.memory_space<vmem>>, vector<6x128xf32>,
    return
  }
  func.func @transform_0(%arg0: i32) -> (i32, i32) {
    %c0_i32 = arith.constant 0 : i32
    %c0_i32_0 = arith.constant 0 : i32
    return %arg0, %c0_i32 : i32, i32
  }
  func.func @transform_1(%arg0: i32) -> (i32, i32) {
    %c0_i32 = arith.constant 0 : i32
    %c0_i32_0 = arith.constant 0 : i32
    %c0_i32_1 = arith.constant 0 : i32
    return %c0_i32, %c0_i32_0 : i32, i32
  }
  func.func @transform_2(%arg0: i32) -> (i32, i32) {
    %c0_i32 = arith.constant 0 : i32
    %c0_i32_0 = arith.constant 0 : i32
    %c0_i32_1 = arith.constant 0 : i32
    return %c0_i32, %c0_i32_0 : i32, i32
  }
  func.func @transform_3(%arg0: i32) -> (i32, i32) {
    %c0_i32 = arith.constant 0 : i32
    %c0_i32_0 = arith.constant 0 : i32
    return %arg0, %c0_i32 : i32, i32
  }
  func.func @transform_4(%arg0: i32) -> (i32, i32) {
    %c0_i32 = arith.constant 0 : i32
    %c0_i32_0 = arith.constant 0 : i32
    return %arg0, %c0_i32 : i32, i32
  }
  func.func @transform_5(%arg0: i32) -> (i32, i32) {
    %c0_i32 = arith.constant 0 : i32
    %c0_i32_0 = arith.constant 0 : i32
    return %arg0, %c0_i32 : i32, i32
  }
  func.func @transform_6(%arg0: i32) -> (i32, i32) {
    %c0_i32 = arith.constant 0 : i32
    %c0_i32_0 = arith.constant 0 : i32
    return %arg0, %c0_i32 : i32, i32
  }
}

module attributes {stable_mosaic.version = 11 : i64} {
  func.func @_conv3x3_bnr_stats_kernel(%arg0: i32, %arg1: memref<1x18x18x128xf32, #tpu.memory_space<vmem>>, %arg2: memref<3x3x128x128xbf16, #tpu.memory_space<vmem>>, %arg3: memref<18x18x128xf32, #tpu.memory_space<vmem>>, %arg4: memref<18x18x128xf32, #tpu.memory_space<vmem>>, %arg5: memref<1x256x128xf32, #tpu.memory_space<vmem>>, %arg6: memref<8x128xf32, #tpu.memory_space<vmem>>) attributes {dimension_semantics = [#tpu.dimension_semantics<parallel>], iteration_bounds = array<i64: 2>, scalar_prefetch = 0 : i64, scratch_operands = 0 : i64, tpu.core_type = #tpu.core_type<tc>, window_params = [{transform_indices = @transform_0, window_bounds = array<i64: 1, 18, 18, 128>}, {pipeline_mode = #tpu.pipeline_mode<synchronous>, transform_indices = @transform_1, window_bounds = array<i64: 3, 3, 128, 128>}, {pipeline_mode = #tpu.pipeline_mode<synchronous>, transform_indices = @transform_2, window_bounds = array<i64: 18, 18, 128>}, {pipeline_mode = #tpu.pipeline_mode<synchronous>, transform_indices = @transform_3, window_bounds = array<i64: 18, 18, 128>}, {transform_indices = @transform_4, window_bounds = array<i64: 1, 256, 128>}, {transform_indices = @transform_5, window_bounds = array<i64: 8, 128>}]} {
    %c0 = arith.constant 0 : index
    %c0_0 = arith.constant 0 : index
    %c0_1 = arith.constant 0 : index
    %c0_2 = arith.constant 0 : index
    %0 = vector.load %arg1[%c0, %c0_0, %c0_1, %c0_2] : memref<1x18x18x128xf32, #tpu.memory_space<vmem>>, vector<1x18x18x128xf32>
    %1 = vector.shape_cast %0 : vector<1x18x18x128xf32> to vector<18x18x128xf32>
    %c0_3 = arith.constant 0 : index
    %c0_4 = arith.constant 0 : index
    %c0_5 = arith.constant 0 : index
    %2 = vector.load %arg3[%c0_3, %c0_4, %c0_5] : memref<18x18x128xf32, #tpu.memory_space<vmem>>, vector<18x18x128xf32>
    %3 = arith.mulf %1, %2 : vector<18x18x128xf32>
    %c0_6 = arith.constant 0 : index
    %c0_7 = arith.constant 0 : index
    %c0_8 = arith.constant 0 : index
    %4 = vector.load %arg4[%c0_6, %c0_7, %c0_8] : memref<18x18x128xf32, #tpu.memory_space<vmem>>, vector<18x18x128xf32>
    %5 = arith.addf %3, %4 : vector<18x18x128xf32>
    %cst = arith.constant 0.000000e+00 : f32
    %6 = vector.broadcast %cst : f32 to vector<18x18x128xf32>
    %7 = arith.maximumf %5, %6 : vector<18x18x128xf32>
    %cst_9 = arith.constant 0.000000e+00 : f32
    %8 = vector.broadcast %cst_9 : f32 to vector<256x128xf32>
    %9 = vector.extract_strided_slice %7 {offsets = [0, 0, 0], sizes = [16, 16, 128], strides = [1, 1, 1]} : vector<18x18x128xf32> to vector<16x16x128xf32>
    %10 = vector.shape_cast %9 : vector<16x16x128xf32> to vector<256x128xf32>
    %11 = arith.truncf %10 : vector<256x128xf32> to vector<256x128xbf16>
    %c0_10 = arith.constant 0 : index
    %c0_11 = arith.constant 0 : index
    %c0_12 = arith.constant 0 : index
    %c0_13 = arith.constant 0 : index
    %12 = vector.load %arg2[%c0_10, %c0_11, %c0_12, %c0_13] : memref<3x3x128x128xbf16, #tpu.memory_space<vmem>>, vector<1x1x128x128xbf16>
    %13 = vector.shape_cast %12 : vector<1x1x128x128xbf16> to vector<128x128xbf16>
    %cst_14 = arith.constant dense<0.000000e+00> : vector<256x128xf32>
    %14 = tpu.matmul %11, %13, %cst_14 {dimension_numbers = #tpu.dot_dimension_numbers<[1], [0], [0], [1], [0, 0, 1, 1], [], []>} : vector<256x128xbf16>, vector<128x128xbf16>, vector<256x128xf32> -> vector<256x128xf32>
    %15 = arith.addf %8, %14 : vector<256x128xf32>
    %16 = vector.extract_strided_slice %7 {offsets = [0, 1, 0], sizes = [16, 16, 128], strides = [1, 1, 1]} : vector<18x18x128xf32> to vector<16x16x128xf32>
    %17 = vector.shape_cast %16 : vector<16x16x128xf32> to vector<256x128xf32>
    %18 = arith.truncf %17 : vector<256x128xf32> to vector<256x128xbf16>
    %c0_15 = arith.constant 0 : index
    %c1 = arith.constant 1 : index
    %c0_16 = arith.constant 0 : index
    %c0_17 = arith.constant 0 : index
    %19 = vector.load %arg2[%c0_15, %c1, %c0_16, %c0_17] : memref<3x3x128x128xbf16, #tpu.memory_space<vmem>>, vector<1x1x128x128xbf16>
    %20 = vector.shape_cast %19 : vector<1x1x128x128xbf16> to vector<128x128xbf16>
    %cst_18 = arith.constant dense<0.000000e+00> : vector<256x128xf32>
    %21 = tpu.matmul %18, %20, %cst_18 {dimension_numbers = #tpu.dot_dimension_numbers<[1], [0], [0], [1], [0, 0, 1, 1], [], []>} : vector<256x128xbf16>, vector<128x128xbf16>, vector<256x128xf32> -> vector<256x128xf32>
    %22 = arith.addf %15, %21 : vector<256x128xf32>
    %23 = vector.extract_strided_slice %7 {offsets = [0, 2, 0], sizes = [16, 16, 128], strides = [1, 1, 1]} : vector<18x18x128xf32> to vector<16x16x128xf32>
    %24 = vector.shape_cast %23 : vector<16x16x128xf32> to vector<256x128xf32>
    %25 = arith.truncf %24 : vector<256x128xf32> to vector<256x128xbf16>
    %c0_19 = arith.constant 0 : index
    %c2 = arith.constant 2 : index
    %c0_20 = arith.constant 0 : index
    %c0_21 = arith.constant 0 : index
    %26 = vector.load %arg2[%c0_19, %c2, %c0_20, %c0_21] : memref<3x3x128x128xbf16, #tpu.memory_space<vmem>>, vector<1x1x128x128xbf16>
    %27 = vector.shape_cast %26 : vector<1x1x128x128xbf16> to vector<128x128xbf16>
    %cst_22 = arith.constant dense<0.000000e+00> : vector<256x128xf32>
    %28 = tpu.matmul %25, %27, %cst_22 {dimension_numbers = #tpu.dot_dimension_numbers<[1], [0], [0], [1], [0, 0, 1, 1], [], []>} : vector<256x128xbf16>, vector<128x128xbf16>, vector<256x128xf32> -> vector<256x128xf32>
    %29 = arith.addf %22, %28 : vector<256x128xf32>
    %30 = vector.extract_strided_slice %7 {offsets = [1, 0, 0], sizes = [16, 16, 128], strides = [1, 1, 1]} : vector<18x18x128xf32> to vector<16x16x128xf32>
    %31 = vector.shape_cast %30 : vector<16x16x128xf32> to vector<256x128xf32>
    %32 = arith.truncf %31 : vector<256x128xf32> to vector<256x128xbf16>
    %c1_23 = arith.constant 1 : index
    %c0_24 = arith.constant 0 : index
    %c0_25 = arith.constant 0 : index
    %c0_26 = arith.constant 0 : index
    %33 = vector.load %arg2[%c1_23, %c0_24, %c0_25, %c0_26] : memref<3x3x128x128xbf16, #tpu.memory_space<vmem>>, vector<1x1x128x128xbf16>
    %34 = vector.shape_cast %33 : vector<1x1x128x128xbf16> to vector<128x128xbf16>
    %cst_27 = arith.constant dense<0.000000e+00> : vector<256x128xf32>
    %35 = tpu.matmul %32, %34, %cst_27 {dimension_numbers = #tpu.dot_dimension_numbers<[1], [0], [0], [1], [0, 0, 1, 1], [], []>} : vector<256x128xbf16>, vector<128x128xbf16>, vector<256x128xf32> -> vector<256x128xf32>
    %36 = arith.addf %29, %35 : vector<256x128xf32>
    %37 = vector.extract_strided_slice %7 {offsets = [1, 1, 0], sizes = [16, 16, 128], strides = [1, 1, 1]} : vector<18x18x128xf32> to vector<16x16x128xf32>
    %38 = vector.shape_cast %37 : vector<16x16x128xf32> to vector<256x128xf32>
    %39 = arith.truncf %38 : vector<256x128xf32> to vector<256x128xbf16>
    %c1_28 = arith.constant 1 : index
    %c1_29 = arith.constant 1 : index
    %c0_30 = arith.constant 0 : index
    %c0_31 = arith.constant 0 : index
    %40 = vector.load %arg2[%c1_28, %c1_29, %c0_30, %c0_31] : memref<3x3x128x128xbf16, #tpu.memory_space<vmem>>, vector<1x1x128x128xbf16>
    %41 = vector.shape_cast %40 : vector<1x1x128x128xbf16> to vector<128x128xbf16>
    %cst_32 = arith.constant dense<0.000000e+00> : vector<256x128xf32>
    %42 = tpu.matmul %39, %41, %cst_32 {dimension_numbers = #tpu.dot_dimension_numbers<[1], [0], [0], [1], [0, 0, 1, 1], [], []>} : vector<256x128xbf16>, vector<128x128xbf16>, vector<256x128xf32> -> vector<256x128xf32>
    %43 = arith.addf %36, %42 : vector<256x128xf32>
    %44 = vector.extract_strided_slice %7 {offsets = [1, 2, 0], sizes = [16, 16, 128], strides = [1, 1, 1]} : vector<18x18x128xf32> to vector<16x16x128xf32>
    %45 = vector.shape_cast %44 : vector<16x16x128xf32> to vector<256x128xf32>
    %46 = arith.truncf %45 : vector<256x128xf32> to vector<256x128xbf16>
    %c1_33 = arith.constant 1 : index
    %c2_34 = arith.constant 2 : index
    %c0_35 = arith.constant 0 : index
    %c0_36 = arith.constant 0 : index
    %47 = vector.load %arg2[%c1_33, %c2_34, %c0_35, %c0_36] : memref<3x3x128x128xbf16, #tpu.memory_space<vmem>>, vector<1x1x128x128xbf16>
    %48 = vector.shape_cast %47 : vector<1x1x128x128xbf16> to vector<128x128xbf16>
    %cst_37 = arith.constant dense<0.000000e+00> : vector<256x128xf32>
    %49 = tpu.matmul %46, %48, %cst_37 {dimension_numbers = #tpu.dot_dimension_numbers<[1], [0], [0], [1], [0, 0, 1, 1], [], []>} : vector<256x128xbf16>, vector<128x128xbf16>, vector<256x128xf32> -> vector<256x128xf32>
    %50 = arith.addf %43, %49 : vector<256x128xf32>
    %51 = vector.extract_strided_slice %7 {offsets = [2, 0, 0], sizes = [16, 16, 128], strides = [1, 1, 1]} : vector<18x18x128xf32> to vector<16x16x128xf32>
    %52 = vector.shape_cast %51 : vector<16x16x128xf32> to vector<256x128xf32>
    %53 = arith.truncf %52 : vector<256x128xf32> to vector<256x128xbf16>
    %c2_38 = arith.constant 2 : index
    %c0_39 = arith.constant 0 : index
    %c0_40 = arith.constant 0 : index
    %c0_41 = arith.constant 0 : index
    %54 = vector.load %arg2[%c2_38, %c0_39, %c0_40, %c0_41] : memref<3x3x128x128xbf16, #tpu.memory_space<vmem>>, vector<1x1x128x128xbf16>
    %55 = vector.shape_cast %54 : vector<1x1x128x128xbf16> to vector<128x128xbf16>
    %cst_42 = arith.constant dense<0.000000e+00> : vector<256x128xf32>
    %56 = tpu.matmul %53, %55, %cst_42 {dimension_numbers = #tpu.dot_dimension_numbers<[1], [0], [0], [1], [0, 0, 1, 1], [], []>} : vector<256x128xbf16>, vector<128x128xbf16>, vector<256x128xf32> -> vector<256x128xf32>
    %57 = arith.addf %50, %56 : vector<256x128xf32>
    %58 = vector.extract_strided_slice %7 {offsets = [2, 1, 0], sizes = [16, 16, 128], strides = [1, 1, 1]} : vector<18x18x128xf32> to vector<16x16x128xf32>
    %59 = vector.shape_cast %58 : vector<16x16x128xf32> to vector<256x128xf32>
    %60 = arith.truncf %59 : vector<256x128xf32> to vector<256x128xbf16>
    %c2_43 = arith.constant 2 : index
    %c1_44 = arith.constant 1 : index
    %c0_45 = arith.constant 0 : index
    %c0_46 = arith.constant 0 : index
    %61 = vector.load %arg2[%c2_43, %c1_44, %c0_45, %c0_46] : memref<3x3x128x128xbf16, #tpu.memory_space<vmem>>, vector<1x1x128x128xbf16>
    %62 = vector.shape_cast %61 : vector<1x1x128x128xbf16> to vector<128x128xbf16>
    %cst_47 = arith.constant dense<0.000000e+00> : vector<256x128xf32>
    %63 = tpu.matmul %60, %62, %cst_47 {dimension_numbers = #tpu.dot_dimension_numbers<[1], [0], [0], [1], [0, 0, 1, 1], [], []>} : vector<256x128xbf16>, vector<128x128xbf16>, vector<256x128xf32> -> vector<256x128xf32>
    %64 = arith.addf %57, %63 : vector<256x128xf32>
    %65 = vector.extract_strided_slice %7 {offsets = [2, 2, 0], sizes = [16, 16, 128], strides = [1, 1, 1]} : vector<18x18x128xf32> to vector<16x16x128xf32>
    %66 = vector.shape_cast %65 : vector<16x16x128xf32> to vector<256x128xf32>
    %67 = arith.truncf %66 : vector<256x128xf32> to vector<256x128xbf16>
    %c2_48 = arith.constant 2 : index
    %c2_49 = arith.constant 2 : index
    %c0_50 = arith.constant 0 : index
    %c0_51 = arith.constant 0 : index
    %68 = vector.load %arg2[%c2_48, %c2_49, %c0_50, %c0_51] : memref<3x3x128x128xbf16, #tpu.memory_space<vmem>>, vector<1x1x128x128xbf16>
    %69 = vector.shape_cast %68 : vector<1x1x128x128xbf16> to vector<128x128xbf16>
    %cst_52 = arith.constant dense<0.000000e+00> : vector<256x128xf32>
    %70 = tpu.matmul %67, %69, %cst_52 {dimension_numbers = #tpu.dot_dimension_numbers<[1], [0], [0], [1], [0, 0, 1, 1], [], []>} : vector<256x128xbf16>, vector<128x128xbf16>, vector<256x128xf32> -> vector<256x128xf32>
    %71 = arith.addf %64, %70 : vector<256x128xf32>
    %c0_53 = arith.constant 0 : index
    %c0_54 = arith.constant 0 : index
    %c0_55 = arith.constant 0 : index
    %72 = vector.load %arg5[%c0_53, %c0_54, %c0_55] : memref<1x256x128xf32, #tpu.memory_space<vmem>>, vector<1x256x128xf32>
    %73 = vector.shape_cast %72 : vector<1x256x128xf32> to vector<256x128xf32>
    %74 = vector.shape_cast %71 : vector<256x128xf32> to vector<1x256x128xf32>
    tpu.vector_store %arg5[%c0_53, %c0_54, %c0_55], %74 {strides = array<i32>} : memref<1x256x128xf32, #tpu.memory_space<vmem>>, vector<1x256x128xf32>,
    %cst_56 = arith.constant dense<0.000000e+00> : vector<128xf32>
    %75 = vector.multi_reduction <add>, %71, %cst_56 [0] : vector<256x128xf32> to vector<128xf32>
    %76 = vector.shape_cast %75 : vector<128xf32> to vector<1x128xf32>
    %c0_57 = arith.constant 0 : index
    %c0_58 = arith.constant 0 : index
    %77 = vector.load %arg6[%c0_57, %c0_58] : memref<8x128xf32, #tpu.memory_space<vmem>>, vector<1x128xf32>
    tpu.vector_store %arg6[%c0_57, %c0_58], %76 {strides = array<i32>} : memref<8x128xf32, #tpu.memory_space<vmem>>, vector<1x128xf32>,
    %78 = arith.mulf %71, %71 : vector<256x128xf32>
    %cst_59 = arith.constant dense<0.000000e+00> : vector<128xf32>
    %79 = vector.multi_reduction <add>, %78, %cst_59 [0] : vector<256x128xf32> to vector<128xf32>
    %80 = vector.shape_cast %79 : vector<128xf32> to vector<1x128xf32>
    %c1_60 = arith.constant 1 : index
    %c0_61 = arith.constant 0 : index
    %81 = vector.load %arg6[%c1_60, %c0_61] : memref<8x128xf32, #tpu.memory_space<vmem>>, vector<1x128xf32>
    tpu.vector_store %arg6[%c1_60, %c0_61], %80 {strides = array<i32>} : memref<8x128xf32, #tpu.memory_space<vmem>>, vector<1x128xf32>,
    %cst_62 = arith.constant 0.000000e+00 : f32
    %82 = vector.broadcast %cst_62 : f32 to vector<6x128xf32>
    %c2_63 = arith.constant 2 : index
    %c0_64 = arith.constant 0 : index
    %83 = vector.load %arg6[%c2_63, %c0_64] : memref<8x128xf32, #tpu.memory_space<vmem>>, vector<6x128xf32>
    tpu.vector_store %arg6[%c2_63, %c0_64], %82 {strides = array<i32>} : memref<8x128xf32, #tpu.memory_space<vmem>>, vector<6x128xf32>,
    return
  }
  func.func @transform_0(%arg0: i32) -> (i32, i32, i32, i32) {
    %c0_i32 = arith.constant 0 : i32
    %c0_i32_0 = arith.constant 0 : i32
    %c0_i32_1 = arith.constant 0 : i32
    %c0_i32_2 = arith.constant 0 : i32
    return %arg0, %c0_i32, %c0_i32_0, %c0_i32_1 : i32, i32, i32, i32
  }
  func.func @transform_1(%arg0: i32) -> (i32, i32, i32, i32) {
    %c0_i32 = arith.constant 0 : i32
    %c0_i32_0 = arith.constant 0 : i32
    %c0_i32_1 = arith.constant 0 : i32
    %c0_i32_2 = arith.constant 0 : i32
    %c0_i32_3 = arith.constant 0 : i32
    return %c0_i32, %c0_i32_0, %c0_i32_1, %c0_i32_2 : i32, i32, i32, i32
  }
  func.func @transform_2(%arg0: i32) -> (i32, i32, i32) {
    %c0_i32 = arith.constant 0 : i32
    %c0_i32_0 = arith.constant 0 : i32
    %c0_i32_1 = arith.constant 0 : i32
    %c0_i32_2 = arith.constant 0 : i32
    return %c0_i32, %c0_i32_0, %c0_i32_1 : i32, i32, i32
  }
  func.func @transform_3(%arg0: i32) -> (i32, i32, i32) {
    %c0_i32 = arith.constant 0 : i32
    %c0_i32_0 = arith.constant 0 : i32
    %c0_i32_1 = arith.constant 0 : i32
    %c0_i32_2 = arith.constant 0 : i32
    return %c0_i32, %c0_i32_0, %c0_i32_1 : i32, i32, i32
  }
  func.func @transform_4(%arg0: i32) -> (i32, i32, i32) {
    %c0_i32 = arith.constant 0 : i32
    %c0_i32_0 = arith.constant 0 : i32
    %c0_i32_1 = arith.constant 0 : i32
    return %arg0, %c0_i32, %c0_i32_0 : i32, i32, i32
  }
  func.func @transform_5(%arg0: i32) -> (i32, i32) {
    %c0_i32 = arith.constant 0 : i32
    %c0_i32_0 = arith.constant 0 : i32
    return %arg0, %c0_i32 : i32, i32
  }
}

module attributes {stable_mosaic.version = 11 : i64} {
  func.func @_matmul_stats_kernel(%arg0: i32, %arg1: memref<512x128xf32, #tpu.memory_space<vmem>>, %arg2: memref<128x128xbf16, #tpu.memory_space<vmem>>, %arg3: memref<1x128xf32, #tpu.memory_space<vmem>>, %arg4: memref<1x128xf32, #tpu.memory_space<vmem>>, %arg5: memref<512x128xf32, #tpu.memory_space<vmem>>, %arg6: memref<8x128xf32, #tpu.memory_space<vmem>>) attributes {dimension_semantics = [#tpu.dimension_semantics<parallel>], iteration_bounds = array<i64: 1>, scalar_prefetch = 0 : i64, scratch_operands = 0 : i64, tpu.core_type = #tpu.core_type<tc>, window_params = [{transform_indices = @transform_0, window_bounds = array<i64: 512, 128>}, {pipeline_mode = #tpu.pipeline_mode<synchronous>, transform_indices = @transform_1, window_bounds = array<i64: 128, 128>}, {pipeline_mode = #tpu.pipeline_mode<synchronous>, transform_indices = @transform_2, window_bounds = array<i64: 1, 128>}, {pipeline_mode = #tpu.pipeline_mode<synchronous>, transform_indices = @transform_3, window_bounds = array<i64: 1, 128>}, {transform_indices = @transform_4, window_bounds = array<i64: 512, 128>}, {transform_indices = @transform_5, window_bounds = array<i64: 8, 128>}]} {
    %c0 = arith.constant 0 : index
    %c0_0 = arith.constant 0 : index
    %0 = vector.load %arg1[%c0, %c0_0] : memref<512x128xf32, #tpu.memory_space<vmem>>, vector<512x128xf32>
    %c0_1 = arith.constant 0 : index
    %c0_2 = arith.constant 0 : index
    %1 = vector.load %arg3[%c0_1, %c0_2] : memref<1x128xf32, #tpu.memory_space<vmem>>, vector<1x128xf32>
    %2 = vector.broadcast %1 : vector<1x128xf32> to vector<512x128xf32>
    %3 = arith.mulf %0, %2 : vector<512x128xf32>
    %c0_3 = arith.constant 0 : index
    %c0_4 = arith.constant 0 : index
    %4 = vector.load %arg4[%c0_3, %c0_4] : memref<1x128xf32, #tpu.memory_space<vmem>>, vector<1x128xf32>
    %5 = vector.broadcast %4 : vector<1x128xf32> to vector<512x128xf32>
    %6 = arith.addf %3, %5 : vector<512x128xf32>
    %cst = arith.constant 0.000000e+00 : f32
    %7 = vector.broadcast %cst : f32 to vector<512x128xf32>
    %8 = arith.maximumf %6, %7 : vector<512x128xf32>
    %9 = arith.truncf %8 : vector<512x128xf32> to vector<512x128xbf16>
    %c0_5 = arith.constant 0 : index
    %c0_6 = arith.constant 0 : index
    %10 = vector.load %arg2[%c0_5, %c0_6] : memref<128x128xbf16, #tpu.memory_space<vmem>>, vector<128x128xbf16>
    %cst_7 = arith.constant dense<0.000000e+00> : vector<512x128xf32>
    %11 = tpu.matmul %9, %10, %cst_7 {dimension_numbers = #tpu.dot_dimension_numbers<[1], [0], [0], [1], [0, 0, 1, 1], [], []>} : vector<512x128xbf16>, vector<128x128xbf16>, vector<512x128xf32> -> vector<512x128xf32>
    %c0_8 = arith.constant 0 : index
    %c0_9 = arith.constant 0 : index
    %12 = vector.load %arg5[%c0_8, %c0_9] : memref<512x128xf32, #tpu.memory_space<vmem>>, vector<512x128xf32>
    tpu.vector_store %arg5[%c0_8, %c0_9], %11 {strides = array<i32>} : memref<512x128xf32, #tpu.memory_space<vmem>>, vector<512x128xf32>,
    %cst_10 = arith.constant dense<0.000000e+00> : vector<128xf32>
    %13 = vector.multi_reduction <add>, %11, %cst_10 [0] : vector<512x128xf32> to vector<128xf32>
    %14 = vector.shape_cast %13 : vector<128xf32> to vector<1x128xf32>
    %c0_11 = arith.constant 0 : index
    %c0_12 = arith.constant 0 : index
    %15 = vector.load %arg6[%c0_11, %c0_12] : memref<8x128xf32, #tpu.memory_space<vmem>>, vector<1x128xf32>
    tpu.vector_store %arg6[%c0_11, %c0_12], %14 {strides = array<i32>} : memref<8x128xf32, #tpu.memory_space<vmem>>, vector<1x128xf32>,
    %16 = arith.mulf %11, %11 : vector<512x128xf32>
    %cst_13 = arith.constant dense<0.000000e+00> : vector<128xf32>
    %17 = vector.multi_reduction <add>, %16, %cst_13 [0] : vector<512x128xf32> to vector<128xf32>
    %18 = vector.shape_cast %17 : vector<128xf32> to vector<1x128xf32>
    %c1 = arith.constant 1 : index
    %c0_14 = arith.constant 0 : index
    %19 = vector.load %arg6[%c1, %c0_14] : memref<8x128xf32, #tpu.memory_space<vmem>>, vector<1x128xf32>
    tpu.vector_store %arg6[%c1, %c0_14], %18 {strides = array<i32>} : memref<8x128xf32, #tpu.memory_space<vmem>>, vector<1x128xf32>,
    %cst_15 = arith.constant 0.000000e+00 : f32
    %20 = vector.broadcast %cst_15 : f32 to vector<6x128xf32>
    %c2 = arith.constant 2 : index
    %c0_16 = arith.constant 0 : index
    %21 = vector.load %arg6[%c2, %c0_16] : memref<8x128xf32, #tpu.memory_space<vmem>>, vector<6x128xf32>
    tpu.vector_store %arg6[%c2, %c0_16], %20 {strides = array<i32>} : memref<8x128xf32, #tpu.memory_space<vmem>>, vector<6x128xf32>,
    return
  }
  func.func @transform_0(%arg0: i32) -> (i32, i32) {
    %c0_i32 = arith.constant 0 : i32
    %c0_i32_0 = arith.constant 0 : i32
    return %arg0, %c0_i32 : i32, i32
  }
  func.func @transform_1(%arg0: i32) -> (i32, i32) {
    %c0_i32 = arith.constant 0 : i32
    %c0_i32_0 = arith.constant 0 : i32
    %c0_i32_1 = arith.constant 0 : i32
    return %c0_i32, %c0_i32_0 : i32, i32
  }
  func.func @transform_2(%arg0: i32) -> (i32, i32) {
    %c0_i32 = arith.constant 0 : i32
    %c0_i32_0 = arith.constant 0 : i32
    %c0_i32_1 = arith.constant 0 : i32
    return %c0_i32, %c0_i32_0 : i32, i32
  }
  func.func @transform_3(%arg0: i32) -> (i32, i32) {
    %c0_i32 = arith.constant 0 : i32
    %c0_i32_0 = arith.constant 0 : i32
    %c0_i32_1 = arith.constant 0 : i32
    return %c0_i32, %c0_i32_0 : i32, i32
  }
  func.func @transform_4(%arg0: i32) -> (i32, i32) {
    %c0_i32 = arith.constant 0 : i32
    %c0_i32_0 = arith.constant 0 : i32
    return %arg0, %c0_i32 : i32, i32
  }
  func.func @transform_5(%arg0: i32) -> (i32, i32) {
    %c0_i32 = arith.constant 0 : i32
    %c0_i32_0 = arith.constant 0 : i32
    return %arg0, %c0_i32 : i32, i32
  }
}

module attributes {stable_mosaic.version = 11 : i64} {
  func.func @_residual_out_kernel(%arg0: i32, %arg1: memref<512x128xf32, #tpu.memory_space<vmem>>, %arg2: memref<1x128xf32, #tpu.memory_space<vmem>>, %arg3: memref<1x128xf32, #tpu.memory_space<vmem>>, %arg4: memref<512x128xf32, #tpu.memory_space<vmem>>, %arg5: memref<1x128xf32, #tpu.memory_space<vmem>>, %arg6: memref<1x128xf32, #tpu.memory_space<vmem>>, %arg7: memref<512x128xf32, #tpu.memory_space<vmem>>) attributes {dimension_semantics = [#tpu.dimension_semantics<parallel>], iteration_bounds = array<i64: 1>, scalar_prefetch = 0 : i64, scratch_operands = 0 : i64, tpu.core_type = #tpu.core_type<tc>, window_params = [{transform_indices = @transform_0, window_bounds = array<i64: 512, 128>}, {pipeline_mode = #tpu.pipeline_mode<synchronous>, transform_indices = @transform_1, window_bounds = array<i64: 1, 128>}, {pipeline_mode = #tpu.pipeline_mode<synchronous>, transform_indices = @transform_2, window_bounds = array<i64: 1, 128>}, {transform_indices = @transform_3, window_bounds = array<i64: 512, 128>}, {pipeline_mode = #tpu.pipeline_mode<synchronous>, transform_indices = @transform_4, window_bounds = array<i64: 1, 128>}, {pipeline_mode = #tpu.pipeline_mode<synchronous>, transform_indices = @transform_5, window_bounds = array<i64: 1, 128>}, {transform_indices = @transform_6, window_bounds = array<i64: 512, 128>}]} {
    %c0 = arith.constant 0 : index
    %c0_0 = arith.constant 0 : index
    %0 = vector.load %arg1[%c0, %c0_0] : memref<512x128xf32, #tpu.memory_space<vmem>>, vector<512x128xf32>
    %c0_1 = arith.constant 0 : index
    %c0_2 = arith.constant 0 : index
    %1 = vector.load %arg2[%c0_1, %c0_2] : memref<1x128xf32, #tpu.memory_space<vmem>>, vector<1x128xf32>
    %2 = vector.broadcast %1 : vector<1x128xf32> to vector<512x128xf32>
    %3 = arith.mulf %0, %2 : vector<512x128xf32>
    %c0_3 = arith.constant 0 : index
    %c0_4 = arith.constant 0 : index
    %4 = vector.load %arg3[%c0_3, %c0_4] : memref<1x128xf32, #tpu.memory_space<vmem>>, vector<1x128xf32>
    %5 = vector.broadcast %4 : vector<1x128xf32> to vector<512x128xf32>
    %6 = arith.addf %3, %5 : vector<512x128xf32>
    %cst = arith.constant 0.000000e+00 : f32
    %7 = vector.broadcast %cst : f32 to vector<512x128xf32>
    %8 = arith.maximumf %6, %7 : vector<512x128xf32>
    %c0_5 = arith.constant 0 : index
    %c0_6 = arith.constant 0 : index
    %9 = vector.load %arg4[%c0_5, %c0_6] : memref<512x128xf32, #tpu.memory_space<vmem>>, vector<512x128xf32>
    %c0_7 = arith.constant 0 : index
    %c0_8 = arith.constant 0 : index
    %10 = vector.load %arg5[%c0_7, %c0_8] : memref<1x128xf32, #tpu.memory_space<vmem>>, vector<1x128xf32>
    %11 = vector.broadcast %10 : vector<1x128xf32> to vector<512x128xf32>
    %12 = arith.mulf %9, %11 : vector<512x128xf32>
    %c0_9 = arith.constant 0 : index
    %c0_10 = arith.constant 0 : index
    %13 = vector.load %arg6[%c0_9, %c0_10] : memref<1x128xf32, #tpu.memory_space<vmem>>, vector<1x128xf32>
    %14 = vector.broadcast %13 : vector<1x128xf32> to vector<512x128xf32>
    %15 = arith.addf %12, %14 : vector<512x128xf32>
    %16 = arith.addf %8, %15 : vector<512x128xf32>
    %cst_11 = arith.constant 0.000000e+00 : f32
    %17 = vector.broadcast %cst_11 : f32 to vector<512x128xf32>
    %18 = arith.maximumf %16, %17 : vector<512x128xf32>
    %c0_12 = arith.constant 0 : index
    %c0_13 = arith.constant 0 : index
    %19 = vector.load %arg7[%c0_12, %c0_13] : memref<512x128xf32, #tpu.memory_space<vmem>>, vector<512x128xf32>
    tpu.vector_store %arg7[%c0_12, %c0_13], %18 {strides = array<i32>} : memref<512x128xf32, #tpu.memory_space<vmem>>, vector<512x128xf32>,
    return
  }
  func.func @transform_0(%arg0: i32) -> (i32, i32) {
    %c0_i32 = arith.constant 0 : i32
    %c0_i32_0 = arith.constant 0 : i32
    return %arg0, %c0_i32 : i32, i32
  }
  func.func @transform_1(%arg0: i32) -> (i32, i32) {
    %c0_i32 = arith.constant 0 : i32
    %c0_i32_0 = arith.constant 0 : i32
    %c0_i32_1 = arith.constant 0 : i32
    return %c0_i32, %c0_i32_0 : i32, i32
  }
  func.func @transform_2(%arg0: i32) -> (i32, i32) {
    %c0_i32 = arith.constant 0 : i32
    %c0_i32_0 = arith.constant 0 : i32
    %c0_i32_1 = arith.constant 0 : i32
    return %c0_i32, %c0_i32_0 : i32, i32
  }
  func.func @transform_3(%arg0: i32) -> (i32, i32) {
    %c0_i32 = arith.constant 0 : i32
    %c0_i32_0 = arith.constant 0 : i32
    return %arg0, %c0_i32 : i32, i32
  }
  func.func @transform_4(%arg0: i32) -> (i32, i32) {
    %c0_i32 = arith.constant 0 : i32
    %c0_i32_0 = arith.constant 0 : i32
    %c0_i32_1 = arith.constant 0 : i32
    return %c0_i32, %c0_i32_0 : i32, i32
  }
  func.func @transform_5(%arg0: i32) -> (i32, i32) {
    %c0_i32 = arith.constant 0 : i32
    %c0_i32_0 = arith.constant 0 : i32
    %c0_i32_1 = arith.constant 0 : i32
    return %c0_i32, %c0_i32_0 : i32, i32
  }
  func.func @transform_6(%arg0: i32) -> (i32, i32) {
    %c0_i32 = arith.constant 0 : i32
    %c0_i32_0 = arith.constant 0 : i32
    return %arg0, %c0_i32 : i32, i32
  }
}

</mosaic_0001>

<bundles_post_ra>
// kernel: bottleneck_block.6
= control target key start
LH: loop header
LB: loop body
LE: loop exit
PB: predicated region body
PF: predicated region fallthrough
CT: control target
= control target key end

     0   :  { %s1988_s1 = inlined_call_operand.vmem [shape: bf16[128,128], index: 1, kind: input, shape index: {}]   ;;  %s1989_s0 = inlined_call_operand.vmem [shape: f32[512,128], index: 0, kind: input, shape index: {}]   ;;  %s1990_s2 = inlined_call_operand.vmem [shape: f32[1,128], index: 2, kind: input, shape index: {}]   ;;  %s1991_s3 = inlined_call_operand.vmem [shape: f32[1,128], index: 3, kind: input, shape index: {}]   ;;  %s1992_s4 = inlined_call_operand.vmem [shape: f32[512,128], index: 4, kind: output, shape index: {0}]   ;;  %s1993_s5 = inlined_call_operand.vmem [shape: f32[8,128], index: 5, kind: output, shape index: {1}]  }
   0x1   :  { %v1099_v0 = vld [vmem:[%s1988_s1] sm:$0xff]   ;;  %v1100_v1 = vld [vmem:[%s1988_s1 + $0x8] sm:$0xff]   ;;  %v1101_v2 = vld [vmem:[%s1988_s1 + $0x10] sm:$0xff]  }
   0x2   :  { %1002 = vmatprep.subr.bf16.mxu0 %v1099_v0  ;;  %1082 = vmatprep.subr.bf16.mxu1 %v1099_v0  ;;  %v1102_v3 = vld [vmem:[%s1988_s1 + $0x18] sm:$0xff]   ;;  %v20_v4 = vld [vmem:[%s1989_s0] sm:$0xff]  ;;  %v21_v5 = vld [vmem:[%s1989_s0 + $0x8] sm:$0xff] }
   0x3   :  { %1003 = vmatpush3.bf16.msra.mxu0 %v1099_v0  ;;  %1090 = vmatpush3.bf16.msra.mxu1 %v1099_v0  ;;  %v1159_v6 = vld [vmem:[%s1990_s2] ss:$0 sm:$0xff]  ;;  %v22_v10 = vld [vmem:[%s1989_s0 + $0x10] sm:$0xff]  ;;  %v23_v14 = vld [vmem:[%s1989_s0 + $0x18] sm:$0xff] }
   0x4   :  { %1004 = vmatprep.subr.bf16.mxu0 %v1100_v1  ;;  %1083 = vmatprep.subr.bf16.mxu1 %v1100_v1  ;;  %v91_v7 = vmul.f32 %v1159_v6, %v20_v4  ;;  %v92_v8 = vmul.f32 %v1159_v6, %v21_v5  ;;  %v1166_v9 = vld [vmem:[%s1991_s3] ss:$0 sm:$0xff]  ;;  %v25_v16 = vld [vmem:[%s1989_s0 + $0x28] sm:$0xff]  ;;  %v26_v17 = vld [vmem:[%s1989_s0 + $0x30] sm:$0xff]  ;;  %v93_v21 = vmul.f32 %v1159_v6, %v22_v10 }
   0x5   :  { %v1174_v11 = vld [vmem:[%s1988_s1 + $0x20] sm:$0xff]   ;;  %v27_v18 = vld [vmem:[%s1989_s0 + $0x38] sm:$0xff]  ;;  %v29_v23 = vld [vmem:[%s1989_s0 + $0x48] sm:$0xff]  ;;  %v94_v24 = vmul.f32 %v1159_v6, %v23_v14  ;;  %v96_v29 = vmul.f32 %v1159_v6, %v25_v16  ;;  %v97_v30 = vmul.f32 %v1159_v6, %v26_v17 }
   0x6   :  { %v162_v12 = vadd.f32 %v1166_v9, %v91_v7  ;;  %v163_v13 = vadd.f32 %v1166_v9, %v92_v8  ;;  %v24_v15 = vld [vmem:[%s1989_s0 + $0x20] sm:$0xff]  ;;  %v30_v26 = vld [vmem:[%s1989_s0 + $0x50] sm:$0xff]  ;;  %v31_v27 = vld [vmem:[%s1989_s0 + $0x58] sm:$0xff]  ;;  %v98_v31 = vmul.f32 %v1159_v6, %v27_v18  ;;  %v100_v36 = vmul.f32 %v1159_v6, %v29_v23 }
   0x7   :  { %1005 = vmatpush3.bf16.msra.mxu0 %v1100_v1  ;;  %1091 = vmatpush3.bf16.msra.mxu1 %v1100_v1  ;;  %v28_v22 = vld [vmem:[%s1989_s0 + $0x40] sm:$0xff]  ;;  %v95_v25 = vmul.f32 %v1159_v6, %v24_v15  ;;  %v33_v33 = vld [vmem:[%s1989_s0 + $0x68] sm:$0xff]  ;;  %v164_v37 = vadd.f32 %v1166_v9, %v93_v21  ;;  %v101_v38 = vmul.f32 %v1159_v6, %v30_v26  ;;  %v34_v44 = vld [vmem:[%s1989_s0 + $0x70] sm:$0xff] }
   0x8   :  { %1006 = vmatprep.subr.bf16.mxu0 %v1101_v2  ;;  %1084 = vmatprep.subr.bf16.mxu1 %v1101_v2  ;;  %v226_v19 = vmax.f32 %v162_v12, 0.0  ;;  %v227_v20 = vmax.f32 %v163_v13, 0.0  ;;  %v32_v32 = vld [vmem:[%s1989_s0 + $0x60] sm:$0xff]  ;;  %v1104_v34 = vld [vmem:[%s1988_s1 + $0x28] sm:$0xff]   ;;  %v99_v35 = vmul.f32 %v1159_v6, %v28_v22  ;;  %v102_v39 = vmul.f32 %v1159_v6, %v31_v27  ;;  %v35_v48 = vld [vmem:[%s1989_s0 + $0x78] sm:$0xff] }
   0x9   :  { %v165_v40 = vadd.f32 %v1166_v9, %v94_v24  ;;  %v166_v41 = vadd.f32 %v1166_v9, %v95_v25  ;;  %v103_v42 = vmul.f32 %v1159_v6, %v32_v32  ;;  %v104_v43 = vmul.f32 %v1159_v6, %v33_v33  ;;  %v36_v49 = vld [vmem:[%s1989_s0 + $0x80] sm:$0xff]  ;;  %v1247_v50 = vld [vmem:[%s1988_s1 + $0x30] sm:$0xff]   ;;  %v37_v55 = vld [vmem:[%s1989_s0 + $0x88] sm:$0xff] }
   0xa   :  { %v290_v28 = vpack.c.bf16 %v227_v20, %v226_v19  ;;  %v167_v45 = vadd.f32 %v1166_v9, %v96_v29  ;;  %v168_v46 = vadd.f32 %v1166_v9, %v97_v30  ;;  %v169_v47 = vadd.f32 %v1166_v9, %v98_v31  ;;  %v38_v0 = vld [vmem:[%s1989_s0 + $0x90] sm:$0xff]  ;;  %v39_v5 = vld [vmem:[%s1989_s0 + $0x98] sm:$0xff]  ;;  %v40_v13 = vld [vmem:[%s1989_s0 + $0xa0] sm:$0xff] }
   0xb   :  { %1007 = vmatpush3.bf16.msra.mxu0 %v1101_v2  ;;  %1092 = vmatpush3.bf16.msra.mxu1 %v1101_v2  ;;  %v170_v51 = vadd.f32 %v1166_v9, %v99_v35  ;;  %v171_v52 = vadd.f32 %v1166_v9, %v100_v36  ;;  %v172_v53 = vadd.f32 %v1166_v9, %v101_v38  ;;  %v228_v56 = vmax.f32 %v164_v37, 0.0  ;;  %v1106_v7 = vld [vmem:[%s1988_s1 + $0x38] sm:$0xff]   ;;  %v41_v18 = vld [vmem:[%s1989_s0 + $0xa8] sm:$0xff]  ;;  %v42_v25 = vld [vmem:[%s1989_s0 + $0xb0] sm:$0xff] }
   0xc   :  { %1008 = vmatprep.subr.bf16.mxu0 %v1102_v3  ;;  %1085 = vmatprep.subr.bf16.mxu1 %v1102_v3  ;;  %v173_v54 = vadd.f32 %v1166_v9, %v102_v39  ;;  %v174_v57 = vadd.f32 %v1166_v9, %v103_v42  ;;  %v175_v58 = vadd.f32 %v1166_v9, %v104_v43  ;;  %v229_v60 = vmax.f32 %v165_v40, 0.0  ;;  %v46_v30 = vld [vmem:[%s1989_s0 + $0xd0] sm:$0xff]  ;;  %v47_v31 = vld [vmem:[%s1989_s0 + $0xd8] sm:$0xff]  ;;  %v48_v37 = vld [vmem:[%s1989_s0 + $0xe0] sm:$0xff] }
   0xd   :  { %1018 = vmatprep.mubr.bf16.mxu0 %v290_v28  ;;  %v105_v59 = vmul.f32 %v1159_v6, %v34_v44  ;;  %v230_v61 = vmax.f32 %v166_v41, 0.0  ;;  %v106_v62 = vmul.f32 %v1159_v6, %v35_v48  ;;  %v107_v63 = vmul.f32 %v1159_v6, %v36_v49  ;;  %v43_v36 = vld [vmem:[%s1989_s0 + $0xb8] sm:$0xff]  ;;  %v49_v38 = vld [vmem:[%s1989_s0 + $0xe8] sm:$0xff]  ;;  %v50_v43 = vld [vmem:[%s1989_s0 + $0xf0] sm:$0xff] }
   0xe   :  { %v231_v1 = vmax.f32 %v167_v45, 0.0  ;;  %v232_v2 = vmax.f32 %v168_v46, 0.0  ;;  %v108_v4 = vmul.f32 %v1159_v6, %v37_v55  ;;  %v234_v8 = vmax.f32 %v170_v51, 0.0  ;;  %v51_v48 = vld [vmem:[%s1989_s0 + $0xf8] sm:$0xff] }
   0xf   :  { %1009 = vmatpush3.bf16.msra.mxu0 %v1102_v3  ;;  %1093 = vmatpush3.bf16.msra.mxu1 %v1102_v3  ;;  %v233_v3 = vmax.f32 %v169_v47, 0.0  ;;  %v235_v10 = vmax.f32 %v171_v52, 0.0  ;;  %v237_v12 = vmax.f32 %v173_v54, 0.0  ;;  %v238_v14 = vmax.f32 %v174_v57, 0.0 }
  0x10   :  { %1010 = vmatprep.subr.bf16.mxu0 %v1174_v11  ;;  %1086 = vmatprep.subr.bf16.mxu1 %v1174_v11  ;;  %v239_v15 = vmax.f32 %v175_v58, 0.0  ;;  %v1277_v16 = vadd.f32 %v1166_v9, %v105_v59  ;;  %v109_v17 = vmul.f32 %v1159_v6, %v38_v0  ;;  %v1284_v19 = vadd.f32 %v1166_v9, %v106_v62  ;;  %v53_v62 = vld [vmem:[%s1989_s0 + $0x108] sm:$0xff] }
  0x11   :  { %v1287_v20 = vadd.f32 %v1166_v9, %v107_v63  ;;  %v110_v21 = vmul.f32 %v1159_v6, %v39_v5  ;;  %v291_v22 = vpack.c.bf16 %v229_v60, %v228_v56  ;;  %v1292_v23 = vadd.f32 %v1166_v9, %v108_v4  ;;  %v55_v4 = vld [vmem:[%s1989_s0 + $0x118] sm:$0xff] }
  0x12   :  { %v111_v24 = vmul.f32 %v1159_v6, %v40_v13  ;;  %v292_v26 = vpack.c.bf16 %v231_v1, %v230_v61  ;;  %v1299_v27 = vpack.c.bf16 %v233_v3, %v232_v2  ;;  %v1301_v28 = vpack.c.bf16 %v235_v10, %v234_v8  ;;  %v54_v3 = vld [vmem:[%s1989_s0 + $0x110] sm:$0xff] }
  0x13   :  { %1011 = vmatpush3.bf16.msra.mxu0 %v1174_v11  ;;  %1094 = vmatpush3.bf16.msra.mxu1 %v1174_v11  ;;  %v236_v11 = vmax.f32 %v172_v53, 0.0  ;;  %v112_v29 = vmul.f32 %v1159_v6, %v41_v18  ;;  %v1312_v33 = vpack.c.bf16 %v239_v15, %v238_v14  ;;  %v1316_v35 = vadd.f32 %v1166_v9, %v109_v17  ;;  %v52_v53 = vld [vmem:[%s1989_s0 + $0x100] sm:$0xff]  ;;  %v58_v18 = vld [vmem:[%s1989_s0 + $0x130] sm:$0xff] }
  0x14   :  { %1012 = vmatprep.subr.bf16.mxu0 %v1104_v34  ;;  %1087 = vmatprep.subr.bf16.mxu1 %v1104_v34  ;;  %v241_v39 = vmax.f32 %v1284_v19, 0.0  ;;  %v242_v40 = vmax.f32 %v1287_v20, 0.0  ;;  %v1330_v41 = vadd.f32 %v1166_v9, %v110_v21  ;;  %v113_v42 = vmul.f32 %v1159_v6, %v42_v25 }
  0x15   :  { %v1310_v32 = vpack.c.bf16 %v237_v12, %v236_v11  ;;  %v243_v44 = vmax.f32 %v1292_v23, 0.0  ;;  %v1339_v45 = vadd.f32 %v1166_v9, %v111_v24  ;;  %v117_v46 = vmul.f32 %v1159_v6, %v46_v30  ;;  %v56_v11 = vld [vmem:[%s1989_s0 + $0x120] sm:$0xff]  ;;  %v57_v12 = vld [vmem:[%s1989_s0 + $0x128] sm:$0xff] }
  0x16   :  { %v118_v47 = vmul.f32 %v1159_v6, %v47_v31  ;;  %v1347_v49 = vadd.f32 %v1166_v9, %v112_v29  ;;  %v119_v51 = vmul.f32 %v1159_v6, %v48_v37  ;;  %v120_v52 = vmul.f32 %v1159_v6, %v49_v38  ;;  %v60_v37 = vld [vmem:[%s1989_s0 + $0x140] sm:$0xff] }
  0x17   :  { %1013 = vmatpush3.bf16.msra.mxu0 %v1104_v34  ;;  %1095 = vmatpush3.bf16.msra.mxu1 %v1104_v34  ;;  %v240_v34 = vmax.f32 %v1277_v16, 0.0  ;;  %v244_v54 = vmax.f32 %v1316_v35, 0.0  ;;  %v188_v55 = vadd.f32 %v1166_v9, %v117_v46  ;;  %v121_v57 = vmul.f32 %v1159_v6, %v50_v43  ;;  %v75_v16 = vld [vmem:[%s1989_s0 + $0x1b8] sm:$0xff]  ;;  %v70_v35 = vld [vmem:[%s1989_s0 + $0x190] sm:$0xff] }
  0x18   :  { %1014 = vmatprep.subr.bf16.mxu0 %v1247_v50  ;;  %1088 = vmatprep.subr.bf16.mxu1 %v1247_v50  ;;  %v189_v56 = vadd.f32 %v1166_v9, %v118_v47  ;;  %v245_v58 = vmax.f32 %v1330_v41, 0.0  ;;  %v190_v59 = vadd.f32 %v1166_v9, %v119_v51  ;;  %v191_v60 = vadd.f32 %v1166_v9, %v120_v52  ;;  %v44_v47 = vld [vmem:[%s1989_s0 + $0xc0] sm:$0xff] }
  0x19   :  { %v122_v61 = vmul.f32 %v1159_v6, %v51_v48  ;;  %v252_v63 = vmax.f32 %v188_v55, 0.0  ;;  %v192_v1 = vadd.f32 %v1166_v9, %v121_v57  ;;  %v123_v2 = vmul.f32 %v1159_v6, %v52_v53  ;;  %v61_v55 = vld [vmem:[%s1989_s0 + $0x148] sm:$0xff] }
  0x1a   :  { %v253_v0 = vmax.f32 %v189_v56, 0.0  ;;  %v1377_v5 = vadd.f32 %v1166_v9, %v113_v42  ;;  %v255_v8 = vmax.f32 %v191_v60, 0.0  ;;  %v124_v15 = vmul.f32 %v1159_v6, %v53_v62  ;;  %v63_v62 = vld [vmem:[%s1989_s0 + $0x158] sm:$0xff] }
  0x1b   :  { %1015 = vmatpush3.bf16.msra.mxu0 %v1247_v50  ;;  %1096 = vmatpush3.bf16.msra.mxu1 %v1247_v50  ;;  %v1350_v50 = vmul.f32 %v1159_v6, %v43_v36  ;;  %v193_v10 = vadd.f32 %v1166_v9, %v122_v61  ;;  %v256_v14 = vmax.f32 %v192_v1, 0.0  ;;  %v194_v17 = vadd.f32 %v1166_v9, %v123_v2  ;;  %v62_v61 = vld [vmem:[%s1989_s0 + $0x150] sm:$0xff]  ;;  %v64_v2 = vld [vmem:[%s1989_s0 + $0x160] sm:$0xff] }
  0x1c   :  { %1016 = vmatprep.subr.bf16.mxu0 %v1106_v7  ;;  %1089 = vmatprep.subr.bf16.mxu1 %v1106_v7  ;;  %v1386_v13 = vpack.c.bf16 %v253_v0, %v252_v63  ;;  %v125_v24 = vmul.f32 %v1159_v6, %v54_v3  ;;  %v126_v25 = vmul.f32 %v1159_v6, %v55_v4  ;;  %v65_v3 = vld [vmem:[%s1989_s0 + $0x168] sm:$0xff]  ;;  %v248_v19 = vmax.f32 %v1377_v5, 0.0 }
  0x1d   :  { %v195_v29 = vadd.f32 %v1166_v9, %v124_v15  ;;  %v258_v30 = vmax.f32 %v194_v17, 0.0  ;;  %v127_v31 = vmul.f32 %v1159_v6, %v56_v11  ;;  %v128_v36 = vmul.f32 %v1159_v6, %v57_v12  ;;  %v67_v17 = vld [vmem:[%s1989_s0 + $0x178] sm:$0xff] }
  0x1e   :  { %v196_v42 = vadd.f32 %v1166_v9, %v125_v24  ;;  %v197_v43 = vadd.f32 %v1166_v9, %v126_v25  ;;  %v129_v46 = vmul.f32 %v1159_v6, %v58_v18  ;;  %v131_v60 = vmul.f32 %v1159_v6, %v60_v37 }
  0x1f   :  { %1017 = vmatpush3.bf16.msra.mxu0 %v1106_v7  ;;  %1097 = vmatpush3.bf16.msra.mxu1 %v1106_v7  ;;  %v254_v7 = vmax.f32 %v190_v59, 0.0  ;;  %v259_v48 = vmax.f32 %v195_v29, 0.0  ;;  %v198_v51 = vadd.f32 %v1166_v9, %v127_v31  ;;  %v199_v52 = vadd.f32 %v1166_v9, %v128_v36  ;;  %v45_v29 = vld [vmem:[%s1989_s0 + $0xc8] sm:$0xff] }
  0x20   :  { %v260_v56 = vmax.f32 %v196_v42, 0.0  ;;  %v261_v57 = vmax.f32 %v197_v43, 0.0  ;;  %v200_v59 = vadd.f32 %v1166_v9, %v129_v46  ;;  %v115_v4 = vmul.f32 %v1159_v6, %v44_v47 }
  0x21   :  { %v1393_v21 = vpack.c.bf16 %v255_v8, %v254_v7  ;;  %v306_v63 = vpack.c.bf16 %v259_v48, %v258_v30  ;;  %v262_v0 = vmax.f32 %v198_v51, 0.0  ;;  %v263_v1 = vmax.f32 %v199_v52, 0.0 }
  0x22   :  { %1019 = vmatmul.mubr.bf16.vlgmr.msra.gmra.mrb[0].mxu0 %v291_v22  ;;  %v257_v22 = vmax.f32 %v193_v10, 0.0  ;;  %v307_v7 = vpack.c.bf16 %v261_v57, %v260_v56  ;;  %v132_v8 = vmul.f32 %v1159_v6, %v61_v55  ;;  %v66_v10 = vld [vmem:[%s1989_s0 + $0x170] sm:$0xff]  ;;  %v264_v12 = vmax.f32 %v200_v59, 0.0 }
  0x23   :  { %1022 = vmatprep.mubr.bf16.mxu0 %v292_v26  ;;  %v59_v26 = vld [vmem:[%s1989_s0 + $0x138] sm:$0xff]  ;;  %1050 = vmatprep.mubr.bf16.mxu1 %v306_v63  ;;  %v308_v11 = vpack.c.bf16 %v263_v1, %v262_v0  ;;  %v134_v15 = vmul.f32 %v1159_v6, %v63_v62  ;;  %v135_v24 = vmul.f32 %v1159_v6, %v64_v2  ;;  %v246_v48 = vmax.f32 %v1339_v45, 0.0 }
  0x24   :  { %v1406_v38 = vpack.c.bf16 %v257_v22, %v256_v14  ;;  %v130_v53 = vmul.f32 %v1159_v6, %v59_v26  ;;  %v133_v14 = vmul.f32 %v1159_v6, %v62_v61  ;;  %1051 = vmatmul.mubr.bf16.vlgmr.msra.gmra.mrb[0].mxu1 %v307_v7  ;;  %v203_v22 = vadd.f32 %v1166_v9, %v132_v8  ;;  %v68_v26 = vld [vmem:[%s1989_s0 + $0x180] sm:$0xff]  ;;  %v77_v7 = vld [vmem:[%s1989_s0 + $0x1c8] sm:$0xff] }
  0x25   :  { %v136_v25 = vmul.f32 %v1159_v6, %v65_v3  ;;  %1054 = vmatprep.mubr.bf16.mxu1 %v308_v11  ;;  %v205_v36 = vadd.f32 %v1166_v9, %v134_v15  ;;  %v137_v37 = vmul.f32 %v1159_v6, %v66_v10  ;;  %v206_v43 = vadd.f32 %v1166_v9, %v135_v24  ;;  %v72_v3 = vld [vmem:[%s1989_s0 + $0x1a0] sm:$0xff]  ;;  %v73_v10 = vld [vmem:[%s1989_s0 + $0x1a8] sm:$0xff]  ;;  %v79_v15 = vld [vmem:[%s1989_s0 + $0x1d8] sm:$0xff] }
  0x26   :  { %v204_v31 = vadd.f32 %v1166_v9, %v133_v14  ;;  %v267_v42 = vmax.f32 %v203_v22, 0.0  ;;  %v138_v47 = vmul.f32 %v1159_v6, %v67_v17  ;;  %v247_v51 = vmax.f32 %v1347_v49, 0.0  ;;  %v78_v14 = vld [vmem:[%s1989_s0 + $0x1d0] sm:$0xff] }
  0x27   :  { %v207_v46 = vadd.f32 %v1166_v9, %v136_v25  ;;  %v1467_v52 = vadd.f32 %v1166_v9, %v1350_v50  ;;  %v116_v55 = vmul.f32 %v1159_v6, %v45_v29  ;;  %v269_v59 = vmax.f32 %v205_v36, 0.0  ;;  %v80_v25 = vld [vmem:[%s1989_s0 + $0x1e0] sm:$0xff] }
  0x28   :  { %v268_v57 = vmax.f32 %v204_v31, 0.0  ;;  %v270_v49 = vmax.f32 %v206_v43, 0.0  ;;  %v1477_v50 = vadd.f32 %v1166_v9, %v137_v37  ;;  %v297_v62 = vpack.c.bf16 %v241_v39, %v240_v34  ;;  %v76_v39 = vld [vmem:[%s1989_s0 + $0x1c0] sm:$0xff]  ;;  %v82_v37 = vld [vmem:[%s1989_s0 + $0x1f0] sm:$0xff] }
  0x29   :  { %v271_v61 = vmax.f32 %v207_v46, 0.0  ;;  %v1494_v63 = vpack.c.bf16 %v245_v58, %v244_v54  ;;  %v1497_v0 = vadd.f32 %v1166_v9, %v138_v47  ;;  %v1504_v20 = vadd.f32 %v1166_v9, %v115_v4  ;;  %v71_v54 = vld [vmem:[%s1989_s0 + $0x198] sm:$0xff] }
  0x2a   :  { %1023 = vmatmul.mubr.bf16.gmra.mrb[4].mxu0 %v1299_v27  ;;  %v201_v27 = vadd.f32 %v1166_v9, %v130_v53  ;;  %v139_v53 = vmul.f32 %v1159_v6, %v68_v26  ;;  %v249_v41 = vmax.f32 %v1467_v52, 0.0  ;;  %v311_v1 = vpack.c.bf16 %v269_v59, %v268_v57  ;;  %v81_v26 = vld [vmem:[%s1989_s0 + $0x1e8] sm:$0xff] }
  0x2b   :  { %1026 = vmatprep.mubr.bf16.mxu0 %v1301_v28  ;;  %v202_v28 = vadd.f32 %v1166_v9, %v131_v60  ;;  %v69_v60 = vld [vmem:[%s1989_s0 + $0x188] sm:$0xff]  ;;  %v272_v2 = vmax.f32 %v1477_v50, 0.0  ;;  %v146_v4 = vmul.f32 %v1159_v6, %v75_v16  ;;  %v273_v8 = vmax.f32 %v1497_v0, 0.0 }
  0x2c   :  { %v265_v18 = vmax.f32 %v201_v27, 0.0  ;;  %v140_v23 = vmul.f32 %v1159_v6, %v69_v60  ;;  %v1508_v34 = vadd.f32 %v1166_v9, %v139_v53  ;;  %v312_v27 = vpack.c.bf16 %v271_v61, %v270_v49 }
  0x2d   :  { %v266_v30 = vmax.f32 %v202_v28, 0.0  ;;  %v141_v28 = vmul.f32 %v1159_v6, %v70_v35  ;;  %v142_v22 = vmul.f32 %v1159_v6, %v71_v54  ;;  %v217_v24 = vadd.f32 %v1166_v9, %v146_v4 }
  0x2e   :  { %v309_v56 = vpack.c.bf16 %v265_v18, %v264_v12  ;;  %v147_v12 = vmul.f32 %v1159_v6, %v76_v39  ;;  %v211_v17 = vadd.f32 %v1166_v9, %v140_v23  ;;  %v274_v18 = vmax.f32 %v1508_v34, 0.0 }
  0x2f   :  { %v310_v45 = vpack.c.bf16 %v267_v42, %v266_v30  ;;  %v143_v29 = vmul.f32 %v1159_v6, %v72_v3  ;;  %v148_v31 = vmul.f32 %v1159_v6, %v77_v7  ;;  %v144_v42 = vmul.f32 %v1159_v6, %v73_v10 }
  0x30   :  { %1055 = vmatmul.mubr.bf16.gmra.mrb[4].mxu1 %v309_v56  ;;  %v218_v36 = vadd.f32 %v1166_v9, %v147_v12  ;;  %v281_v43 = vmax.f32 %v217_v24, 0.0  ;;  %v149_v46 = vmul.f32 %v1159_v6, %v78_v14  ;;  %v150_v47 = vmul.f32 %v1159_v6, %v79_v15 }
  0x31   :  { %1058 = vmatprep.mubr.bf16.mxu1 %v310_v45  ;;  %v152_v56 = vmul.f32 %v1159_v6, %v81_v26  ;;  %v153_v45 = vmul.f32 %v1159_v6, %v82_v37  ;;  %v250_v54 = vmax.f32 %v1504_v20, 0.0  ;;  %v214_v12 = vadd.f32 %v1166_v9, %v143_v29 }
  0x32   :  { %1027 = vmatmul.mubr.bf16.gmra.mrb[8].mxu0 %v1310_v32  ;;  %v74_v32 = vld [vmem:[%s1989_s0 + $0x1b0] sm:$0xff]  ;;  %v282_v53 = vmax.f32 %v218_v36, 0.0  ;;  %v220_v59 = vadd.f32 %v1166_v9, %v149_v46  ;;  %v221_v60 = vadd.f32 %v1166_v9, %v150_v47  ;;  %v215_v20 = vadd.f32 %v1166_v9, %v144_v42 }
  0x33   :  { %1030 = vmatprep.mubr.bf16.mxu0 %v1312_v33  ;;  %v298_v33 = vpack.c.bf16 %v243_v44, %v242_v40  ;;  %v1516_v40 = vpack.c.bf16 %v247_v51, %v246_v48  ;;  %v1520_v44 = vadd.f32 %v1166_v9, %v116_v55  ;;  %v145_v58 = vmul.f32 %v1159_v6, %v74_v32  ;;  %v83_v48 = vld [vmem:[%s1989_s0 + $0x1f8] sm:$0xff] }
  0x34   :  { %v219_v51 = vadd.f32 %v1166_v9, %v148_v31  ;;  %v151_v55 = vmul.f32 %v1159_v6, %v80_v25  ;;  %v223_v50 = vadd.f32 %v1166_v9, %v152_v56  ;;  %v154_v32 = vmul.f32 %v1159_v6, %v83_v48 }
  0x35   :  { %v216_v11 = vadd.f32 %v1166_v9, %v145_v58  ;;  %v285_v0 = vmax.f32 %v221_v60, 0.0  ;;  %v224_v16 = vadd.f32 %v1166_v9, %v153_v45  ;;  %v313_v58 = vpack.c.bf16 %v273_v8, %v272_v2 }
  0x36   :  { %v283_v49 = vmax.f32 %v219_v51, 0.0  ;;  %v222_v61 = vadd.f32 %v1166_v9, %v151_v55  ;;  %v287_v35 = vmax.f32 %v223_v50, 0.0  ;;  %v225_v39 = vadd.f32 %v1166_v9, %v154_v32 }
  0x37   :  { %v280_v30 = vmax.f32 %v216_v11, 0.0  ;;  %v288_v3 = vmax.f32 %v224_v16, 0.0  ;;  %v212_v6 = vadd.f32 %v1166_v9, %v141_v28  ;;  %v251_v10 = vmax.f32 %v1520_v44, 0.0 }
  0x38   :  { %1059 = vmatmul.mubr.bf16.gmra.mrb[8].mxu1 %v311_v1  ;;  %v318_v23 = vpack.c.bf16 %v283_v49, %v282_v53  ;;  %v286_v34 = vmax.f32 %v222_v61, 0.0  ;;  %v289_v7 = vmax.f32 %v225_v39, 0.0  ;;  %v278_v15 = vmax.f32 %v214_v12, 0.0 }
  0x39   :  { %v317_v57 = vpack.c.bf16 %v281_v43, %v280_v30  ;;  %1062 = vmatprep.mubr.bf16.mxu1 %v312_v27  ;;  %v213_v27 = vadd.f32 %v1166_v9, %v142_v22  ;;  %v276_v8 = vmax.f32 %v212_v6, 0.0  ;;  %v302_v14 = vpack.c.bf16 %v251_v10, %v250_v54 }
  0x3a   :  { %1031 = vmatmul.mubr.bf16.gmra.mrb[12].mxu0 %v297_v62  ;;  %v275_v62 = vmax.f32 %v211_v17, 0.0  ;;  %v320_v4 = vpack.c.bf16 %v287_v35, %v286_v34  ;;  %v321_v2 = vpack.c.bf16 %v289_v7, %v288_v3  ;;  %v1107_v32 = vmov 0.0  }
  0x3b   :  { %1034 = vmatprep.mubr.bf16.mxu0 %v298_v33  ;;  %v284_v33 = vmax.f32 %v220_v59, 0.0  ;;  %v277_v28 = vmax.f32 %v213_v27, 0.0  ;;  %943 = vst [vmem:[%s1993_s5 + $0x2] sm:$0x3f] %v1107_v32 }
  0x3c   :  { %v314_v11 = vpack.c.bf16 %v275_v62, %v274_v18 }
  0x3d   :  { %v319_v1 = vpack.c.bf16 %v285_v0, %v284_v33  ;;  %v315_v44 = vpack.c.bf16 %v277_v28, %v276_v8 }
  0x40   :  { %1063 = vmatmul.mubr.bf16.gmra.mrb[12].mxu1 %v313_v58 }
  0x41   :  { %1066 = vmatprep.mubr.bf16.mxu1 %v314_v11 }
  0x42   :  { %1035 = vmatmul.mubr.bf16.gmra.mrb[16].mxu0 %v1494_v63  ;;  %v301_v63 = vpack.c.bf16 %v249_v41, %v248_v19 }
  0x43   :  { %1038 = vmatprep.mubr.bf16.mxu0 %v1516_v40  ;;  %v279_v40 = vmax.f32 %v215_v20, 0.0 }
  0x45   :  { %v316_v17 = vpack.c.bf16 %v279_v40, %v278_v15 }
  0x48   :  { %1067 = vmatmul.mubr.bf16.gmra.mrb[16].mxu1 %v315_v44 }
  0x49   :  { %1070 = vmatprep.mubr.bf16.mxu1 %v316_v17 }
  0x4a   :  { %1039 = vmatmul.mubr.bf16.gmra.mrb[20].mxu0 %v301_v63 }
  0x4b   :  { %1042 = vmatprep.mubr.bf16.mxu0 %v302_v14 }
  0x50   :  { %1071 = vmatmul.mubr.bf16.gmra.mrb[20].mxu1 %v317_v57 }
  0x51   :  { %1074 = vmatprep.mubr.bf16.mxu1 %v318_v23 }
  0x52   :  { %1043 = vmatmul.mubr.bf16.gmra.mrb[24].mxu0 %v1386_v13 }
  0x53   :  { %1046 = vmatprep.mubr.bf16.mxu0 %v1393_v21 }
  0x58   :  { %1075 = vmatmul.mubr.bf16.gmra.mrb[24].mxu1 %v319_v1 }
  0x59   :  { %1078 = vmatprep.mubr.bf16.mxu1 %v320_v4 }
  0x5a   :  { %1047 = vmatmul.mubr.bf16.gmra.mrb[28].mxu0 %v1406_v38 }
  0x60   :  { %1079 = vmatmul.mubr.bf16.gmra.mrb[28].mxu1 %v321_v2 }
  0xf5   :  { %v1020_v9 = vpop.f32.mrb[0].mxu0 }
  0xf6   :  { %677 = vst [vmem:[%s1992_s4 + $0x10] sm:$0xff] %v1020_v9  ;;  %v420_v5 = vpop.f32.mrb[1].mxu0  ;;  %v811_v41 = vmul.f32 %v1020_v9, %v1020_v9 }
  0xf7   :  { %675 = vst [vmem:[%s1992_s4] sm:$0xff] %v420_v5  ;;  %v1021_v13 = vpop.f32.mrb[2].mxu0  ;;  %v809_v38 = vmul.f32 %v420_v5, %v420_v5  ;;  %v1619_v51 = vpop.f32.mrb[0].mxu1 }
  0xf8   :  { %678 = vst [vmem:[%s1992_s4 + $0x18] sm:$0xff] %v1021_v13  ;;  %v423_v21 = vpop.f32.mrb[3].mxu0  ;;  %v812_v24 = vmul.f32 %v1021_v13, %v1021_v13  ;;  %709 = vst [vmem:[%s1992_s4 + $0x110] sm:$0xff] %v1619_v51  ;;  %v1625_v53 = vpop.f32.mrb[1].mxu1 }
  0xf9   :  { %676 = vst [vmem:[%s1992_s4 + $0x8] sm:$0xff] %v423_v21  ;;  %v739_v52 = vadd.f32 %v423_v21, %v420_v5  ;;  %v810_v19 = vmul.f32 %v423_v21, %v423_v21  ;;  %707 = vst [vmem:[%s1992_s4 + $0x100] sm:$0xff] %v1625_v53  ;;  %v1631_v59 = vpop.f32.mrb[2].mxu1 }
  0xfa   :  { %710 = vst [vmem:[%s1992_s4 + $0x118] sm:$0xff] %v1631_v59  ;;  %v1637_v60 = vpop.f32.mrb[3].mxu1 }
  0xfb   :  { %v740_v18 = vadd.f32 %v1020_v9, %v739_v52  ;;  %v873_v22 = vadd.f32 %v810_v19, %v809_v38  ;;  %708 = vst [vmem:[%s1992_s4 + $0x108] sm:$0xff] %v1637_v60 }
  0xfd   :  { %v874_v25 = vadd.f32 %v873_v22, %v811_v41  ;;  %v1024_v26 = vpop.f32.mrb[4].mxu0  ;;  %v741_v29 = vadd.f32 %v1021_v13, %v740_v18 }
  0xfe   :  { %681 = vst [vmem:[%s1992_s4 + $0x30] sm:$0xff] %v1024_v26  ;;  %v436_v30 = vpop.f32.mrb[5].mxu0  ;;  %v815_v55 = vmul.f32 %v1024_v26, %v1024_v26 }
  0xff   :  { %679 = vst [vmem:[%s1992_s4 + $0x20] sm:$0xff] %v436_v30  ;;  %v742_v31 = vadd.f32 %v741_v29, %v436_v30  ;;  %v813_v36 = vmul.f32 %v436_v30, %v436_v30  ;;  %v875_v37 = vadd.f32 %v874_v25, %v812_v24  ;;  %v1025_v42 = vpop.f32.mrb[6].mxu0 }
 0x100   :  { %682 = vst [vmem:[%s1992_s4 + $0x38] sm:$0xff] %v1025_v42  ;;  %v439_v43 = vpop.f32.mrb[7].mxu0  ;;  %v816_v45 = vmul.f32 %v1025_v42, %v1025_v42 }
 0x101   :  { %v876_v46 = vadd.f32 %v875_v37, %v813_v36  ;;  %680 = vst [vmem:[%s1992_s4 + $0x28] sm:$0xff] %v439_v43  ;;  %v743_v47 = vadd.f32 %v742_v31, %v439_v43  ;;  %v814_v48 = vmul.f32 %v439_v43, %v439_v43 }
 0x103   :  { %v744_v56 = vadd.f32 %v1024_v26, %v743_v47  ;;  %v877_v57 = vadd.f32 %v876_v46, %v814_v48  ;;  %v1658_v58 = vpop.f32.mrb[4].mxu1 }
 0x104   :  { %713 = vst [vmem:[%s1992_s4 + $0x130] sm:$0xff] %v1658_v58  ;;  %v1664_v1 = vpop.f32.mrb[5].mxu1 }
 0x105   :  { %v878_v49 = vadd.f32 %v877_v57, %v815_v55  ;;  %v1028_v61 = vpop.f32.mrb[8].mxu0  ;;  %v745_v50 = vadd.f32 %v1025_v42, %v744_v56  ;;  %711 = vst [vmem:[%s1992_s4 + $0x120] sm:$0xff] %v1664_v1  ;;  %v1670_v4 = vpop.f32.mrb[6].mxu1 }
 0x106   :  { %685 = vst [vmem:[%s1992_s4 + $0x50] sm:$0xff] %v1028_v61  ;;  %v452_v62 = vpop.f32.mrb[9].mxu0  ;;  %v819_v3 = vmul.f32 %v1028_v61, %v1028_v61  ;;  %714 = vst [vmem:[%s1992_s4 + $0x138] sm:$0xff] %v1670_v4  ;;  %v1676_v7 = vpop.f32.mrb[7].mxu1 }
 0x107   :  { %683 = vst [vmem:[%s1992_s4 + $0x40] sm:$0xff] %v452_v62  ;;  %v746_v33 = vadd.f32 %v745_v50, %v452_v62  ;;  %v817_v0 = vmul.f32 %v452_v62, %v452_v62  ;;  %v879_v16 = vadd.f32 %v878_v49, %v816_v45  ;;  %v1029_v23 = vpop.f32.mrb[10].mxu0  ;;  %712 = vst [vmem:[%s1992_s4 + $0x128] sm:$0xff] %v1676_v7 }
 0x108   :  { %686 = vst [vmem:[%s1992_s4 + $0x58] sm:$0xff] %v1029_v23  ;;  %v455_v34 = vpop.f32.mrb[11].mxu0  ;;  %v820_v10 = vmul.f32 %v1029_v23, %v1029_v23 }
 0x109   :  { %v880_v35 = vadd.f32 %v879_v16, %v817_v0  ;;  %684 = vst [vmem:[%s1992_s4 + $0x48] sm:$0xff] %v455_v34  ;;  %v747_v39 = vadd.f32 %v746_v33, %v455_v34  ;;  %v818_v54 = vmul.f32 %v455_v34, %v455_v34 }
 0x10b   :  { %v748_v6 = vadd.f32 %v1028_v61, %v747_v39  ;;  %v881_v27 = vadd.f32 %v880_v35, %v818_v54  ;;  %v1694_v9 = vpop.f32.mrb[8].mxu1 }
 0x10c   :  { %717 = vst [vmem:[%s1992_s4 + $0x150] sm:$0xff] %v1694_v9  ;;  %v1700_v5 = vpop.f32.mrb[9].mxu1 }
 0x10d   :  { %v882_v11 = vadd.f32 %v881_v27, %v819_v3  ;;  %v1032_v12 = vpop.f32.mrb[12].mxu0  ;;  %v749_v20 = vadd.f32 %v1029_v23, %v748_v6  ;;  %715 = vst [vmem:[%s1992_s4 + $0x140] sm:$0xff] %v1700_v5  ;;  %v1706_v52 = vpop.f32.mrb[10].mxu1 }
 0x10e   :  { %689 = vst [vmem:[%s1992_s4 + $0x70] sm:$0xff] %v1032_v12  ;;  %v468_v2 = vpop.f32.mrb[13].mxu0  ;;  %v823_v13 = vmul.f32 %v1032_v12, %v1032_v12  ;;  %718 = vst [vmem:[%s1992_s4 + $0x158] sm:$0xff] %v1706_v52  ;;  %v1712_v19 = vpop.f32.mrb[11].mxu1 }
 0x10f   :  { %687 = vst [vmem:[%s1992_s4 + $0x60] sm:$0xff] %v468_v2  ;;  %v750_v63 = vadd.f32 %v749_v20, %v468_v2  ;;  %v821_v8 = vmul.f32 %v468_v2, %v468_v2  ;;  %v883_v28 = vadd.f32 %v882_v11, %v820_v10  ;;  %v1033_v14 = vpop.f32.mrb[14].mxu0  ;;  %716 = vst [vmem:[%s1992_s4 + $0x148] sm:$0xff] %v1712_v19 }
 0x110   :  { %690 = vst [vmem:[%s1992_s4 + $0x78] sm:$0xff] %v1033_v14  ;;  %v471_v15 = vpop.f32.mrb[15].mxu0  ;;  %v824_v41 = vmul.f32 %v1033_v14, %v1033_v14 }
 0x111   :  { %v884_v40 = vadd.f32 %v883_v28, %v821_v8  ;;  %688 = vst [vmem:[%s1992_s4 + $0x68] sm:$0xff] %v471_v15  ;;  %v751_v44 = vadd.f32 %v750_v63, %v471_v15  ;;  %v822_v17 = vmul.f32 %v471_v15, %v471_v15 }
 0x113   :  { %v752_v21 = vadd.f32 %v1032_v12, %v751_v44  ;;  %v885_v38 = vadd.f32 %v884_v40, %v822_v17  ;;  %v1730_v46 = vpop.f32.mrb[12].mxu1 }
 0x114   :  { %721 = vst [vmem:[%s1992_s4 + $0x170] sm:$0xff] %v1730_v46  ;;  %v1736_v47 = vpop.f32.mrb[13].mxu1 }
 0x115   :  { %v886_v18 = vadd.f32 %v885_v38, %v823_v13  ;;  %v1036_v22 = vpop.f32.mrb[16].mxu0  ;;  %v753_v24 = vadd.f32 %v1033_v14, %v752_v21  ;;  %719 = vst [vmem:[%s1992_s4 + $0x160] sm:$0xff] %v1736_v47  ;;  %v1742_v57 = vpop.f32.mrb[14].mxu1 }
 0x116   :  { %693 = vst [vmem:[%s1992_s4 + $0x90] sm:$0xff] %v1036_v22  ;;  %v484_v25 = vpop.f32.mrb[17].mxu0  ;;  %v827_v48 = vmul.f32 %v1036_v22, %v1036_v22  ;;  %722 = vst [vmem:[%s1992_s4 + $0x178] sm:$0xff] %v1742_v57  ;;  %v1748_v45 = vpop.f32.mrb[15].mxu1 }
 0x117   :  { %691 = vst [vmem:[%s1992_s4 + $0x80] sm:$0xff] %v484_v25  ;;  %v754_v26 = vadd.f32 %v753_v24, %v484_v25  ;;  %v825_v29 = vmul.f32 %v484_v25, %v484_v25  ;;  %v887_v30 = vadd.f32 %v886_v18, %v824_v41  ;;  %v1037_v31 = vpop.f32.mrb[18].mxu0  ;;  %720 = vst [vmem:[%s1992_s4 + $0x168] sm:$0xff] %v1748_v45 }
 0x118   :  { %694 = vst [vmem:[%s1992_s4 + $0x98] sm:$0xff] %v1037_v31  ;;  %v487_v36 = vpop.f32.mrb[19].mxu0  ;;  %v828_v49 = vmul.f32 %v1037_v31, %v1037_v31 }
 0x119   :  { %v888_v37 = vadd.f32 %v887_v30, %v825_v29  ;;  %692 = vst [vmem:[%s1992_s4 + $0x88] sm:$0xff] %v487_v36  ;;  %v755_v42 = vadd.f32 %v754_v26, %v487_v36  ;;  %v826_v43 = vmul.f32 %v487_v36, %v487_v36 }
 0x11b   :  { %v756_v55 = vadd.f32 %v1036_v22, %v755_v42  ;;  %v889_v56 = vadd.f32 %v888_v37, %v826_v43  ;;  %v1766_v3 = vpop.f32.mrb[16].mxu1 }
 0x11c   :  { %725 = vst [vmem:[%s1992_s4 + $0x190] sm:$0xff] %v1766_v3  ;;  %v1772_v6 = vpop.f32.mrb[17].mxu1 }
 0x11d   :  { %v890_v61 = vadd.f32 %v889_v56, %v827_v48  ;;  %v1040_v50 = vpop.f32.mrb[20].mxu0  ;;  %v757_v32 = vadd.f32 %v1037_v31, %v756_v55  ;;  %723 = vst [vmem:[%s1992_s4 + $0x180] sm:$0xff] %v1772_v6  ;;  %v1778_v12 = vpop.f32.mrb[18].mxu1 }
 0x11e   :  { %697 = vst [vmem:[%s1992_s4 + $0xb0] sm:$0xff] %v1040_v50  ;;  %v500_v62 = vpop.f32.mrb[21].mxu0  ;;  %v831_v27 = vmul.f32 %v1040_v50, %v1040_v50  ;;  %726 = vst [vmem:[%s1992_s4 + $0x198] sm:$0xff] %v1778_v12  ;;  %v1784_v20 = vpop.f32.mrb[19].mxu1 }
 0x11f   :  { %695 = vst [vmem:[%s1992_s4 + $0xa0] sm:$0xff] %v500_v62  ;;  %v758_v33 = vadd.f32 %v757_v32, %v500_v62  ;;  %v829_v0 = vmul.f32 %v500_v62, %v500_v62  ;;  %v891_v16 = vadd.f32 %v890_v61, %v828_v49  ;;  %v1041_v23 = vpop.f32.mrb[22].mxu0  ;;  %724 = vst [vmem:[%s1992_s4 + $0x188] sm:$0xff] %v1784_v20 }
 0x120   :  { %698 = vst [vmem:[%s1992_s4 + $0xb8] sm:$0xff] %v1041_v23  ;;  %v503_v34 = vpop.f32.mrb[23].mxu0  ;;  %v832_v2 = vmul.f32 %v1041_v23, %v1041_v23 }
 0x121   :  { %v892_v35 = vadd.f32 %v891_v16, %v829_v0  ;;  %696 = vst [vmem:[%s1992_s4 + $0xa8] sm:$0xff] %v503_v34  ;;  %v759_v39 = vadd.f32 %v758_v33, %v503_v34  ;;  %v830_v54 = vmul.f32 %v503_v34, %v503_v34 }
 0x123   :  { %v760_v10 = vadd.f32 %v1040_v50, %v759_v39  ;;  %v893_v11 = vadd.f32 %v892_v35, %v830_v54  ;;  %v1802_v18 = vpop.f32.mrb[20].mxu1 }
 0x124   :  { %729 = vst [vmem:[%s1992_s4 + $0x1b0] sm:$0xff] %v1802_v18  ;;  %v1808_v22 = vpop.f32.mrb[21].mxu1 }
 0x125   :  { %v894_v63 = vadd.f32 %v893_v11, %v831_v27  ;;  %v1044_v8 = vpop.f32.mrb[24].mxu0  ;;  %v761_v28 = vadd.f32 %v1041_v23, %v760_v10  ;;  %727 = vst [vmem:[%s1992_s4 + $0x1a0] sm:$0xff] %v1808_v22  ;;  %v1814_v29 = vpop.f32.mrb[22].mxu1  ;;  %v841_v11 = vmul.f32 %v1625_v53, %v1625_v53 }
 0x126   :  { %701 = vst [vmem:[%s1992_s4 + $0xd0] sm:$0xff] %v1044_v8  ;;  %v516_v14 = vpop.f32.mrb[25].mxu0  ;;  %v835_v24 = vmul.f32 %v1044_v8, %v1044_v8  ;;  %730 = vst [vmem:[%s1992_s4 + $0x1b8] sm:$0xff] %v1814_v29  ;;  %v1820_v30 = vpop.f32.mrb[23].mxu1 }
 0x127   :  { %699 = vst [vmem:[%s1992_s4 + $0xc0] sm:$0xff] %v516_v14  ;;  %v762_v15 = vadd.f32 %v761_v28, %v516_v14  ;;  %v833_v40 = vmul.f32 %v516_v14, %v516_v14  ;;  %v895_v44 = vadd.f32 %v894_v63, %v832_v2  ;;  %v1045_v17 = vpop.f32.mrb[26].mxu0  ;;  %728 = vst [vmem:[%s1992_s4 + $0x1a8] sm:$0xff] %v1820_v30 }
 0x128   :  { %702 = vst [vmem:[%s1992_s4 + $0xd8] sm:$0xff] %v1045_v17  ;;  %v519_v13 = vpop.f32.mrb[27].mxu0  ;;  %v836_v31 = vmul.f32 %v1045_v17, %v1045_v17  ;;  %v842_v14 = vmul.f32 %v1637_v60, %v1637_v60 }
 0x129   :  { %v896_v21 = vadd.f32 %v895_v44, %v833_v40  ;;  %700 = vst [vmem:[%s1992_s4 + $0xc8] sm:$0xff] %v519_v13  ;;  %v763_v38 = vadd.f32 %v762_v15, %v519_v13  ;;  %v834_v41 = vmul.f32 %v519_v13, %v519_v13  ;;  %v843_v44 = vmul.f32 %v1619_v51, %v1619_v51 }
 0x12b   :  { %v764_v25 = vadd.f32 %v1044_v8, %v763_v38  ;;  %v897_v26 = vadd.f32 %v896_v21, %v834_v41  ;;  %v1838_v33 = vpop.f32.mrb[24].mxu1  ;;  %v844_v21 = vmul.f32 %v1631_v59, %v1631_v59  ;;  %v845_v41 = vmul.f32 %v1664_v1, %v1664_v1 }
 0x12c   :  { %733 = vst [vmem:[%s1992_s4 + $0x1d0] sm:$0xff] %v1838_v33  ;;  %v1844_v0 = vpop.f32.mrb[25].mxu1 }
 0x12d   :  { %v898_v36 = vadd.f32 %v897_v26, %v835_v24  ;;  %v1048_v37 = vpop.f32.mrb[28].mxu0  ;;  %v765_v42 = vadd.f32 %v1045_v17, %v764_v25  ;;  %731 = vst [vmem:[%s1992_s4 + $0x1c0] sm:$0xff] %v1844_v0  ;;  %v1850_v35 = vpop.f32.mrb[26].mxu1 }
 0x12e   :  { %705 = vst [vmem:[%s1992_s4 + $0xf0] sm:$0xff] %v1048_v37  ;;  %v532_v43 = vpop.f32.mrb[29].mxu0  ;;  %v839_v16 = vmul.f32 %v1048_v37, %v1048_v37  ;;  %734 = vst [vmem:[%s1992_s4 + $0x1d8] sm:$0xff] %v1850_v35  ;;  %v1856_v39 = vpop.f32.mrb[27].mxu1 }
 0x12f   :  { %703 = vst [vmem:[%s1992_s4 + $0xe0] sm:$0xff] %v532_v43  ;;  %v766_v48 = vadd.f32 %v765_v42, %v532_v43  ;;  %v837_v55 = vmul.f32 %v532_v43, %v532_v43  ;;  %v899_v56 = vadd.f32 %v898_v36, %v836_v31  ;;  %v1049_v49 = vpop.f32.mrb[30].mxu0  ;;  %732 = vst [vmem:[%s1992_s4 + $0x1c8] sm:$0xff] %v1856_v39 }
 0x130   :  { %706 = vst [vmem:[%s1992_s4 + $0xf8] sm:$0xff] %v1049_v49  ;;  %v535_v61 = vpop.f32.mrb[31].mxu0  ;;  %v840_v54 = vmul.f32 %v1049_v49, %v1049_v49  ;;  %v846_v36 = vmul.f32 %v1676_v7, %v1676_v7  ;;  %v848_v43 = vmul.f32 %v1670_v4, %v1670_v4 }
 0x131   :  { %v900_v50 = vadd.f32 %v899_v56, %v837_v55  ;;  %704 = vst [vmem:[%s1992_s4 + $0xe8] sm:$0xff] %v535_v61  ;;  %v767_v32 = vadd.f32 %v766_v48, %v535_v61  ;;  %v838_v62 = vmul.f32 %v535_v61, %v535_v61 }
 0x133   :  { %v768_v23 = vadd.f32 %v1048_v37, %v767_v32  ;;  %v901_v34 = vadd.f32 %v900_v50, %v838_v62  ;;  %v1868_v15 = vpop.f32.mrb[28].mxu1  ;;  %v850_v50 = vmul.f32 %v1712_v19, %v1712_v19 }
 0x134   :  { %737 = vst [vmem:[%s1992_s4 + $0x1f0] sm:$0xff] %v1868_v15  ;;  %v1874_v40 = vpop.f32.mrb[29].mxu1 }
 0x135   :  { %v902_v27 = vadd.f32 %v901_v34, %v839_v16  ;;  %v769_v10 = vadd.f32 %v1049_v49, %v768_v23  ;;  %735 = vst [vmem:[%s1992_s4 + $0x1e0] sm:$0xff] %v1874_v40 }
 0x137   :  { %v770_v2 = vadd.f32 %v769_v10, %v1625_v53  ;;  %v903_v63 = vadd.f32 %v902_v27, %v840_v54  ;;  %v854_v10 = vmul.f32 %v1748_v45, %v1748_v45 }
 0x139   :  { %v904_v8 = vadd.f32 %v903_v63, %v841_v11  ;;  %v771_v28 = vadd.f32 %v770_v2, %v1637_v60  ;;  %v1883_v60 = vpop.f32.mrb[30].mxu1 }
 0x13a   :  { %738 = vst [vmem:[%s1992_s4 + $0x1f8] sm:$0xff] %v1883_v60  ;;  %v1889_v13 = vpop.f32.mrb[31].mxu1 }
 0x13b   :  { %v772_v53 = vadd.f32 %v1619_v51, %v771_v28  ;;  %v905_v17 = vadd.f32 %v904_v8, %v842_v14  ;;  %736 = vst [vmem:[%s1992_s4 + $0x1e8] sm:$0xff] %v1889_v13 }
 0x13d   :  { %v906_v38 = vadd.f32 %v905_v17, %v843_v44  ;;  %v773_v51 = vadd.f32 %v1631_v59, %v772_v53  ;;  %v847_v59 = vmul.f32 %v1658_v58, %v1658_v58  ;;  %v858_v53 = vmul.f32 %v1784_v20, %v1784_v20 }
 0x13f   :  { %v774_v24 = vadd.f32 %v773_v51, %v1664_v1  ;;  %v907_v25 = vadd.f32 %v906_v38, %v844_v21  ;;  %v849_v1 = vmul.f32 %v1700_v5, %v1700_v5 }
 0x141   :  { %v908_v26 = vadd.f32 %v907_v25, %v845_v41  ;;  %v775_v31 = vadd.f32 %v774_v24, %v1676_v7 }
 0x143   :  { %v776_v37 = vadd.f32 %v1658_v58, %v775_v31  ;;  %v909_v42 = vadd.f32 %v908_v26, %v846_v36  ;;  %v851_v58 = vmul.f32 %v1694_v9, %v1694_v9  ;;  %v862_v26 = vmul.f32 %v1820_v30, %v1820_v30 }
 0x145   :  { %v910_v48 = vadd.f32 %v909_v42, %v847_v59  ;;  %v777_v55 = vadd.f32 %v1670_v4, %v776_v37  ;;  %v852_v4 = vmul.f32 %v1706_v52, %v1706_v52 }
 0x147   :  { %v778_v56 = vadd.f32 %v777_v55, %v1700_v5  ;;  %v911_v49 = vadd.f32 %v910_v48, %v848_v43  ;;  %v853_v5 = vmul.f32 %v1736_v47, %v1736_v47  ;;  %v866_v55 = vmul.f32 %v1856_v39, %v1856_v39 }
 0x149   :  { %v912_v61 = vadd.f32 %v911_v49, %v849_v1  ;;  %v779_v7 = vadd.f32 %v778_v56, %v1712_v19 }
 0x14b   :  { %v780_v32 = vadd.f32 %v1694_v9, %v779_v7  ;;  %v913_v62 = vadd.f32 %v912_v61, %v850_v50  ;;  %v855_v9 = vmul.f32 %v1730_v46, %v1730_v46 }
 0x14d   :  { %v914_v16 = vadd.f32 %v913_v62, %v851_v58  ;;  %v781_v23 = vadd.f32 %v1706_v52, %v780_v32  ;;  %v856_v52 = vmul.f32 %v1742_v57, %v1742_v57  ;;  %v870_v32 = vmul.f32 %v1889_v13, %v1889_v13 }
 0x14f   :  { %v782_v34 = vadd.f32 %v781_v23, %v1736_v47  ;;  %v915_v54 = vadd.f32 %v914_v16, %v852_v4  ;;  %v857_v47 = vmul.f32 %v1772_v6, %v1772_v6 }
 0x151   :  { %v916_v27 = vadd.f32 %v915_v54, %v853_v5  ;;  %v783_v19 = vadd.f32 %v782_v34, %v1748_v45 }
 0x153   :  { %v784_v11 = vadd.f32 %v1730_v46, %v783_v19  ;;  %v917_v2 = vadd.f32 %v916_v27, %v854_v10  ;;  %v859_v46 = vmul.f32 %v1766_v3, %v1766_v3 }
 0x155   :  { %v918_v63 = vadd.f32 %v917_v2, %v855_v9  ;;  %v785_v8 = vadd.f32 %v1742_v57, %v784_v11  ;;  %v860_v57 = vmul.f32 %v1778_v12, %v1778_v12 }
 0x157   :  { %v786_v28 = vadd.f32 %v785_v8, %v1772_v6  ;;  %v919_v14 = vadd.f32 %v918_v63, %v856_v52  ;;  %v861_v6 = vmul.f32 %v1808_v22, %v1808_v22 }
 0x159   :  { %v920_v44 = vadd.f32 %v919_v14, %v857_v47  ;;  %v787_v45 = vadd.f32 %v786_v28, %v1784_v20 }
 0x15b   :  { %v788_v17 = vadd.f32 %v1766_v3, %v787_v45  ;;  %v921_v21 = vadd.f32 %v920_v44, %v858_v53  ;;  %v863_v3 = vmul.f32 %v1802_v18, %v1802_v18 }
 0x15d   :  { %v922_v38 = vadd.f32 %v921_v21, %v859_v46  ;;  %v789_v51 = vadd.f32 %v1778_v12, %v788_v17  ;;  %v864_v12 = vmul.f32 %v1814_v29, %v1814_v29 }
 0x15f   :  { %v790_v41 = vadd.f32 %v789_v51, %v1808_v22  ;;  %v923_v24 = vadd.f32 %v922_v38, %v860_v57  ;;  %v865_v22 = vmul.f32 %v1844_v0, %v1844_v0 }
 0x161   :  { %v924_v25 = vadd.f32 %v923_v24, %v861_v6  ;;  %v791_v20 = vadd.f32 %v790_v41, %v1820_v30 }
 0x163   :  { %v792_v31 = vadd.f32 %v1802_v18, %v791_v20  ;;  %v925_v36 = vadd.f32 %v924_v25, %v862_v26  ;;  %v867_v18 = vmul.f32 %v1838_v33, %v1838_v33 }
 0x165   :  { %v926_v59 = vadd.f32 %v925_v36, %v863_v3  ;;  %v793_v37 = vadd.f32 %v1814_v29, %v792_v31  ;;  %v868_v29 = vmul.f32 %v1850_v35, %v1850_v35 }
 0x167   :  { %v794_v42 = vadd.f32 %v793_v37, %v1844_v0  ;;  %v927_v43 = vadd.f32 %v926_v59, %v864_v12  ;;  %v869_v0 = vmul.f32 %v1874_v40, %v1874_v40 }
 0x169   :  { %v928_v48 = vadd.f32 %v927_v43, %v865_v22  ;;  %v795_v30 = vadd.f32 %v794_v42, %v1856_v39 }
 0x16b   :  { %v796_v1 = vadd.f32 %v1838_v33, %v795_v30  ;;  %v929_v56 = vadd.f32 %v928_v48, %v866_v55  ;;  %v871_v33 = vmul.f32 %v1868_v15, %v1868_v15 }
 0x16d   :  { %v930_v49 = vadd.f32 %v929_v56, %v867_v18  ;;  %v797_v61 = vadd.f32 %v1850_v35, %v796_v1  ;;  %v872_v35 = vmul.f32 %v1883_v60, %v1883_v60 }
 0x16f   :  { %v798_v7 = vadd.f32 %v797_v61, %v1874_v40  ;;  %v931_v50 = vadd.f32 %v930_v49, %v868_v29 }
 0x171   :  { %v932_v58 = vadd.f32 %v931_v50, %v869_v0  ;;  %v799_v39 = vadd.f32 %v798_v7, %v1889_v13 }
 0x173   :  { %v800_v62 = vadd.f32 %v1868_v15, %v799_v39  ;;  %v933_v4 = vadd.f32 %v932_v58, %v870_v32 }
 0x175   :  { %v801_v16 = vadd.f32 %v1883_v60, %v800_v62  ;;  %v934_v23 = vadd.f32 %v933_v4, %v871_v33 }
 0x177   :  { %v802_v40 = vrot.slane %v801_v16, 4  ;;  %v935_v5 = vadd.f32 %v934_v23, %v872_v35 }
 0x179   :  { %v803_v34 = vadd.f32 %v802_v40, %v801_v16  ;;  %v936_v54 = vrot.slane %v935_v5, 4 }
 0x17b   :  { %v804_v27 = vrot.slane %v803_v34, 2  ;;  %v937_v19 = vadd.f32 %v936_v54, %v935_v5 }
 0x17d   :  { %v805_v10 = vadd.f32 %v804_v27, %v803_v34  ;;  %v938_v13 = vrot.slane %v937_v19, 2 }
 0x17f   :  { %v806_v9 = vrot.slane %v805_v10, 1  ;;  %v939_v11 = vadd.f32 %v938_v13, %v937_v19 }
 0x181   :  { %v807_v2 = vadd.f32 %v806_v9, %v805_v10  ;;  %v940_v52 = vrot.slane %v939_v11, 1 }
 0x183   :  { %808 = vst [vmem:[%s1993_s5] sm:$0x1] %v807_v2  ;;  %v941_v15 = vadd.f32 %v940_v52, %v939_v11 }
 0x185   :  { %942 = vst [vmem:[%s1993_s5 + $0x1] sm:$0x1] %v941_v15 }

// kernel: bottleneck_block.7
= control target key start
LH: loop header
LB: loop body
LE: loop exit
PB: predicated region body
PF: predicated region fallthrough
CT: control target
= control target key end

     0   :  { %s1610_s0 = inlined_call_operand.vmem [shape: f32[512,128], index: 0, kind: input, shape index: {}]   ;;  %s1611_s1 = inlined_call_operand.vmem [shape: f32[1,128], index: 1, kind: input, shape index: {}]   ;;  %s1612_s2 = inlined_call_operand.vmem [shape: f32[1,128], index: 2, kind: input, shape index: {}]   ;;  %s1613_s3 = inlined_call_operand.vmem [shape: f32[512,128], index: 3, kind: input, shape index: {}]   ;;  %s1614_s4 = inlined_call_operand.vmem [shape: f32[1,128], index: 4, kind: input, shape index: {}]   ;;  %s1615_s5 = inlined_call_operand.vmem [shape: f32[1,128], index: 5, kind: input, shape index: {}]   ;;  %s1616_s6 = inlined_call_operand.vmem [shape: f32[512,128], index: 6, kind: output, shape index: {}]  }
   0x1   :  { %v23_v0 = vld [vmem:[%s1610_s0] sm:$0xff]  ;;  %v24_v8 = vld [vmem:[%s1610_s0 + $0x8] sm:$0xff]  ;;  %v25_v10 = vld [vmem:[%s1610_s0 + $0x10] sm:$0xff] }
   0x2   :  { %v744_v1 = vld [vmem:[%s1611_s1] ss:$0 sm:$0xff]  ;;  %v294_v9 = vld [vmem:[%s1613_s3 + $0x8] sm:$0xff]  ;;  %v295_v15 = vld [vmem:[%s1613_s3 + $0x10] sm:$0xff] }
   0x3   :  { %v749_v2 = vld [vmem:[%s1612_s2] ss:$0 sm:$0xff]  ;;  %v94_v3 = vmul.f32 %v744_v1, %v23_v0  ;;  %v95_v12 = vmul.f32 %v744_v1, %v24_v8  ;;  %v96_v14 = vmul.f32 %v744_v1, %v25_v10  ;;  %v26_v16 = vld [vmem:[%s1610_s0 + $0x18] sm:$0xff]  ;;  %v28_v28 = vld [vmem:[%s1610_s0 + $0x28] sm:$0xff] }
   0x4   :  { %v293_v4 = vld [vmem:[%s1613_s3] sm:$0xff]  ;;  %v296_v17 = vld [vmem:[%s1613_s3 + $0x18] sm:$0xff]  ;;  %v97_v20 = vmul.f32 %v744_v1, %v26_v16  ;;  %v298_v29 = vld [vmem:[%s1613_s3 + $0x28] sm:$0xff]  ;;  %v99_v40 = vmul.f32 %v744_v1, %v28_v28 }
   0x5   :  { %v758_v5 = vld [vmem:[%s1614_s4] ss:$0 sm:$0xff]  ;;  %v165_v11 = vadd.f32 %v749_v2, %v94_v3  ;;  %v166_v25 = vadd.f32 %v749_v2, %v95_v12  ;;  %v167_v27 = vadd.f32 %v749_v2, %v96_v14  ;;  %v29_v42 = vld [vmem:[%s1610_s0 + $0x30] sm:$0xff]  ;;  %v30_v48 = vld [vmem:[%s1610_s0 + $0x38] sm:$0xff] }
   0x6   :  { %v763_v6 = vld [vmem:[%s1615_s5] ss:$0 sm:$0xff]  ;;  %v364_v7 = vmul.f32 %v758_v5, %v293_v4  ;;  %v365_v13 = vmul.f32 %v758_v5, %v294_v9  ;;  %v366_v19 = vmul.f32 %v758_v5, %v295_v15  ;;  %v367_v21 = vmul.f32 %v758_v5, %v296_v17  ;;  %v299_v43 = vld [vmem:[%s1613_s3 + $0x30] sm:$0xff]  ;;  %v300_v53 = vld [vmem:[%s1613_s3 + $0x38] sm:$0xff] }
   0x7   :  { %v27_v22 = vld [vmem:[%s1610_s0 + $0x20] sm:$0xff]  ;;  %v229_v24 = vmax.f32 %v165_v11, 0.0  ;;  %v168_v31 = vadd.f32 %v749_v2, %v97_v20  ;;  %v230_v35 = vmax.f32 %v166_v25, 0.0  ;;  %v231_v36 = vmax.f32 %v167_v27, 0.0  ;;  %v32_v0 = vld [vmem:[%s1610_s0 + $0x48] sm:$0xff]  ;;  %v33_v14 = vld [vmem:[%s1610_s0 + $0x50] sm:$0xff] }
   0x8   :  { %v435_v18 = vadd.f32 %v763_v6, %v364_v7  ;;  %v297_v23 = vld [vmem:[%s1613_s3 + $0x20] sm:$0xff]  ;;  %v436_v26 = vadd.f32 %v763_v6, %v365_v13  ;;  %v437_v30 = vadd.f32 %v763_v6, %v366_v19  ;;  %v438_v32 = vadd.f32 %v763_v6, %v367_v21  ;;  %v302_v9 = vld [vmem:[%s1613_s3 + $0x48] sm:$0xff]  ;;  %v303_v19 = vld [vmem:[%s1613_s3 + $0x50] sm:$0xff] }
   0x9   :  { %v98_v33 = vmul.f32 %v744_v1, %v27_v22  ;;  %v368_v37 = vmul.f32 %v758_v5, %v297_v23  ;;  %v232_v38 = vmax.f32 %v168_v31, 0.0  ;;  %v369_v41 = vmul.f32 %v758_v5, %v298_v29  ;;  %v31_v54 = vld [vmem:[%s1610_s0 + $0x40] sm:$0xff]  ;;  %v34_v20 = vld [vmem:[%s1610_s0 + $0x58] sm:$0xff] }
   0xa   :  { %v499_v34 = vadd.f32 %v435_v18, %v229_v24  ;;  %v500_v45 = vadd.f32 %v436_v26, %v230_v35  ;;  %v501_v46 = vadd.f32 %v437_v30, %v231_v36  ;;  %v170_v51 = vadd.f32 %v749_v2, %v99_v40  ;;  %v301_v59 = vld [vmem:[%s1613_s3 + $0x40] sm:$0xff]  ;;  %v304_v29 = vld [vmem:[%s1613_s3 + $0x58] sm:$0xff]  ;;  %v36_v40 = vld [vmem:[%s1610_s0 + $0x68] sm:$0xff] }
   0xb   :  { %v169_v39 = vadd.f32 %v749_v2, %v98_v33  ;;  %v439_v47 = vadd.f32 %v763_v6, %v368_v37  ;;  %v502_v49 = vadd.f32 %v438_v32, %v232_v38  ;;  %v440_v52 = vadd.f32 %v763_v6, %v369_v41 }
   0xc   :  { %v563_v44 = vmax.f32 %v499_v34, 0.0  ;;  %v564_v55 = vmax.f32 %v500_v45, 0.0  ;;  %v565_v56 = vmax.f32 %v501_v46, 0.0  ;;  %v100_v57 = vmul.f32 %v744_v1, %v29_v42  ;;  %v35_v34 = vld [vmem:[%s1610_s0 + $0x60] sm:$0xff]  ;;  %v306_v45 = vld [vmem:[%s1613_s3 + $0x68] sm:$0xff] }
   0xd   :  { %v233_v50 = vmax.f32 %v169_v39, 0.0  ;;  %v370_v58 = vmul.f32 %v758_v5, %v299_v43  ;;  %v566_v60 = vmax.f32 %v502_v49, 0.0  ;;  %v234_v62 = vmax.f32 %v170_v51, 0.0  ;;  %v305_v39 = vld [vmem:[%s1613_s3 + $0x60] sm:$0xff] }
   0xe   :  { %627 = vst [vmem:[%s1616_s6] sm:$0xff] %v563_v44  ;;  %v101_v63 = vmul.f32 %v744_v1, %v30_v48  ;;  %628 = vst [vmem:[%s1616_s6 + $0x8] sm:$0xff] %v564_v55  ;;  %v171_v3 = vadd.f32 %v749_v2, %v100_v57  ;;  %v371_v7 = vmul.f32 %v758_v5, %v300_v53  ;;  %v307_v55 = vld [vmem:[%s1613_s3 + $0x70] sm:$0xff] }
   0xf   :  { %v503_v61 = vadd.f32 %v439_v47, %v233_v50  ;;  %629 = vst [vmem:[%s1616_s6 + $0x10] sm:$0xff] %v565_v56  ;;  %v441_v4 = vadd.f32 %v763_v6, %v370_v58  ;;  %v102_v8 = vmul.f32 %v744_v1, %v31_v54  ;;  %630 = vst [vmem:[%s1616_s6 + $0x18] sm:$0xff] %v566_v60  ;;  %v37_v50 = vld [vmem:[%s1610_s0 + $0x70] sm:$0xff]  ;;  %v38_v60 = vld [vmem:[%s1610_s0 + $0x78] sm:$0xff] }
  0x10   :  { %v504_v11 = vadd.f32 %v440_v52, %v234_v62  ;;  %v172_v12 = vadd.f32 %v749_v2, %v101_v63  ;;  %v372_v13 = vmul.f32 %v758_v5, %v301_v59  ;;  %v235_v15 = vmax.f32 %v171_v3, 0.0  ;;  %v308_v3 = vld [vmem:[%s1613_s3 + $0x78] sm:$0xff] }
  0x11   :  { %v567_v10 = vmax.f32 %v503_v61, 0.0  ;;  %v442_v16 = vadd.f32 %v763_v6, %v371_v7  ;;  %v173_v17 = vadd.f32 %v749_v2, %v102_v8  ;;  %v103_v18 = vmul.f32 %v744_v1, %v32_v0 }
  0x12   :  { %v568_v21 = vmax.f32 %v504_v11, 0.0  ;;  %v236_v22 = vmax.f32 %v172_v12, 0.0  ;;  %v443_v23 = vadd.f32 %v763_v6, %v372_v13  ;;  %v373_v24 = vmul.f32 %v758_v5, %v302_v9  ;;  %v309_v11 = vld [vmem:[%s1613_s3 + $0x80] sm:$0xff] }
  0x13   :  { %631 = vst [vmem:[%s1616_s6 + $0x20] sm:$0xff] %v567_v10  ;;  %v505_v25 = vadd.f32 %v441_v4, %v235_v15  ;;  %v237_v26 = vmax.f32 %v173_v17, 0.0  ;;  %v174_v27 = vadd.f32 %v749_v2, %v103_v18  ;;  %v104_v28 = vmul.f32 %v744_v1, %v33_v14  ;;  %v39_v4 = vld [vmem:[%s1610_s0 + $0x80] sm:$0xff] }
  0x14   :  { %632 = vst [vmem:[%s1616_s6 + $0x28] sm:$0xff] %v568_v21  ;;  %v506_v30 = vadd.f32 %v442_v16, %v236_v22  ;;  %v444_v31 = vadd.f32 %v763_v6, %v373_v24  ;;  %v374_v32 = vmul.f32 %v758_v5, %v303_v19  ;;  %v105_v33 = vmul.f32 %v744_v1, %v34_v20  ;;  %v40_v16 = vld [vmem:[%s1610_s0 + $0x88] sm:$0xff] }
  0x15   :  { %v569_v35 = vmax.f32 %v505_v25, 0.0  ;;  %v507_v36 = vadd.f32 %v443_v23, %v237_v26  ;;  %v238_v37 = vmax.f32 %v174_v27, 0.0  ;;  %v175_v38 = vadd.f32 %v749_v2, %v104_v28  ;;  %v310_v25 = vld [vmem:[%s1613_s3 + $0x88] sm:$0xff]  ;;  %v41_v26 = vld [vmem:[%s1610_s0 + $0x90] sm:$0xff] }
  0x16   :  { %v570_v41 = vmax.f32 %v506_v30, 0.0  ;;  %v445_v42 = vadd.f32 %v763_v6, %v374_v32  ;;  %v176_v43 = vadd.f32 %v749_v2, %v105_v33  ;;  %v375_v44 = vmul.f32 %v758_v5, %v304_v29  ;;  %v42_v32 = vld [vmem:[%s1610_s0 + $0x98] sm:$0xff] }
  0x17   :  { %633 = vst [vmem:[%s1616_s6 + $0x30] sm:$0xff] %v569_v35  ;;  %v571_v46 = vmax.f32 %v507_v36, 0.0  ;;  %v508_v47 = vadd.f32 %v444_v31, %v238_v37  ;;  %v239_v48 = vmax.f32 %v175_v38, 0.0  ;;  %v106_v49 = vmul.f32 %v744_v1, %v35_v34  ;;  %v311_v31 = vld [vmem:[%s1613_s3 + $0x90] sm:$0xff] }
  0x18   :  { %634 = vst [vmem:[%s1616_s6 + $0x38] sm:$0xff] %v570_v41  ;;  %v240_v51 = vmax.f32 %v176_v43, 0.0  ;;  %v446_v52 = vadd.f32 %v763_v6, %v375_v44  ;;  %v376_v53 = vmul.f32 %v758_v5, %v305_v39  ;;  %v107_v54 = vmul.f32 %v744_v1, %v36_v40  ;;  %v312_v41 = vld [vmem:[%s1613_s3 + $0x98] sm:$0xff] }
  0x19   :  { %635 = vst [vmem:[%s1616_s6 + $0x40] sm:$0xff] %v571_v46  ;;  %v572_v56 = vmax.f32 %v508_v47, 0.0  ;;  %v509_v57 = vadd.f32 %v445_v42, %v239_v48  ;;  %v177_v58 = vadd.f32 %v749_v2, %v106_v49  ;;  %v377_v59 = vmul.f32 %v758_v5, %v306_v45  ;;  %v43_v46 = vld [vmem:[%s1610_s0 + $0xa0] sm:$0xff] }
  0x1a   :  { %v510_v61 = vadd.f32 %v446_v52, %v240_v51  ;;  %v447_v62 = vadd.f32 %v763_v6, %v376_v53  ;;  %v178_v63 = vadd.f32 %v749_v2, %v107_v54  ;;  %v108_v0 = vmul.f32 %v744_v1, %v37_v50  ;;  %v313_v51 = vld [vmem:[%s1613_s3 + $0xa0] sm:$0xff]  ;;  %v44_v52 = vld [vmem:[%s1610_s0 + $0xa8] sm:$0xff] }
  0x1b   :  { %636 = vst [vmem:[%s1616_s6 + $0x48] sm:$0xff] %v572_v56  ;;  %v573_v7 = vmax.f32 %v509_v57, 0.0  ;;  %v241_v8 = vmax.f32 %v177_v58, 0.0  ;;  %v448_v9 = vadd.f32 %v763_v6, %v377_v59  ;;  %v378_v10 = vmul.f32 %v758_v5, %v307_v55  ;;  %v314_v57 = vld [vmem:[%s1613_s3 + $0xa8] sm:$0xff] }
  0x1c   :  { %v574_v12 = vmax.f32 %v510_v61, 0.0  ;;  %v242_v13 = vmax.f32 %v178_v63, 0.0  ;;  %v179_v14 = vadd.f32 %v749_v2, %v108_v0  ;;  %v109_v15 = vmul.f32 %v744_v1, %v38_v60 }
  0x1d   :  { %637 = vst [vmem:[%s1616_s6 + $0x50] sm:$0xff] %v573_v7  ;;  %v511_v17 = vadd.f32 %v447_v62, %v241_v8  ;;  %v449_v18 = vadd.f32 %v763_v6, %v378_v10  ;;  %v379_v19 = vmul.f32 %v758_v5, %v308_v3  ;;  %v110_v20 = vmul.f32 %v744_v1, %v39_v4  ;;  %v45_v62 = vld [vmem:[%s1610_s0 + $0xb0] sm:$0xff] }
  0x1e   :  { %638 = vst [vmem:[%s1616_s6 + $0x58] sm:$0xff] %v574_v12  ;;  %v512_v21 = vadd.f32 %v448_v9, %v242_v13  ;;  %v243_v22 = vmax.f32 %v179_v14, 0.0  ;;  %v180_v23 = vadd.f32 %v749_v2, %v109_v15  ;;  %v380_v24 = vmul.f32 %v758_v5, %v309_v11  ;;  %v315_v7 = vld [vmem:[%s1613_s3 + $0xb0] sm:$0xff]  ;;  %v46_v12 = vld [vmem:[%s1610_s0 + $0xb8] sm:$0xff] }
  0x1f   :  { %v575_v27 = vmax.f32 %v511_v17, 0.0  ;;  %v450_v28 = vadd.f32 %v763_v6, %v379_v19  ;;  %v181_v29 = vadd.f32 %v749_v2, %v110_v20  ;;  %v111_v30 = vmul.f32 %v744_v1, %v40_v16  ;;  %v316_v17 = vld [vmem:[%s1613_s3 + $0xb8] sm:$0xff] }
  0x20   :  { %v576_v33 = vmax.f32 %v512_v21, 0.0  ;;  %v513_v34 = vadd.f32 %v449_v18, %v243_v22  ;;  %v244_v35 = vmax.f32 %v180_v23, 0.0  ;;  %v451_v36 = vadd.f32 %v763_v6, %v380_v24  ;;  %v47_v18 = vld [vmem:[%s1610_s0 + $0xc0] sm:$0xff] }
  0x21   :  { %639 = vst [vmem:[%s1616_s6 + $0x60] sm:$0xff] %v575_v27  ;;  %v245_v37 = vmax.f32 %v181_v29, 0.0  ;;  %v182_v38 = vadd.f32 %v749_v2, %v111_v30  ;;  %v381_v39 = vmul.f32 %v758_v5, %v310_v25  ;;  %v112_v40 = vmul.f32 %v744_v1, %v41_v26  ;;  %v317_v23 = vld [vmem:[%s1613_s3 + $0xc0] sm:$0xff] }
  0x22   :  { %640 = vst [vmem:[%s1616_s6 + $0x68] sm:$0xff] %v576_v33  ;;  %v577_v42 = vmax.f32 %v513_v34, 0.0  ;;  %v514_v43 = vadd.f32 %v450_v28, %v244_v35  ;;  %v382_v44 = vmul.f32 %v758_v5, %v311_v31  ;;  %v113_v45 = vmul.f32 %v744_v1, %v42_v32  ;;  %v48_v28 = vld [vmem:[%s1610_s0 + $0xc8] sm:$0xff] }
  0x23   :  { %v515_v47 = vadd.f32 %v451_v36, %v245_v37  ;;  %v246_v48 = vmax.f32 %v182_v38, 0.0  ;;  %v452_v49 = vadd.f32 %v763_v6, %v381_v39  ;;  %v183_v50 = vadd.f32 %v749_v2, %v112_v40  ;;  %v318_v37 = vld [vmem:[%s1613_s3 + $0xc8] sm:$0xff]  ;;  %v49_v38 = vld [vmem:[%s1610_s0 + $0xd0] sm:$0xff] }
  0x24   :  { %641 = vst [vmem:[%s1616_s6 + $0x70] sm:$0xff] %v577_v42  ;;  %v578_v53 = vmax.f32 %v514_v43, 0.0  ;;  %v453_v54 = vadd.f32 %v763_v6, %v382_v44  ;;  %v184_v55 = vadd.f32 %v749_v2, %v113_v45  ;;  %v383_v56 = vmul.f32 %v758_v5, %v312_v41  ;;  %v319_v43 = vld [vmem:[%s1613_s3 + $0xd0] sm:$0xff]  ;;  %v50_v44 = vld [vmem:[%s1610_s0 + $0xd8] sm:$0xff] }
  0x25   :  { %v579_v58 = vmax.f32 %v515_v47, 0.0  ;;  %v516_v59 = vadd.f32 %v452_v49, %v246_v48  ;;  %v247_v60 = vmax.f32 %v183_v50, 0.0  ;;  %v114_v61 = vmul.f32 %v744_v1, %v43_v46 }
  0x26   :  { %642 = vst [vmem:[%s1616_s6 + $0x78] sm:$0xff] %v578_v53  ;;  %v248_v63 = vmax.f32 %v184_v55, 0.0  ;;  %v454_v0 = vadd.f32 %v763_v6, %v383_v56  ;;  %v384_v3 = vmul.f32 %v758_v5, %v313_v51  ;;  %v115_v4 = vmul.f32 %v744_v1, %v44_v52  ;;  %v320_v53 = vld [vmem:[%s1613_s3 + $0xd8] sm:$0xff] }
  0x27   :  { %643 = vst [vmem:[%s1616_s6 + $0x80] sm:$0xff] %v579_v58  ;;  %v580_v8 = vmax.f32 %v516_v59, 0.0  ;;  %v517_v9 = vadd.f32 %v453_v54, %v247_v60  ;;  %v185_v10 = vadd.f32 %v749_v2, %v114_v61  ;;  %v385_v11 = vmul.f32 %v758_v5, %v314_v57  ;;  %v51_v58 = vld [vmem:[%s1610_s0 + $0xe0] sm:$0xff] }
  0x28   :  { %v518_v13 = vadd.f32 %v454_v0, %v248_v63  ;;  %v455_v14 = vadd.f32 %v763_v6, %v384_v3  ;;  %v186_v15 = vadd.f32 %v749_v2, %v115_v4  ;;  %v116_v16 = vmul.f32 %v744_v1, %v45_v62  ;;  %v321_v63 = vld [vmem:[%s1613_s3 + $0xe0] sm:$0xff]  ;;  %v52_v0 = vld [vmem:[%s1610_s0 + $0xe8] sm:$0xff] }
  0x29   :  { %644 = vst [vmem:[%s1616_s6 + $0x88] sm:$0xff] %v580_v8  ;;  %v581_v19 = vmax.f32 %v517_v9, 0.0  ;;  %v249_v20 = vmax.f32 %v185_v10, 0.0  ;;  %v456_v21 = vadd.f32 %v763_v6, %v385_v11  ;;  %v386_v22 = vmul.f32 %v758_v5, %v315_v7  ;;  %v322_v9 = vld [vmem:[%s1613_s3 + $0xe8] sm:$0xff] }
  0x2a   :  { %v582_v24 = vmax.f32 %v518_v13, 0.0  ;;  %v250_v25 = vmax.f32 %v186_v15, 0.0  ;;  %v187_v26 = vadd.f32 %v749_v2, %v116_v16  ;;  %v117_v27 = vmul.f32 %v744_v1, %v46_v12 }
  0x2b   :  { %645 = vst [vmem:[%s1616_s6 + $0x90] sm:$0xff] %v581_v19  ;;  %v519_v29 = vadd.f32 %v455_v14, %v249_v20  ;;  %v457_v30 = vadd.f32 %v763_v6, %v386_v22  ;;  %v387_v31 = vmul.f32 %v758_v5, %v316_v17  ;;  %v118_v32 = vmul.f32 %v744_v1, %v47_v18  ;;  %v53_v14 = vld [vmem:[%s1610_s0 + $0xf0] sm:$0xff] }
  0x2c   :  { %646 = vst [vmem:[%s1616_s6 + $0x98] sm:$0xff] %v582_v24  ;;  %v520_v33 = vadd.f32 %v456_v21, %v250_v25  ;;  %v251_v34 = vmax.f32 %v187_v26, 0.0  ;;  %v188_v35 = vadd.f32 %v749_v2, %v117_v27  ;;  %v388_v36 = vmul.f32 %v758_v5, %v317_v23  ;;  %v323_v19 = vld [vmem:[%s1613_s3 + $0xf0] sm:$0xff]  ;;  %v54_v24 = vld [vmem:[%s1610_s0 + $0xf8] sm:$0xff] }
  0x2d   :  { %v583_v39 = vmax.f32 %v519_v29, 0.0  ;;  %v458_v40 = vadd.f32 %v763_v6, %v387_v31  ;;  %v189_v41 = vadd.f32 %v749_v2, %v118_v32  ;;  %v119_v42 = vmul.f32 %v744_v1, %v48_v28  ;;  %v324_v29 = vld [vmem:[%s1613_s3 + $0xf8] sm:$0xff] }
  0x2e   :  { %v584_v45 = vmax.f32 %v520_v33, 0.0  ;;  %v521_v46 = vadd.f32 %v457_v30, %v251_v34  ;;  %v252_v47 = vmax.f32 %v188_v35, 0.0  ;;  %v459_v48 = vadd.f32 %v763_v6, %v388_v36  ;;  %v55_v30 = vld [vmem:[%s1610_s0 + $0x100] sm:$0xff] }
  0x2f   :  { %647 = vst [vmem:[%s1616_s6 + $0xa0] sm:$0xff] %v583_v39  ;;  %v253_v49 = vmax.f32 %v189_v41, 0.0  ;;  %v190_v50 = vadd.f32 %v749_v2, %v119_v42  ;;  %v389_v51 = vmul.f32 %v758_v5, %v318_v37  ;;  %v120_v52 = vmul.f32 %v744_v1, %v49_v38  ;;  %v325_v35 = vld [vmem:[%s1613_s3 + $0x100] sm:$0xff] }
  0x30   :  { %648 = vst [vmem:[%s1616_s6 + $0xa8] sm:$0xff] %v584_v45  ;;  %v585_v54 = vmax.f32 %v521_v46, 0.0  ;;  %v522_v55 = vadd.f32 %v458_v40, %v252_v47  ;;  %v390_v56 = vmul.f32 %v758_v5, %v319_v43  ;;  %v121_v57 = vmul.f32 %v744_v1, %v50_v44  ;;  %v56_v40 = vld [vmem:[%s1610_s0 + $0x108] sm:$0xff] }
  0x31   :  { %v523_v59 = vadd.f32 %v459_v48, %v253_v49  ;;  %v254_v60 = vmax.f32 %v190_v50, 0.0  ;;  %v460_v61 = vadd.f32 %v763_v6, %v389_v51  ;;  %v191_v62 = vadd.f32 %v749_v2, %v120_v52  ;;  %v326_v49 = vld [vmem:[%s1613_s3 + $0x108] sm:$0xff]  ;;  %v57_v50 = vld [vmem:[%s1610_s0 + $0x110] sm:$0xff] }
  0x32   :  { %649 = vst [vmem:[%s1616_s6 + $0xb0] sm:$0xff] %v585_v54  ;;  %v586_v3 = vmax.f32 %v522_v55, 0.0  ;;  %v461_v4 = vadd.f32 %v763_v6, %v390_v56  ;;  %v192_v7 = vadd.f32 %v749_v2, %v121_v57  ;;  %v391_v8 = vmul.f32 %v758_v5, %v320_v53  ;;  %v327_v55 = vld [vmem:[%s1613_s3 + $0x110] sm:$0xff]  ;;  %v58_v56 = vld [vmem:[%s1610_s0 + $0x118] sm:$0xff] }
  0x33   :  { %v587_v10 = vmax.f32 %v523_v59, 0.0  ;;  %v524_v11 = vadd.f32 %v460_v61, %v254_v60  ;;  %v255_v12 = vmax.f32 %v191_v62, 0.0  ;;  %v122_v13 = vmul.f32 %v744_v1, %v51_v58 }
  0x34   :  { %650 = vst [vmem:[%s1616_s6 + $0xb8] sm:$0xff] %v586_v3  ;;  %v256_v15 = vmax.f32 %v192_v7, 0.0  ;;  %v462_v16 = vadd.f32 %v763_v6, %v391_v8  ;;  %v392_v17 = vmul.f32 %v758_v5, %v321_v63  ;;  %v123_v18 = vmul.f32 %v744_v1, %v52_v0  ;;  %v328_v3 = vld [vmem:[%s1613_s3 + $0x118] sm:$0xff] }
  0x35   :  { %651 = vst [vmem:[%s1616_s6 + $0xc0] sm:$0xff] %v587_v10  ;;  %v588_v20 = vmax.f32 %v524_v11, 0.0  ;;  %v525_v21 = vadd.f32 %v461_v4, %v255_v12  ;;  %v193_v22 = vadd.f32 %v749_v2, %v122_v13  ;;  %v393_v23 = vmul.f32 %v758_v5, %v322_v9  ;;  %v59_v10 = vld [vmem:[%s1610_s0 + $0x120] sm:$0xff] }
  0x36   :  { %v526_v25 = vadd.f32 %v462_v16, %v256_v15  ;;  %v463_v26 = vadd.f32 %v763_v6, %v392_v17  ;;  %v194_v27 = vadd.f32 %v749_v2, %v123_v18  ;;  %v124_v28 = vmul.f32 %v744_v1, %v53_v14  ;;  %v329_v15 = vld [vmem:[%s1613_s3 + $0x120] sm:$0xff]  ;;  %v60_v16 = vld [vmem:[%s1610_s0 + $0x128] sm:$0xff] }
  0x37   :  { %652 = vst [vmem:[%s1616_s6 + $0xc8] sm:$0xff] %v588_v20  ;;  %v589_v31 = vmax.f32 %v525_v21, 0.0  ;;  %v257_v32 = vmax.f32 %v193_v22, 0.0  ;;  %v464_v33 = vadd.f32 %v763_v6, %v393_v23  ;;  %v394_v34 = vmul.f32 %v758_v5, %v323_v19  ;;  %v330_v21 = vld [vmem:[%s1613_s3 + $0x128] sm:$0xff] }
  0x38   :  { %v590_v36 = vmax.f32 %v526_v25, 0.0  ;;  %v258_v37 = vmax.f32 %v194_v27, 0.0  ;;  %v195_v38 = vadd.f32 %v749_v2, %v124_v28  ;;  %v125_v39 = vmul.f32 %v744_v1, %v54_v24 }
  0x39   :  { %653 = vst [vmem:[%s1616_s6 + $0xd0] sm:$0xff] %v589_v31  ;;  %v527_v41 = vadd.f32 %v463_v26, %v257_v32  ;;  %v465_v42 = vadd.f32 %v763_v6, %v394_v34  ;;  %v395_v43 = vmul.f32 %v758_v5, %v324_v29  ;;  %v126_v44 = vmul.f32 %v744_v1, %v55_v30  ;;  %v61_v26 = vld [vmem:[%s1610_s0 + $0x130] sm:$0xff] }
  0x3a   :  { %654 = vst [vmem:[%s1616_s6 + $0xd8] sm:$0xff] %v590_v36  ;;  %v528_v45 = vadd.f32 %v464_v33, %v258_v37  ;;  %v259_v46 = vmax.f32 %v195_v38, 0.0  ;;  %v196_v47 = vadd.f32 %v749_v2, %v125_v39  ;;  %v396_v48 = vmul.f32 %v758_v5, %v325_v35  ;;  %v331_v31 = vld [vmem:[%s1613_s3 + $0x130] sm:$0xff]  ;;  %v62_v36 = vld [vmem:[%s1610_s0 + $0x138] sm:$0xff] }
  0x3b   :  { %v591_v51 = vmax.f32 %v527_v41, 0.0  ;;  %v466_v52 = vadd.f32 %v763_v6, %v395_v43  ;;  %v197_v53 = vadd.f32 %v749_v2, %v126_v44  ;;  %v127_v54 = vmul.f32 %v744_v1, %v56_v40  ;;  %v332_v41 = vld [vmem:[%s1613_s3 + $0x138] sm:$0xff] }
  0x3c   :  { %v592_v57 = vmax.f32 %v528_v45, 0.0  ;;  %v529_v58 = vadd.f32 %v465_v42, %v259_v46  ;;  %v260_v59 = vmax.f32 %v196_v47, 0.0  ;;  %v467_v60 = vadd.f32 %v763_v6, %v396_v48  ;;  %v63_v42 = vld [vmem:[%s1610_s0 + $0x140] sm:$0xff] }
  0x3d   :  { %655 = vst [vmem:[%s1616_s6 + $0xe0] sm:$0xff] %v591_v51  ;;  %v261_v61 = vmax.f32 %v197_v53, 0.0  ;;  %v198_v62 = vadd.f32 %v749_v2, %v127_v54  ;;  %v397_v63 = vmul.f32 %v758_v5, %v326_v49  ;;  %v128_v0 = vmul.f32 %v744_v1, %v57_v50  ;;  %v333_v47 = vld [vmem:[%s1613_s3 + $0x140] sm:$0xff] }
  0x3e   :  { %656 = vst [vmem:[%s1616_s6 + $0xe8] sm:$0xff] %v592_v57  ;;  %v593_v4 = vmax.f32 %v529_v58, 0.0  ;;  %v530_v7 = vadd.f32 %v466_v52, %v260_v59  ;;  %v398_v8 = vmul.f32 %v758_v5, %v327_v55  ;;  %v129_v9 = vmul.f32 %v744_v1, %v58_v56  ;;  %v64_v52 = vld [vmem:[%s1610_s0 + $0x148] sm:$0xff] }
  0x3f   :  { %v531_v11 = vadd.f32 %v467_v60, %v261_v61  ;;  %v262_v12 = vmax.f32 %v198_v62, 0.0  ;;  %v468_v13 = vadd.f32 %v763_v6, %v397_v63  ;;  %v199_v14 = vadd.f32 %v749_v2, %v128_v0  ;;  %v334_v61 = vld [vmem:[%s1613_s3 + $0x148] sm:$0xff]  ;;  %v65_v62 = vld [vmem:[%s1610_s0 + $0x150] sm:$0xff] }
  0x40   :  { %657 = vst [vmem:[%s1616_s6 + $0xf0] sm:$0xff] %v593_v4  ;;  %v594_v17 = vmax.f32 %v530_v7, 0.0  ;;  %v469_v18 = vadd.f32 %v763_v6, %v398_v8  ;;  %v200_v19 = vadd.f32 %v749_v2, %v129_v9  ;;  %v399_v20 = vmul.f32 %v758_v5, %v328_v3  ;;  %v335_v7 = vld [vmem:[%s1613_s3 + $0x150] sm:$0xff]  ;;  %v66_v8 = vld [vmem:[%s1610_s0 + $0x158] sm:$0xff] }
  0x41   :  { %v595_v22 = vmax.f32 %v531_v11, 0.0  ;;  %v532_v23 = vadd.f32 %v468_v13, %v262_v12  ;;  %v263_v24 = vmax.f32 %v199_v14, 0.0  ;;  %v130_v25 = vmul.f32 %v744_v1, %v59_v10 }
  0x42   :  { %658 = vst [vmem:[%s1616_s6 + $0xf8] sm:$0xff] %v594_v17  ;;  %v264_v27 = vmax.f32 %v200_v19, 0.0  ;;  %v470_v28 = vadd.f32 %v763_v6, %v399_v20  ;;  %v400_v29 = vmul.f32 %v758_v5, %v329_v15  ;;  %v131_v30 = vmul.f32 %v744_v1, %v60_v16  ;;  %v336_v17 = vld [vmem:[%s1613_s3 + $0x158] sm:$0xff] }
  0x43   :  { %659 = vst [vmem:[%s1616_s6 + $0x100] sm:$0xff] %v595_v22  ;;  %v596_v32 = vmax.f32 %v532_v23, 0.0  ;;  %v533_v33 = vadd.f32 %v469_v18, %v263_v24  ;;  %v201_v34 = vadd.f32 %v749_v2, %v130_v25  ;;  %v401_v35 = vmul.f32 %v758_v5, %v330_v21  ;;  %v67_v22 = vld [vmem:[%s1610_s0 + $0x160] sm:$0xff] }
  0x44   :  { %v534_v37 = vadd.f32 %v470_v28, %v264_v27  ;;  %v471_v38 = vadd.f32 %v763_v6, %v400_v29  ;;  %v202_v39 = vadd.f32 %v749_v2, %v131_v30  ;;  %v132_v40 = vmul.f32 %v744_v1, %v61_v26  ;;  %v337_v27 = vld [vmem:[%s1613_s3 + $0x160] sm:$0xff]  ;;  %v68_v28 = vld [vmem:[%s1610_s0 + $0x168] sm:$0xff] }
  0x45   :  { %660 = vst [vmem:[%s1616_s6 + $0x108] sm:$0xff] %v596_v32  ;;  %v597_v43 = vmax.f32 %v533_v33, 0.0  ;;  %v265_v44 = vmax.f32 %v201_v34, 0.0  ;;  %v472_v45 = vadd.f32 %v763_v6, %v401_v35  ;;  %v402_v46 = vmul.f32 %v758_v5, %v331_v31  ;;  %v338_v33 = vld [vmem:[%s1613_s3 + $0x168] sm:$0xff] }
  0x46   :  { %v598_v48 = vmax.f32 %v534_v37, 0.0  ;;  %v266_v49 = vmax.f32 %v202_v39, 0.0  ;;  %v203_v50 = vadd.f32 %v749_v2, %v132_v40  ;;  %v133_v51 = vmul.f32 %v744_v1, %v62_v36 }
  0x47   :  { %661 = vst [vmem:[%s1616_s6 + $0x110] sm:$0xff] %v597_v43  ;;  %v535_v53 = vadd.f32 %v471_v38, %v265_v44  ;;  %v473_v54 = vadd.f32 %v763_v6, %v402_v46  ;;  %v403_v55 = vmul.f32 %v758_v5, %v332_v41  ;;  %v134_v56 = vmul.f32 %v744_v1, %v63_v42  ;;  %v69_v38 = vld [vmem:[%s1610_s0 + $0x170] sm:$0xff] }
  0x48   :  { %662 = vst [vmem:[%s1616_s6 + $0x118] sm:$0xff] %v598_v48  ;;  %v536_v57 = vadd.f32 %v472_v45, %v266_v49  ;;  %v267_v58 = vmax.f32 %v203_v50, 0.0  ;;  %v204_v59 = vadd.f32 %v749_v2, %v133_v51  ;;  %v404_v60 = vmul.f32 %v758_v5, %v333_v47  ;;  %v339_v43 = vld [vmem:[%s1613_s3 + $0x170] sm:$0xff]  ;;  %v70_v48 = vld [vmem:[%s1610_s0 + $0x178] sm:$0xff] }
  0x49   :  { %v599_v63 = vmax.f32 %v535_v53, 0.0  ;;  %v474_v0 = vadd.f32 %v763_v6, %v403_v55  ;;  %v205_v3 = vadd.f32 %v749_v2, %v134_v56  ;;  %v135_v4 = vmul.f32 %v744_v1, %v64_v52  ;;  %v340_v53 = vld [vmem:[%s1613_s3 + $0x178] sm:$0xff] }
  0x4a   :  { %v600_v9 = vmax.f32 %v536_v57, 0.0  ;;  %v537_v10 = vadd.f32 %v473_v54, %v267_v58  ;;  %v268_v11 = vmax.f32 %v204_v59, 0.0  ;;  %v475_v12 = vadd.f32 %v763_v6, %v404_v60  ;;  %v71_v54 = vld [vmem:[%s1610_s0 + $0x180] sm:$0xff] }
  0x4b   :  { %663 = vst [vmem:[%s1616_s6 + $0x120] sm:$0xff] %v599_v63  ;;  %v269_v13 = vmax.f32 %v205_v3, 0.0  ;;  %v206_v14 = vadd.f32 %v749_v2, %v135_v4  ;;  %v405_v15 = vmul.f32 %v758_v5, %v334_v61  ;;  %v136_v16 = vmul.f32 %v744_v1, %v65_v62  ;;  %v341_v59 = vld [vmem:[%s1613_s3 + $0x180] sm:$0xff] }
  0x4c   :  { %664 = vst [vmem:[%s1616_s6 + $0x128] sm:$0xff] %v600_v9  ;;  %v601_v18 = vmax.f32 %v537_v10, 0.0  ;;  %v538_v19 = vadd.f32 %v474_v0, %v268_v11  ;;  %v406_v20 = vmul.f32 %v758_v5, %v335_v7  ;;  %v137_v21 = vmul.f32 %v744_v1, %v66_v8  ;;  %v72_v0 = vld [vmem:[%s1610_s0 + $0x188] sm:$0xff] }
  0x4d   :  { %v539_v23 = vadd.f32 %v475_v12, %v269_v13  ;;  %v270_v24 = vmax.f32 %v206_v14, 0.0  ;;  %v476_v25 = vadd.f32 %v763_v6, %v405_v15  ;;  %v207_v26 = vadd.f32 %v749_v2, %v136_v16  ;;  %v342_v13 = vld [vmem:[%s1613_s3 + $0x188] sm:$0xff]  ;;  %v73_v14 = vld [vmem:[%s1610_s0 + $0x190] sm:$0xff] }
  0x4e   :  { %665 = vst [vmem:[%s1616_s6 + $0x130] sm:$0xff] %v601_v18  ;;  %v602_v29 = vmax.f32 %v538_v19, 0.0  ;;  %v477_v30 = vadd.f32 %v763_v6, %v406_v20  ;;  %v208_v31 = vadd.f32 %v749_v2, %v137_v21  ;;  %v407_v32 = vmul.f32 %v758_v5, %v336_v17  ;;  %v343_v19 = vld [vmem:[%s1613_s3 + $0x190] sm:$0xff]  ;;  %v74_v20 = vld [vmem:[%s1610_s0 + $0x198] sm:$0xff] }
  0x4f   :  { %v603_v34 = vmax.f32 %v539_v23, 0.0  ;;  %v540_v35 = vadd.f32 %v476_v25, %v270_v24  ;;  %v271_v36 = vmax.f32 %v207_v26, 0.0  ;;  %v138_v37 = vmul.f32 %v744_v1, %v67_v22 }
  0x50   :  { %666 = vst [vmem:[%s1616_s6 + $0x138] sm:$0xff] %v602_v29  ;;  %v272_v39 = vmax.f32 %v208_v31, 0.0  ;;  %v478_v40 = vadd.f32 %v763_v6, %v407_v32  ;;  %v408_v41 = vmul.f32 %v758_v5, %v337_v27  ;;  %v139_v42 = vmul.f32 %v744_v1, %v68_v28  ;;  %v344_v29 = vld [vmem:[%s1613_s3 + $0x198] sm:$0xff] }
  0x51   :  { %667 = vst [vmem:[%s1616_s6 + $0x140] sm:$0xff] %v603_v34  ;;  %v604_v44 = vmax.f32 %v540_v35, 0.0  ;;  %v541_v45 = vadd.f32 %v477_v30, %v271_v36  ;;  %v209_v46 = vadd.f32 %v749_v2, %v138_v37  ;;  %v409_v47 = vmul.f32 %v758_v5, %v338_v33  ;;  %v75_v34 = vld [vmem:[%s1610_s0 + $0x1a0] sm:$0xff] }
  0x52   :  { %v542_v49 = vadd.f32 %v478_v40, %v272_v39  ;;  %v479_v50 = vadd.f32 %v763_v6, %v408_v41  ;;  %v210_v51 = vadd.f32 %v749_v2, %v139_v42  ;;  %v140_v52 = vmul.f32 %v744_v1, %v69_v38  ;;  %v345_v39 = vld [vmem:[%s1613_s3 + $0x1a0] sm:$0xff]  ;;  %v76_v40 = vld [vmem:[%s1610_s0 + $0x1a8] sm:$0xff] }
  0x53   :  { %668 = vst [vmem:[%s1616_s6 + $0x148] sm:$0xff] %v604_v44  ;;  %v605_v55 = vmax.f32 %v541_v45, 0.0  ;;  %v273_v56 = vmax.f32 %v209_v46, 0.0  ;;  %v480_v57 = vadd.f32 %v763_v6, %v409_v47  ;;  %v410_v58 = vmul.f32 %v758_v5, %v339_v43  ;;  %v346_v44 = vld [vmem:[%s1613_s3 + $0x1a8] sm:$0xff] }
  0x54   :  { %v606_v60 = vmax.f32 %v542_v49, 0.0  ;;  %v274_v61 = vmax.f32 %v210_v51, 0.0  ;;  %v211_v62 = vadd.f32 %v749_v2, %v140_v52  ;;  %v141_v63 = vmul.f32 %v744_v1, %v70_v48  ;;  %v1433_v48 = vld [vmem:[%s1611_s1] ss:$0 sm:$0xff] }
  0x55   :  { %669 = vst [vmem:[%s1616_s6 + $0x150] sm:$0xff] %v605_v55  ;;  %v543_v3 = vadd.f32 %v479_v50, %v273_v56  ;;  %v481_v4 = vadd.f32 %v763_v6, %v410_v58  ;;  %v411_v7 = vmul.f32 %v758_v5, %v340_v53  ;;  %v142_v8 = vmul.f32 %v744_v1, %v71_v54  ;;  %v1451_v51 = vld [vmem:[%s1614_s4] ss:$0 sm:$0xff]  ;;  %v347_v54 = vld [vmem:[%s1613_s3 + $0x1b0] sm:$0xff] }
  0x56   :  { %670 = vst [vmem:[%s1616_s6 + $0x158] sm:$0xff] %v606_v60  ;;  %v544_v9 = vadd.f32 %v480_v57, %v274_v61  ;;  %v275_v10 = vmax.f32 %v211_v62, 0.0  ;;  %v212_v11 = vadd.f32 %v749_v2, %v141_v63  ;;  %v412_v12 = vmul.f32 %v758_v5, %v341_v59  ;;  %v1464_v57 = vld [vmem:[%s1612_s2] ss:$0 sm:$0xff]  ;;  %v78_v60 = vld [vmem:[%s1610_s0 + $0x1b8] sm:$0xff] }
  0x57   :  { %v607_v15 = vmax.f32 %v543_v3, 0.0  ;;  %v482_v16 = vadd.f32 %v763_v6, %v411_v7  ;;  %v213_v17 = vadd.f32 %v749_v2, %v142_v8  ;;  %v143_v18 = vmul.f32 %v744_v1, %v72_v0  ;;  %v348_v3 = vld [vmem:[%s1613_s3 + $0x1b8] sm:$0xff] }
  0x58   :  { %v608_v21 = vmax.f32 %v544_v9, 0.0  ;;  %v545_v22 = vadd.f32 %v481_v4, %v275_v10  ;;  %v276_v23 = vmax.f32 %v212_v11, 0.0  ;;  %v483_v24 = vadd.f32 %v763_v6, %v412_v12  ;;  %v79_v4 = vld [vmem:[%s1610_s0 + $0x1c0] sm:$0xff] }
  0x59   :  { %671 = vst [vmem:[%s1616_s6 + $0x160] sm:$0xff] %v607_v15  ;;  %v277_v25 = vmax.f32 %v213_v17, 0.0  ;;  %v214_v26 = vadd.f32 %v749_v2, %v143_v18  ;;  %v413_v27 = vmul.f32 %v758_v5, %v342_v13  ;;  %v144_v28 = vmul.f32 %v744_v1, %v73_v14  ;;  %v349_v11 = vld [vmem:[%s1613_s3 + $0x1c0] sm:$0xff] }
  0x5a   :  { %672 = vst [vmem:[%s1616_s6 + $0x168] sm:$0xff] %v608_v21  ;;  %v609_v30 = vmax.f32 %v545_v22, 0.0  ;;  %v546_v31 = vadd.f32 %v482_v16, %v276_v23  ;;  %v414_v32 = vmul.f32 %v758_v5, %v343_v19  ;;  %v145_v33 = vmul.f32 %v744_v1, %v74_v20  ;;  %v80_v16 = vld [vmem:[%s1610_s0 + $0x1c8] sm:$0xff] }
  0x5b   :  { %v547_v35 = vadd.f32 %v483_v24, %v277_v25  ;;  %v278_v36 = vmax.f32 %v214_v26, 0.0  ;;  %v484_v37 = vadd.f32 %v763_v6, %v413_v27  ;;  %v215_v38 = vadd.f32 %v749_v2, %v144_v28  ;;  %v350_v25 = vld [vmem:[%s1613_s3 + $0x1c8] sm:$0xff]  ;;  %v81_v26 = vld [vmem:[%s1610_s0 + $0x1d0] sm:$0xff] }
  0x5c   :  { %673 = vst [vmem:[%s1616_s6 + $0x170] sm:$0xff] %v609_v30  ;;  %v610_v1 = vmax.f32 %v546_v31, 0.0  ;;  %v485_v41 = vadd.f32 %v763_v6, %v414_v32  ;;  %v216_v42 = vadd.f32 %v749_v2, %v145_v33  ;;  %v415_v43 = vmul.f32 %v758_v5, %v344_v29  ;;  %v77_v2 = vld [vmem:[%s1610_s0 + $0x1b0] sm:$0xff]  ;;  %v1445_v6 = vld [vmem:[%s1615_s5] ss:$0 sm:$0xff]  ;;  %v82_v32 = vld [vmem:[%s1610_s0 + $0x1d8] sm:$0xff] }
  0x5d   :  { %v611_v45 = vmax.f32 %v547_v35, 0.0  ;;  %v548_v46 = vadd.f32 %v484_v37, %v278_v36  ;;  %v279_v47 = vmax.f32 %v215_v38, 0.0  ;;  %v146_v49 = vmul.f32 %v1433_v48, %v75_v34  ;;  %v351_v31 = vld [vmem:[%s1613_s3 + $0x1d0] sm:$0xff] }
  0x5e   :  { %674 = vst [vmem:[%s1616_s6 + $0x178] sm:$0xff] %v610_v1  ;;  %v280_v5 = vmax.f32 %v216_v42, 0.0  ;;  %v486_v50 = vadd.f32 %v1445_v6, %v415_v43  ;;  %v416_v52 = vmul.f32 %v1451_v51, %v345_v39  ;;  %v147_v53 = vmul.f32 %v1433_v48, %v76_v40  ;;  %v352_v1 = vld [vmem:[%s1613_s3 + $0x1d8] sm:$0xff] }
  0x5f   :  { %675 = vst [vmem:[%s1616_s6 + $0x180] sm:$0xff] %v611_v45  ;;  %v612_v55 = vmax.f32 %v548_v46, 0.0  ;;  %v549_v56 = vadd.f32 %v485_v41, %v279_v47  ;;  %v217_v58 = vadd.f32 %v1464_v57, %v146_v49  ;;  %v417_v59 = vmul.f32 %v1451_v51, %v346_v44  ;;  %v83_v45 = vld [vmem:[%s1610_s0 + $0x1e0] sm:$0xff] }
  0x60   :  { %v550_v61 = vadd.f32 %v486_v50, %v280_v5  ;;  %v487_v62 = vadd.f32 %v1445_v6, %v416_v52  ;;  %v218_v63 = vadd.f32 %v1464_v57, %v147_v53  ;;  %v148_v0 = vmul.f32 %v1433_v48, %v77_v2  ;;  %v353_v5 = vld [vmem:[%s1613_s3 + $0x1e0] sm:$0xff]  ;;  %v84_v50 = vld [vmem:[%s1610_s0 + $0x1e8] sm:$0xff] }
  0x61   :  { %676 = vst [vmem:[%s1616_s6 + $0x188] sm:$0xff] %v612_v55  ;;  %v613_v7 = vmax.f32 %v549_v56, 0.0  ;;  %v281_v8 = vmax.f32 %v217_v58, 0.0  ;;  %v488_v9 = vadd.f32 %v1445_v6, %v417_v59  ;;  %v418_v10 = vmul.f32 %v1451_v51, %v347_v54  ;;  %v354_v56 = vld [vmem:[%s1613_s3 + $0x1e8] sm:$0xff] }
  0x62   :  { %v614_v12 = vmax.f32 %v550_v61, 0.0  ;;  %v282_v13 = vmax.f32 %v218_v63, 0.0  ;;  %v219_v14 = vadd.f32 %v1464_v57, %v148_v0  ;;  %v149_v15 = vmul.f32 %v1433_v48, %v78_v60 }
  0x63   :  { %677 = vst [vmem:[%s1616_s6 + $0x190] sm:$0xff] %v613_v7  ;;  %v551_v17 = vadd.f32 %v487_v62, %v281_v8  ;;  %v489_v18 = vadd.f32 %v1445_v6, %v418_v10  ;;  %v419_v19 = vmul.f32 %v1451_v51, %v348_v3  ;;  %v150_v20 = vmul.f32 %v1433_v48, %v79_v4  ;;  %v85_v62 = vld [vmem:[%s1610_s0 + $0x1f0] sm:$0xff] }
  0x64   :  { %678 = vst [vmem:[%s1616_s6 + $0x198] sm:$0xff] %v614_v12  ;;  %v552_v21 = vadd.f32 %v488_v9, %v282_v13  ;;  %v283_v22 = vmax.f32 %v219_v14, 0.0  ;;  %v220_v23 = vadd.f32 %v1464_v57, %v149_v15  ;;  %v420_v24 = vmul.f32 %v1451_v51, %v349_v11  ;;  %v355_v7 = vld [vmem:[%s1613_s3 + $0x1f0] sm:$0xff]  ;;  %v86_v12 = vld [vmem:[%s1610_s0 + $0x1f8] sm:$0xff] }
  0x65   :  { %v615_v27 = vmax.f32 %v551_v17, 0.0  ;;  %v490_v28 = vadd.f32 %v1445_v6, %v419_v19  ;;  %v221_v29 = vadd.f32 %v1464_v57, %v150_v20  ;;  %v151_v30 = vmul.f32 %v1433_v48, %v80_v16  ;;  %v356_v17 = vld [vmem:[%s1613_s3 + $0x1f8] sm:$0xff] }
  0x66   :  { %v616_v33 = vmax.f32 %v552_v21, 0.0  ;;  %v553_v34 = vadd.f32 %v489_v18, %v283_v22  ;;  %v284_v35 = vmax.f32 %v220_v23, 0.0  ;;  %v491_v36 = vadd.f32 %v1445_v6, %v420_v24 }
  0x67   :  { %679 = vst [vmem:[%s1616_s6 + $0x1a0] sm:$0xff] %v615_v27  ;;  %v285_v37 = vmax.f32 %v221_v29, 0.0  ;;  %v222_v38 = vadd.f32 %v1464_v57, %v151_v30  ;;  %v421_v39 = vmul.f32 %v1451_v51, %v350_v25  ;;  %v152_v40 = vmul.f32 %v1433_v48, %v81_v26 }
  0x68   :  { %680 = vst [vmem:[%s1616_s6 + $0x1a8] sm:$0xff] %v616_v33  ;;  %v617_v41 = vmax.f32 %v553_v34, 0.0  ;;  %v554_v42 = vadd.f32 %v490_v28, %v284_v35  ;;  %v422_v43 = vmul.f32 %v1451_v51, %v351_v31  ;;  %v153_v44 = vmul.f32 %v1433_v48, %v82_v32 }
  0x69   :  { %v555_v46 = vadd.f32 %v491_v36, %v285_v37  ;;  %v286_v47 = vmax.f32 %v222_v38, 0.0  ;;  %v492_v49 = vadd.f32 %v1445_v6, %v421_v39  ;;  %v223_v2 = vadd.f32 %v1464_v57, %v152_v40 }
  0x6a   :  { %681 = vst [vmem:[%s1616_s6 + $0x1b0] sm:$0xff] %v617_v41  ;;  %v618_v52 = vmax.f32 %v554_v42, 0.0  ;;  %v493_v53 = vadd.f32 %v1445_v6, %v422_v43  ;;  %v224_v54 = vadd.f32 %v1464_v57, %v153_v44  ;;  %v423_v55 = vmul.f32 %v1451_v51, %v352_v1 }
  0x6b   :  { %v619_v58 = vmax.f32 %v555_v46, 0.0  ;;  %v556_v59 = vadd.f32 %v492_v49, %v286_v47  ;;  %v287_v60 = vmax.f32 %v223_v2, 0.0  ;;  %v154_v61 = vmul.f32 %v1433_v48, %v83_v45 }
  0x6c   :  { %682 = vst [vmem:[%s1616_s6 + $0x1b8] sm:$0xff] %v618_v52  ;;  %v288_v63 = vmax.f32 %v224_v54, 0.0  ;;  %v494_v0 = vadd.f32 %v1445_v6, %v423_v55  ;;  %v424_v3 = vmul.f32 %v1451_v51, %v353_v5  ;;  %v155_v4 = vmul.f32 %v1433_v48, %v84_v50 }
  0x6d   :  { %683 = vst [vmem:[%s1616_s6 + $0x1c0] sm:$0xff] %v619_v58  ;;  %v620_v8 = vmax.f32 %v556_v59, 0.0  ;;  %v557_v9 = vadd.f32 %v493_v53, %v287_v60  ;;  %v225_v10 = vadd.f32 %v1464_v57, %v154_v61  ;;  %v425_v11 = vmul.f32 %v1451_v51, %v354_v56 }
  0x6e   :  { %v558_v13 = vadd.f32 %v494_v0, %v288_v63  ;;  %v495_v14 = vadd.f32 %v1445_v6, %v424_v3  ;;  %v226_v15 = vadd.f32 %v1464_v57, %v155_v4  ;;  %v156_v16 = vmul.f32 %v1433_v48, %v85_v62 }
  0x6f   :  { %684 = vst [vmem:[%s1616_s6 + $0x1c8] sm:$0xff] %v620_v8  ;;  %v621_v18 = vmax.f32 %v557_v9, 0.0  ;;  %v289_v19 = vmax.f32 %v225_v10, 0.0  ;;  %v496_v20 = vadd.f32 %v1445_v6, %v425_v11  ;;  %v426_v21 = vmul.f32 %v1451_v51, %v355_v7 }
  0x70   :  { %v622_v22 = vmax.f32 %v558_v13, 0.0  ;;  %v290_v23 = vmax.f32 %v226_v15, 0.0  ;;  %v227_v24 = vadd.f32 %v1464_v57, %v156_v16  ;;  %v157_v25 = vmul.f32 %v1433_v48, %v86_v12 }
  0x71   :  { %685 = vst [vmem:[%s1616_s6 + $0x1d0] sm:$0xff] %v621_v18  ;;  %v559_v26 = vadd.f32 %v495_v14, %v289_v19  ;;  %v497_v27 = vadd.f32 %v1445_v6, %v426_v21  ;;  %v427_v28 = vmul.f32 %v1451_v51, %v356_v17 }
  0x72   :  { %686 = vst [vmem:[%s1616_s6 + $0x1d8] sm:$0xff] %v622_v22  ;;  %v560_v29 = vadd.f32 %v496_v20, %v290_v23  ;;  %v291_v30 = vmax.f32 %v227_v24, 0.0  ;;  %v228_v31 = vadd.f32 %v1464_v57, %v157_v25 }
  0x73   :  { %v623_v32 = vmax.f32 %v559_v26, 0.0  ;;  %v498_v48 = vadd.f32 %v1445_v6, %v427_v28 }
  0x74   :  { %v624_v33 = vmax.f32 %v560_v29, 0.0  ;;  %v561_v34 = vadd.f32 %v497_v27, %v291_v30  ;;  %v292_v35 = vmax.f32 %v228_v31, 0.0 }
  0x75   :  { %687 = vst [vmem:[%s1616_s6 + $0x1e0] sm:$0xff] %v623_v32 }
  0x76   :  { %688 = vst [vmem:[%s1616_s6 + $0x1e8] sm:$0xff] %v624_v33  ;;  %v625_v51 = vmax.f32 %v561_v34, 0.0  ;;  %v562_v36 = vadd.f32 %v498_v48, %v292_v35 }
  0x78   :  { %689 = vst [vmem:[%s1616_s6 + $0x1f0] sm:$0xff] %v625_v51  ;;  %v626_v57 = vmax.f32 %v562_v36, 0.0 }
  0x7a   :  { %690 = vst [vmem:[%s1616_s6 + $0x1f8] sm:$0xff] %v626_v57 }

// kernel: bottleneck_block.4
= control target key start
LH: loop header
LB: loop body
LE: loop exit
PB: predicated region body
PF: predicated region fallthrough
CT: control target
= control target key end

     0   :  { %s2326_s1 = inlined_call_operand.vmem [shape: bf16[128,128], index: 1, kind: input, shape index: {}]   ;;  %s2327_s2 = inlined_call_operand.vmem [shape: bf16[128,128], index: 2, kind: input, shape index: {}]   ;;  %s2328_s0 = inlined_call_operand.vmem [shape: f32[512,128], index: 0, kind: input, shape index: {}]   ;;  %s2329_s3 = inlined_call_operand.vmem [shape: f32[512,128], index: 3, kind: output, shape index: {0}]   ;;  %s2330_s5 = inlined_call_operand.vmem [shape: f32[512,128], index: 5, kind: output, shape index: {2}]   ;;  %s2331_s4 = inlined_call_operand.vmem [shape: f32[8,128], index: 4, kind: output, shape index: {1}]   ;;  %s2332_s6 = inlined_call_operand.vmem [shape: f32[8,128], index: 6, kind: output, shape index: {3}]  }
   0x1   :  { %v1632_v0 = vld [vmem:[%s2326_s1] sm:$0xff]   ;;  %v1634_v2 = vld [vmem:[%s2326_s1 + $0x8] sm:$0xff]   ;;  %v1636_v4 = vld [vmem:[%s2326_s1 + $0x10] sm:$0xff]  }
   0x2   :  { %v1633_v1 = vld [vmem:[%s2327_s2] sm:$0xff]   ;;  %1471 = vmatprep.subr.bf16.mxu0 %v1632_v0  ;;  %v1635_v3 = vld [vmem:[%s2327_s2 + $0x8] sm:$0xff]   ;;  %v1637_v5 = vld [vmem:[%s2327_s2 + $0x10] sm:$0xff]  }
   0x3   :  { %1551 = vmatprep.subr.bf16.mxu1 %v1633_v1  ;;  %1472 = vmatpush3.bf16.msra.mxu0 %v1632_v0  ;;  %v1638_v6 = vld [vmem:[%s2326_s1 + $0x18] sm:$0xff]   ;;  %v1640_v8 = vld [vmem:[%s2326_s1 + $0x20] sm:$0xff]   ;;  %v1642_v10 = vld [vmem:[%s2326_s1 + $0x28] sm:$0xff]  }
   0x4   :  { %1552 = vmatpush3.bf16.msra.mxu1 %v1633_v1  ;;  %1473 = vmatprep.subr.bf16.mxu0 %v1634_v2  ;;  %v1639_v7 = vld [vmem:[%s2327_s2 + $0x18] sm:$0xff]   ;;  %v1641_v9 = vld [vmem:[%s2327_s2 + $0x20] sm:$0xff]   ;;  %v20_v12 = vld [vmem:[%s2328_s0 + $0x8] sm:$0xff] }
   0x5   :  { %1553 = vmatprep.subr.bf16.mxu1 %v1635_v3  ;;  %v19_v11 = vld [vmem:[%s2328_s0] sm:$0xff]  ;;  %v1643_v13 = vld [vmem:[%s2327_s2 + $0x28] sm:$0xff]   ;;  %v1644_v15 = vld [vmem:[%s2326_s1 + $0x30] sm:$0xff]  }
   0x6   :  { %v83_v14 = vpack.c.bf16 %v20_v12, %v19_v11  ;;  %v1645_v16 = vld [vmem:[%s2327_s2 + $0x30] sm:$0xff]   ;;  %v1646_v17 = vld [vmem:[%s2326_s1 + $0x38] sm:$0xff]   ;;  %v23_v21 = vld [vmem:[%s2328_s0 + $0x20] sm:$0xff] }
   0x7   :  { %1474 = vmatpush3.bf16.msra.mxu0 %v1634_v2  ;;  %v1647_v18 = vld [vmem:[%s2327_s2 + $0x38] sm:$0xff]   ;;  %v21_v19 = vld [vmem:[%s2328_s0 + $0x10] sm:$0xff]  ;;  %v24_v22 = vld [vmem:[%s2328_s0 + $0x28] sm:$0xff] }
   0x8   :  { %1554 = vmatpush3.bf16.msra.mxu1 %v1635_v3  ;;  %1475 = vmatprep.subr.bf16.mxu0 %v1636_v4  ;;  %v22_v20 = vld [vmem:[%s2328_s0 + $0x18] sm:$0xff]  ;;  %v85_v24 = vpack.c.bf16 %v24_v22, %v23_v21  ;;  %v25_v25 = vld [vmem:[%s2328_s0 + $0x30] sm:$0xff]  ;;  %v27_v27 = vld [vmem:[%s2328_s0 + $0x40] sm:$0xff] }
   0x9   :  { %1555 = vmatprep.subr.bf16.mxu1 %v1637_v5  ;;  %1487 = vmatprep.mubr.bf16.mxu0 %v83_v14  ;;  %v84_v23 = vpack.c.bf16 %v22_v20, %v21_v19  ;;  %v26_v26 = vld [vmem:[%s2328_s0 + $0x38] sm:$0xff]  ;;  %v28_v28 = vld [vmem:[%s2328_s0 + $0x48] sm:$0xff]  ;;  %v29_v31 = vld [vmem:[%s2328_s0 + $0x50] sm:$0xff] }
   0xa   :  { %1567 = vmatprep.mubr.bf16.mxu1 %v83_v14  ;;  %v86_v29 = vpack.c.bf16 %v26_v26, %v25_v25  ;;  %v87_v30 = vpack.c.bf16 %v28_v28, %v27_v27  ;;  %v30_v32 = vld [vmem:[%s2328_s0 + $0x58] sm:$0xff]  ;;  %v31_v33 = vld [vmem:[%s2328_s0 + $0x60] sm:$0xff]  ;;  %v32_v34 = vld [vmem:[%s2328_s0 + $0x68] sm:$0xff] }
   0xb   :  { %1476 = vmatpush3.bf16.msra.mxu0 %v1636_v4  ;;  %v88_v35 = vpack.c.bf16 %v30_v32, %v29_v31  ;;  %v89_v36 = vpack.c.bf16 %v32_v34, %v31_v33  ;;  %v33_v37 = vld [vmem:[%s2328_s0 + $0x70] sm:$0xff]  ;;  %v34_v38 = vld [vmem:[%s2328_s0 + $0x78] sm:$0xff]  ;;  %v35_v39 = vld [vmem:[%s2328_s0 + $0x80] sm:$0xff] }
   0xc   :  { %1556 = vmatpush3.bf16.msra.mxu1 %v1637_v5  ;;  %1477 = vmatprep.subr.bf16.mxu0 %v1638_v6  ;;  %v36_v40 = vld [vmem:[%s2328_s0 + $0x88] sm:$0xff]  ;;  %v90_v41 = vpack.c.bf16 %v34_v38, %v33_v37  ;;  %v37_v43 = vld [vmem:[%s2328_s0 + $0x90] sm:$0xff]  ;;  %v38_v44 = vld [vmem:[%s2328_s0 + $0x98] sm:$0xff] }
   0xd   :  { %1557 = vmatprep.subr.bf16.mxu1 %v1639_v7  ;;  %v91_v42 = vpack.c.bf16 %v36_v40, %v35_v39  ;;  %v39_v45 = vld [vmem:[%s2328_s0 + $0xa0] sm:$0xff]  ;;  %v40_v46 = vld [vmem:[%s2328_s0 + $0xa8] sm:$0xff]  ;;  %v92_v47 = vpack.c.bf16 %v38_v44, %v37_v43  ;;  %v41_v49 = vld [vmem:[%s2328_s0 + $0xb0] sm:$0xff] }
   0xe   :  { %v93_v48 = vpack.c.bf16 %v40_v46, %v39_v45  ;;  %v42_v50 = vld [vmem:[%s2328_s0 + $0xb8] sm:$0xff]  ;;  %v43_v51 = vld [vmem:[%s2328_s0 + $0xc0] sm:$0xff]  ;;  %v44_v52 = vld [vmem:[%s2328_s0 + $0xc8] sm:$0xff] }
   0xf   :  { %1478 = vmatpush3.bf16.msra.mxu0 %v1638_v6  ;;  %v94_v53 = vpack.c.bf16 %v42_v50, %v41_v49  ;;  %v95_v54 = vpack.c.bf16 %v44_v52, %v43_v51  ;;  %v45_v55 = vld [vmem:[%s2328_s0 + $0xd0] sm:$0xff]  ;;  %v46_v56 = vld [vmem:[%s2328_s0 + $0xd8] sm:$0xff]  ;;  %v47_v57 = vld [vmem:[%s2328_s0 + $0xe0] sm:$0xff] }
  0x10   :  { %1558 = vmatpush3.bf16.msra.mxu1 %v1639_v7  ;;  %1479 = vmatprep.subr.bf16.mxu0 %v1640_v8  ;;  %v48_v58 = vld [vmem:[%s2328_s0 + $0xe8] sm:$0xff]  ;;  %v96_v59 = vpack.c.bf16 %v46_v56, %v45_v55  ;;  %v49_v61 = vld [vmem:[%s2328_s0 + $0xf0] sm:$0xff]  ;;  %v50_v62 = vld [vmem:[%s2328_s0 + $0xf8] sm:$0xff] }
  0x11   :  { %1559 = vmatprep.subr.bf16.mxu1 %v1641_v9  ;;  %v97_v60 = vpack.c.bf16 %v48_v58, %v47_v57  ;;  %v51_v63 = vld [vmem:[%s2328_s0 + $0x100] sm:$0xff]  ;;  %v52_v0 = vld [vmem:[%s2328_s0 + $0x108] sm:$0xff]  ;;  %v98_v1 = vpack.c.bf16 %v50_v62, %v49_v61  ;;  %v53_v3 = vld [vmem:[%s2328_s0 + $0x110] sm:$0xff] }
  0x12   :  { %v99_v2 = vpack.c.bf16 %v52_v0, %v51_v63  ;;  %v54_v4 = vld [vmem:[%s2328_s0 + $0x118] sm:$0xff]  ;;  %v55_v5 = vld [vmem:[%s2328_s0 + $0x120] sm:$0xff]  ;;  %v56_v6 = vld [vmem:[%s2328_s0 + $0x128] sm:$0xff] }
  0x13   :  { %1480 = vmatpush3.bf16.msra.mxu0 %v1640_v8  ;;  %v100_v7 = vpack.c.bf16 %v54_v4, %v53_v3  ;;  %v101_v8 = vpack.c.bf16 %v56_v6, %v55_v5  ;;  %v59_v11 = vld [vmem:[%s2328_s0 + $0x140] sm:$0xff]  ;;  %v60_v12 = vld [vmem:[%s2328_s0 + $0x148] sm:$0xff]  ;;  %v65_v21 = vld [vmem:[%s2328_s0 + $0x170] sm:$0xff] }
  0x14   :  { %1560 = vmatpush3.bf16.msra.mxu1 %v1641_v9  ;;  %1481 = vmatprep.subr.bf16.mxu0 %v1642_v10  ;;  %v57_v9 = vld [vmem:[%s2328_s0 + $0x130] sm:$0xff]  ;;  %v103_v14 = vpack.c.bf16 %v60_v12, %v59_v11  ;;  %v66_v22 = vld [vmem:[%s2328_s0 + $0x178] sm:$0xff] }
  0x15   :  { %1561 = vmatprep.subr.bf16.mxu1 %v1643_v13  ;;  %v106_v25 = vpack.c.bf16 %v66_v22, %v65_v21  ;;  %v69_v27 = vld [vmem:[%s2328_s0 + $0x190] sm:$0xff]  ;;  %v70_v28 = vld [vmem:[%s2328_s0 + $0x198] sm:$0xff] }
  0x16   :  { %v108_v31 = vpack.c.bf16 %v70_v28, %v69_v27  ;;  %v73_v33 = vld [vmem:[%s2328_s0 + $0x1b0] sm:$0xff]  ;;  %v74_v34 = vld [vmem:[%s2328_s0 + $0x1b8] sm:$0xff] }
  0x17   :  { %1482 = vmatpush3.bf16.msra.mxu0 %v1642_v10  ;;  %v58_v10 = vld [vmem:[%s2328_s0 + $0x138] sm:$0xff]  ;;  %v110_v37 = vpack.c.bf16 %v74_v34, %v73_v33  ;;  %v77_v39 = vld [vmem:[%s2328_s0 + $0x1d0] sm:$0xff] }
  0x18   :  { %1562 = vmatpush3.bf16.msra.mxu1 %v1643_v13  ;;  %1483 = vmatprep.subr.bf16.mxu0 %v1644_v15  ;;  %v102_v13 = vpack.c.bf16 %v58_v10, %v57_v9  ;;  %v78_v40 = vld [vmem:[%s2328_s0 + $0x1d8] sm:$0xff]  ;;  %v81_v45 = vld [vmem:[%s2328_s0 + $0x1f0] sm:$0xff] }
  0x19   :  { %1563 = vmatprep.subr.bf16.mxu1 %v1645_v16  ;;  %v112_v43 = vpack.c.bf16 %v78_v40, %v77_v39  ;;  %v82_v46 = vld [vmem:[%s2328_s0 + $0x1f8] sm:$0xff] }
  0x1b   :  { %1484 = vmatpush3.bf16.msra.mxu0 %v1644_v15  ;;  %v61_v15 = vld [vmem:[%s2328_s0 + $0x150] sm:$0xff] }
  0x1c   :  { %1564 = vmatpush3.bf16.msra.mxu1 %v1645_v16  ;;  %1485 = vmatprep.subr.bf16.mxu0 %v1646_v17  ;;  %v62_v16 = vld [vmem:[%s2328_s0 + $0x158] sm:$0xff] }
  0x1d   :  { %1565 = vmatprep.subr.bf16.mxu1 %v1647_v18  ;;  %v104_v19 = vpack.c.bf16 %v62_v16, %v61_v15 }
  0x1f   :  { %1486 = vmatpush3.bf16.msra.mxu0 %v1646_v17  ;;  %v63_v17 = vld [vmem:[%s2328_s0 + $0x160] sm:$0xff] }
  0x20   :  { %1566 = vmatpush3.bf16.msra.mxu1 %v1647_v18  ;;  %v64_v18 = vld [vmem:[%s2328_s0 + $0x168] sm:$0xff] }
  0x21   :  { %v105_v20 = vpack.c.bf16 %v64_v18, %v63_v17 }
  0x22   :  { %1488 = vmatmul.mubr.bf16.vlgmr.msra.gmra.mrb[0].mxu0 %v84_v23 }
  0x23   :  { %1568 = vmatmul.mubr.bf16.vlgmr.msra.gmra.mrb[0].mxu1 %v84_v23  ;;  %1491 = vmatprep.mubr.bf16.mxu0 %v85_v24  ;;  %v67_v23 = vld [vmem:[%s2328_s0 + $0x180] sm:$0xff] }
  0x24   :  { %1571 = vmatprep.mubr.bf16.mxu1 %v85_v24  ;;  %v68_v24 = vld [vmem:[%s2328_s0 + $0x188] sm:$0xff] }
  0x25   :  { %v107_v26 = vpack.c.bf16 %v68_v24, %v67_v23 }
  0x2a   :  { %1492 = vmatmul.mubr.bf16.gmra.mrb[4].mxu0 %v86_v29 }
  0x2b   :  { %1572 = vmatmul.mubr.bf16.gmra.mrb[4].mxu1 %v86_v29  ;;  %1495 = vmatprep.mubr.bf16.mxu0 %v87_v30  ;;  %v71_v29 = vld [vmem:[%s2328_s0 + $0x1a0] sm:$0xff] }
  0x2c   :  { %1575 = vmatprep.mubr.bf16.mxu1 %v87_v30  ;;  %v72_v30 = vld [vmem:[%s2328_s0 + $0x1a8] sm:$0xff] }
  0x2d   :  { %v109_v32 = vpack.c.bf16 %v72_v30, %v71_v29 }
  0x32   :  { %1496 = vmatmul.mubr.bf16.gmra.mrb[8].mxu0 %v88_v35 }
  0x33   :  { %1576 = vmatmul.mubr.bf16.gmra.mrb[8].mxu1 %v88_v35  ;;  %1499 = vmatprep.mubr.bf16.mxu0 %v89_v36  ;;  %v75_v35 = vld [vmem:[%s2328_s0 + $0x1c0] sm:$0xff] }
  0x34   :  { %1579 = vmatprep.mubr.bf16.mxu1 %v89_v36  ;;  %v76_v36 = vld [vmem:[%s2328_s0 + $0x1c8] sm:$0xff] }
  0x35   :  { %v111_v38 = vpack.c.bf16 %v76_v36, %v75_v35 }
  0x3a   :  { %1500 = vmatmul.mubr.bf16.gmra.mrb[12].mxu0 %v90_v41 }
  0x3b   :  { %1580 = vmatmul.mubr.bf16.gmra.mrb[12].mxu1 %v90_v41  ;;  %1503 = vmatprep.mubr.bf16.mxu0 %v91_v42  ;;  %v79_v41 = vld [vmem:[%s2328_s0 + $0x1e0] sm:$0xff] }
  0x3c   :  { %1583 = vmatprep.mubr.bf16.mxu1 %v91_v42  ;;  %v80_v42 = vld [vmem:[%s2328_s0 + $0x1e8] sm:$0xff] }
  0x3d   :  { %v113_v44 = vpack.c.bf16 %v80_v42, %v79_v41 }
  0x42   :  { %1504 = vmatmul.mubr.bf16.gmra.mrb[16].mxu0 %v92_v47 }
  0x43   :  { %1584 = vmatmul.mubr.bf16.gmra.mrb[16].mxu1 %v92_v47  ;;  %1507 = vmatprep.mubr.bf16.mxu0 %v93_v48  ;;  %v114_v47 = vpack.c.bf16 %v82_v46, %v81_v45  ;;  %v1648_v45 = vmov 0.0  }
  0x44   :  { %1587 = vmatprep.mubr.bf16.mxu1 %v93_v48  ;;  %736 = vst [vmem:[%s2331_s4 + $0x2] sm:$0x3f] %v1648_v45  ;;  %1358 = vst [vmem:[%s2332_s6 + $0x2] sm:$0x3f] %v1648_v45 }
  0x4a   :  { %1508 = vmatmul.mubr.bf16.gmra.mrb[20].mxu0 %v94_v53 }
  0x4b   :  { %1588 = vmatmul.mubr.bf16.gmra.mrb[20].mxu1 %v94_v53  ;;  %1511 = vmatprep.mubr.bf16.mxu0 %v95_v54 }
  0x4c   :  { %1591 = vmatprep.mubr.bf16.mxu1 %v95_v54 }
  0x52   :  { %1512 = vmatmul.mubr.bf16.gmra.mrb[24].mxu0 %v96_v59 }
  0x53   :  { %1592 = vmatmul.mubr.bf16.gmra.mrb[24].mxu1 %v96_v59  ;;  %1515 = vmatprep.mubr.bf16.mxu0 %v97_v60 }
  0x54   :  { %1595 = vmatprep.mubr.bf16.mxu1 %v97_v60 }
  0x5a   :  { %1516 = vmatmul.mubr.bf16.gmra.mrb[28].mxu0 %v98_v1 }
  0x5b   :  { %1596 = vmatmul.mubr.bf16.gmra.mrb[28].mxu1 %v98_v1  ;;  %1519 = vmatprep.mubr.bf16.mxu0 %v99_v2 }
  0x5c   :  { %1599 = vmatprep.mubr.bf16.mxu1 %v99_v2 }
  0x62   :  { %1520 = vmatmul.mubr.bf16.gmra.mrb[32].mxu0 %v100_v7 }
  0x63   :  { %1600 = vmatmul.mubr.bf16.gmra.mrb[32].mxu1 %v100_v7  ;;  %1523 = vmatprep.mubr.bf16.mxu0 %v101_v8 }
  0x64   :  { %1603 = vmatprep.mubr.bf16.mxu1 %v101_v8 }
  0x6a   :  { %1524 = vmatmul.mubr.bf16.gmra.mrb[36].mxu0 %v102_v13 }
  0x6b   :  { %1604 = vmatmul.mubr.bf16.gmra.mrb[36].mxu1 %v102_v13  ;;  %1527 = vmatprep.mubr.bf16.mxu0 %v103_v14 }
  0x6c   :  { %1607 = vmatprep.mubr.bf16.mxu1 %v103_v14 }
  0x72   :  { %1528 = vmatmul.mubr.bf16.gmra.mrb[40].mxu0 %v104_v19 }
  0x73   :  { %1608 = vmatmul.mubr.bf16.gmra.mrb[40].mxu1 %v104_v19  ;;  %1531 = vmatprep.mubr.bf16.mxu0 %v105_v20 }
  0x74   :  { %1611 = vmatprep.mubr.bf16.mxu1 %v105_v20 }
  0x7a   :  { %1532 = vmatmul.mubr.bf16.gmra.mrb[44].mxu0 %v106_v25 }
  0x7b   :  { %1612 = vmatmul.mubr.bf16.gmra.mrb[44].mxu1 %v106_v25  ;;  %1535 = vmatprep.mubr.bf16.mxu0 %v107_v26 }
  0x7c   :  { %1615 = vmatprep.mubr.bf16.mxu1 %v107_v26 }
  0x82   :  { %1536 = vmatmul.mubr.bf16.gmra.mrb[48].mxu0 %v108_v31 }
  0x83   :  { %1616 = vmatmul.mubr.bf16.gmra.mrb[48].mxu1 %v108_v31  ;;  %1539 = vmatprep.mubr.bf16.mxu0 %v109_v32 }
  0x84   :  { %1619 = vmatprep.mubr.bf16.mxu1 %v109_v32 }
  0x8a   :  { %1540 = vmatmul.mubr.bf16.gmra.mrb[52].mxu0 %v110_v37 }
  0x8b   :  { %1620 = vmatmul.mubr.bf16.gmra.mrb[52].mxu1 %v110_v37  ;;  %1543 = vmatprep.mubr.bf16.mxu0 %v111_v38 }
  0x8c   :  { %1623 = vmatprep.mubr.bf16.mxu1 %v111_v38 }
  0x92   :  { %1544 = vmatmul.mubr.bf16.gmra.mrb[56].mxu0 %v112_v43 }
  0x93   :  { %1624 = vmatmul.mubr.bf16.gmra.mrb[56].mxu1 %v112_v43  ;;  %1547 = vmatprep.mubr.bf16.mxu0 %v113_v44 }
  0x94   :  { %1627 = vmatprep.mubr.bf16.mxu1 %v113_v44 }
  0x9a   :  { %1548 = vmatmul.mubr.bf16.gmra.mrb[60].mxu0 %v114_v47 }
  0x9b   :  { %1628 = vmatmul.mubr.bf16.gmra.mrb[60].mxu1 %v114_v47 }
  0xf5   :  { %v1489_v48 = vpop.f32.mrb[0].mxu0 }
  0xf6   :  { %470 = vst [vmem:[%s2329_s3 + $0x10] sm:$0xff] %v1489_v48  ;;  %v1569_v49 = vpop.f32.mrb[0].mxu1  ;;  %v213_v50 = vpop.f32.mrb[1].mxu0  ;;  %v604_v62 = vmul.f32 %v1489_v48, %v1489_v48 }
  0xf7   :  { %1092 = vst [vmem:[%s2330_s5 + $0x10] sm:$0xff] %v1569_v49  ;;  %468 = vst [vmem:[%s2329_s3] sm:$0xff] %v213_v50  ;;  %v835_v51 = vpop.f32.mrb[1].mxu1  ;;  %v1490_v52 = vpop.f32.mrb[2].mxu0  ;;  %v602_v55 = vmul.f32 %v213_v50, %v213_v50  ;;  %v1226_v1 = vmul.f32 %v1569_v49, %v1569_v49 }
  0xf8   :  { %1090 = vst [vmem:[%s2330_s5] sm:$0xff] %v835_v51  ;;  %471 = vst [vmem:[%s2329_s3 + $0x18] sm:$0xff] %v1490_v52  ;;  %v1570_v53 = vpop.f32.mrb[2].mxu1  ;;  %v216_v54 = vpop.f32.mrb[3].mxu0  ;;  %v1224_v59 = vmul.f32 %v835_v51, %v835_v51  ;;  %v605_v4 = vmul.f32 %v1490_v52, %v1490_v52 }
  0xf9   :  { %1093 = vst [vmem:[%s2330_s5 + $0x18] sm:$0xff] %v1570_v53  ;;  %469 = vst [vmem:[%s2329_s3 + $0x8] sm:$0xff] %v216_v54  ;;  %v532_v56 = vadd.f32 %v216_v54, %v213_v50  ;;  %v603_v57 = vmul.f32 %v216_v54, %v216_v54  ;;  %v838_v58 = vpop.f32.mrb[3].mxu1  ;;  %v1227_v8 = vmul.f32 %v1570_v53, %v1570_v53 }
  0xfa   :  { %1091 = vst [vmem:[%s2330_s5 + $0x8] sm:$0xff] %v838_v58  ;;  %v1154_v60 = vadd.f32 %v838_v58, %v835_v51  ;;  %v1225_v61 = vmul.f32 %v838_v58, %v838_v58 }
  0xfb   :  { %v533_v63 = vadd.f32 %v1489_v48, %v532_v56  ;;  %v666_v0 = vadd.f32 %v603_v57, %v602_v55 }
  0xfc   :  { %v1155_v2 = vadd.f32 %v1569_v49, %v1154_v60  ;;  %v1288_v3 = vadd.f32 %v1225_v61, %v1224_v59 }
  0xfd   :  { %v667_v5 = vadd.f32 %v666_v0, %v604_v62  ;;  %v1493_v6 = vpop.f32.mrb[4].mxu0  ;;  %v534_v7 = vadd.f32 %v1490_v52, %v533_v63 }
  0xfe   :  { %v1289_v9 = vadd.f32 %v1288_v3, %v1226_v1  ;;  %474 = vst [vmem:[%s2329_s3 + $0x30] sm:$0xff] %v1493_v6  ;;  %v1573_v10 = vpop.f32.mrb[4].mxu1  ;;  %v229_v11 = vpop.f32.mrb[5].mxu0  ;;  %v1156_v12 = vadd.f32 %v1570_v53, %v1155_v2  ;;  %v608_v30 = vmul.f32 %v1493_v6, %v1493_v6 }
  0xff   :  { %1096 = vst [vmem:[%s2330_s5 + $0x30] sm:$0xff] %v1573_v10  ;;  %472 = vst [vmem:[%s2329_s3 + $0x20] sm:$0xff] %v229_v11  ;;  %v535_v13 = vadd.f32 %v534_v7, %v229_v11  ;;  %v606_v14 = vmul.f32 %v229_v11, %v229_v11  ;;  %v668_v15 = vadd.f32 %v667_v5, %v605_v4  ;;  %v851_v16 = vpop.f32.mrb[5].mxu1  ;;  %v1494_v17 = vpop.f32.mrb[6].mxu0 }
 0x100   :  { %1094 = vst [vmem:[%s2330_s5 + $0x20] sm:$0xff] %v851_v16  ;;  %v1157_v18 = vadd.f32 %v1156_v12, %v851_v16  ;;  %v1228_v19 = vmul.f32 %v851_v16, %v851_v16  ;;  %v1290_v20 = vadd.f32 %v1289_v9, %v1227_v8  ;;  %475 = vst [vmem:[%s2329_s3 + $0x38] sm:$0xff] %v1494_v17  ;;  %v1574_v21 = vpop.f32.mrb[6].mxu1  ;;  %v232_v22 = vpop.f32.mrb[7].mxu0 }
 0x101   :  { %v669_v23 = vadd.f32 %v668_v15, %v606_v14  ;;  %1097 = vst [vmem:[%s2330_s5 + $0x38] sm:$0xff] %v1574_v21  ;;  %473 = vst [vmem:[%s2329_s3 + $0x28] sm:$0xff] %v232_v22  ;;  %v536_v24 = vadd.f32 %v535_v13, %v232_v22  ;;  %v607_v25 = vmul.f32 %v232_v22, %v232_v22  ;;  %v854_v26 = vpop.f32.mrb[7].mxu1 }
 0x102   :  { %v1291_v27 = vadd.f32 %v1290_v20, %v1228_v19  ;;  %1095 = vst [vmem:[%s2330_s5 + $0x28] sm:$0xff] %v854_v26  ;;  %v1158_v28 = vadd.f32 %v1157_v18, %v854_v26  ;;  %v1229_v29 = vmul.f32 %v854_v26, %v854_v26  ;;  %v1230_v33 = vmul.f32 %v1573_v10, %v1573_v10 }
 0x103   :  { %v537_v31 = vadd.f32 %v1493_v6, %v536_v24  ;;  %v670_v32 = vadd.f32 %v669_v23, %v607_v25  ;;  %v609_v36 = vmul.f32 %v1494_v17, %v1494_v17  ;;  %v1231_v40 = vmul.f32 %v1574_v21, %v1574_v21 }
 0x104   :  { %v1159_v34 = vadd.f32 %v1573_v10, %v1158_v28  ;;  %v1292_v35 = vadd.f32 %v1291_v27, %v1229_v29 }
 0x105   :  { %v671_v37 = vadd.f32 %v670_v32, %v608_v30  ;;  %v1497_v38 = vpop.f32.mrb[8].mxu0  ;;  %v538_v39 = vadd.f32 %v1494_v17, %v537_v31 }
 0x106   :  { %v1293_v41 = vadd.f32 %v1292_v35, %v1230_v33  ;;  %478 = vst [vmem:[%s2329_s3 + $0x50] sm:$0xff] %v1497_v38  ;;  %v1577_v42 = vpop.f32.mrb[8].mxu1  ;;  %v245_v43 = vpop.f32.mrb[9].mxu0  ;;  %v1160_v44 = vadd.f32 %v1574_v21, %v1159_v34  ;;  %v612_v63 = vmul.f32 %v1497_v38, %v1497_v38 }
 0x107   :  { %1100 = vst [vmem:[%s2330_s5 + $0x50] sm:$0xff] %v1577_v42  ;;  %476 = vst [vmem:[%s2329_s3 + $0x40] sm:$0xff] %v245_v43  ;;  %v539_v46 = vadd.f32 %v538_v39, %v245_v43  ;;  %v610_v47 = vmul.f32 %v245_v43, %v245_v43  ;;  %v672_v48 = vadd.f32 %v671_v37, %v609_v36  ;;  %v867_v49 = vpop.f32.mrb[9].mxu1  ;;  %v1498_v50 = vpop.f32.mrb[10].mxu0 }
 0x108   :  { %1098 = vst [vmem:[%s2330_s5 + $0x40] sm:$0xff] %v867_v49  ;;  %v1161_v51 = vadd.f32 %v1160_v44, %v867_v49  ;;  %v1232_v52 = vmul.f32 %v867_v49, %v867_v49  ;;  %v1294_v53 = vadd.f32 %v1293_v41, %v1231_v40  ;;  %479 = vst [vmem:[%s2329_s3 + $0x58] sm:$0xff] %v1498_v50  ;;  %v1578_v54 = vpop.f32.mrb[10].mxu1  ;;  %v248_v55 = vpop.f32.mrb[11].mxu0 }
 0x109   :  { %v673_v56 = vadd.f32 %v672_v48, %v610_v47  ;;  %1101 = vst [vmem:[%s2330_s5 + $0x58] sm:$0xff] %v1578_v54  ;;  %477 = vst [vmem:[%s2329_s3 + $0x48] sm:$0xff] %v248_v55  ;;  %v540_v57 = vadd.f32 %v539_v46, %v248_v55  ;;  %v611_v58 = vmul.f32 %v248_v55, %v248_v55  ;;  %v870_v59 = vpop.f32.mrb[11].mxu1 }
 0x10a   :  { %v1295_v60 = vadd.f32 %v1294_v53, %v1232_v52  ;;  %1099 = vst [vmem:[%s2330_s5 + $0x48] sm:$0xff] %v870_v59  ;;  %v1162_v61 = vadd.f32 %v1161_v51, %v870_v59  ;;  %v1233_v62 = vmul.f32 %v870_v59, %v870_v59  ;;  %v1234_v2 = vmul.f32 %v1577_v42, %v1577_v42 }
 0x10b   :  { %v541_v0 = vadd.f32 %v1497_v38, %v540_v57  ;;  %v674_v1 = vadd.f32 %v673_v56, %v611_v58  ;;  %v613_v5 = vmul.f32 %v1498_v50, %v1498_v50  ;;  %v1235_v9 = vmul.f32 %v1578_v54, %v1578_v54 }
 0x10c   :  { %v1163_v3 = vadd.f32 %v1577_v42, %v1162_v61  ;;  %v1296_v4 = vadd.f32 %v1295_v60, %v1233_v62 }
 0x10d   :  { %v675_v6 = vadd.f32 %v674_v1, %v612_v63  ;;  %v1501_v7 = vpop.f32.mrb[12].mxu0  ;;  %v542_v8 = vadd.f32 %v1498_v50, %v541_v0 }
 0x10e   :  { %v1297_v10 = vadd.f32 %v1296_v4, %v1234_v2  ;;  %482 = vst [vmem:[%s2329_s3 + $0x70] sm:$0xff] %v1501_v7  ;;  %v1581_v11 = vpop.f32.mrb[12].mxu1  ;;  %v261_v12 = vpop.f32.mrb[13].mxu0  ;;  %v1164_v13 = vadd.f32 %v1578_v54, %v1163_v3  ;;  %v616_v31 = vmul.f32 %v1501_v7, %v1501_v7 }
 0x10f   :  { %1104 = vst [vmem:[%s2330_s5 + $0x70] sm:$0xff] %v1581_v11  ;;  %480 = vst [vmem:[%s2329_s3 + $0x60] sm:$0xff] %v261_v12  ;;  %v543_v14 = vadd.f32 %v542_v8, %v261_v12  ;;  %v614_v15 = vmul.f32 %v261_v12, %v261_v12  ;;  %v676_v16 = vadd.f32 %v675_v6, %v613_v5  ;;  %v883_v17 = vpop.f32.mrb[13].mxu1  ;;  %v1502_v18 = vpop.f32.mrb[14].mxu0 }
 0x110   :  { %1102 = vst [vmem:[%s2330_s5 + $0x60] sm:$0xff] %v883_v17  ;;  %v1165_v19 = vadd.f32 %v1164_v13, %v883_v17  ;;  %v1236_v20 = vmul.f32 %v883_v17, %v883_v17  ;;  %v1298_v21 = vadd.f32 %v1297_v10, %v1235_v9  ;;  %483 = vst [vmem:[%s2329_s3 + $0x78] sm:$0xff] %v1502_v18  ;;  %v1582_v22 = vpop.f32.mrb[14].mxu1  ;;  %v264_v23 = vpop.f32.mrb[15].mxu0 }
 0x111   :  { %v677_v24 = vadd.f32 %v676_v16, %v614_v15  ;;  %1105 = vst [vmem:[%s2330_s5 + $0x78] sm:$0xff] %v1582_v22  ;;  %481 = vst [vmem:[%s2329_s3 + $0x68] sm:$0xff] %v264_v23  ;;  %v544_v25 = vadd.f32 %v543_v14, %v264_v23  ;;  %v615_v26 = vmul.f32 %v264_v23, %v264_v23  ;;  %v886_v27 = vpop.f32.mrb[15].mxu1 }
 0x112   :  { %v1299_v28 = vadd.f32 %v1298_v21, %v1236_v20  ;;  %1103 = vst [vmem:[%s2330_s5 + $0x68] sm:$0xff] %v886_v27  ;;  %v1166_v29 = vadd.f32 %v1165_v19, %v886_v27  ;;  %v1237_v30 = vmul.f32 %v886_v27, %v886_v27  ;;  %v1238_v34 = vmul.f32 %v1581_v11, %v1581_v11 }
 0x113   :  { %v545_v32 = vadd.f32 %v1501_v7, %v544_v25  ;;  %v678_v33 = vadd.f32 %v677_v24, %v615_v26  ;;  %v617_v37 = vmul.f32 %v1502_v18, %v1502_v18  ;;  %v1239_v41 = vmul.f32 %v1582_v22, %v1582_v22 }
 0x114   :  { %v1167_v35 = vadd.f32 %v1581_v11, %v1166_v29  ;;  %v1300_v36 = vadd.f32 %v1299_v28, %v1237_v30 }
 0x115   :  { %v679_v38 = vadd.f32 %v678_v33, %v616_v31  ;;  %v1505_v39 = vpop.f32.mrb[16].mxu0  ;;  %v546_v40 = vadd.f32 %v1502_v18, %v545_v32 }
 0x116   :  { %v1301_v42 = vadd.f32 %v1300_v36, %v1238_v34  ;;  %486 = vst [vmem:[%s2329_s3 + $0x90] sm:$0xff] %v1505_v39  ;;  %v1585_v43 = vpop.f32.mrb[16].mxu1  ;;  %v277_v44 = vpop.f32.mrb[17].mxu0  ;;  %v1168_v45 = vadd.f32 %v1582_v22, %v1167_v35  ;;  %v620_v63 = vmul.f32 %v1505_v39, %v1505_v39 }
 0x117   :  { %1108 = vst [vmem:[%s2330_s5 + $0x90] sm:$0xff] %v1585_v43  ;;  %484 = vst [vmem:[%s2329_s3 + $0x80] sm:$0xff] %v277_v44  ;;  %v547_v46 = vadd.f32 %v546_v40, %v277_v44  ;;  %v618_v47 = vmul.f32 %v277_v44, %v277_v44  ;;  %v680_v48 = vadd.f32 %v679_v38, %v617_v37  ;;  %v899_v49 = vpop.f32.mrb[17].mxu1  ;;  %v1506_v50 = vpop.f32.mrb[18].mxu0 }
 0x118   :  { %1106 = vst [vmem:[%s2330_s5 + $0x80] sm:$0xff] %v899_v49  ;;  %v1169_v51 = vadd.f32 %v1168_v45, %v899_v49  ;;  %v1240_v52 = vmul.f32 %v899_v49, %v899_v49  ;;  %v1302_v53 = vadd.f32 %v1301_v42, %v1239_v41  ;;  %487 = vst [vmem:[%s2329_s3 + $0x98] sm:$0xff] %v1506_v50  ;;  %v1586_v54 = vpop.f32.mrb[18].mxu1  ;;  %v280_v55 = vpop.f32.mrb[19].mxu0 }
 0x119   :  { %v681_v56 = vadd.f32 %v680_v48, %v618_v47  ;;  %1109 = vst [vmem:[%s2330_s5 + $0x98] sm:$0xff] %v1586_v54  ;;  %485 = vst [vmem:[%s2329_s3 + $0x88] sm:$0xff] %v280_v55  ;;  %v548_v57 = vadd.f32 %v547_v46, %v280_v55  ;;  %v619_v58 = vmul.f32 %v280_v55, %v280_v55  ;;  %v902_v59 = vpop.f32.mrb[19].mxu1 }
 0x11a   :  { %v1303_v60 = vadd.f32 %v1302_v53, %v1240_v52  ;;  %1107 = vst [vmem:[%s2330_s5 + $0x88] sm:$0xff] %v902_v59  ;;  %v1170_v61 = vadd.f32 %v1169_v51, %v902_v59  ;;  %v1241_v62 = vmul.f32 %v902_v59, %v902_v59  ;;  %v1242_v2 = vmul.f32 %v1585_v43, %v1585_v43 }
 0x11b   :  { %v549_v0 = vadd.f32 %v1505_v39, %v548_v57  ;;  %v682_v1 = vadd.f32 %v681_v56, %v619_v58  ;;  %v621_v5 = vmul.f32 %v1506_v50, %v1506_v50  ;;  %v1243_v9 = vmul.f32 %v1586_v54, %v1586_v54 }
 0x11c   :  { %v1171_v3 = vadd.f32 %v1585_v43, %v1170_v61  ;;  %v1304_v4 = vadd.f32 %v1303_v60, %v1241_v62 }
 0x11d   :  { %v683_v6 = vadd.f32 %v682_v1, %v620_v63  ;;  %v1509_v7 = vpop.f32.mrb[20].mxu0  ;;  %v550_v8 = vadd.f32 %v1506_v50, %v549_v0 }
 0x11e   :  { %v1305_v10 = vadd.f32 %v1304_v4, %v1242_v2  ;;  %490 = vst [vmem:[%s2329_s3 + $0xb0] sm:$0xff] %v1509_v7  ;;  %v1589_v11 = vpop.f32.mrb[20].mxu1  ;;  %v293_v12 = vpop.f32.mrb[21].mxu0  ;;  %v1172_v13 = vadd.f32 %v1586_v54, %v1171_v3  ;;  %v624_v31 = vmul.f32 %v1509_v7, %v1509_v7 }
 0x11f   :  { %1112 = vst [vmem:[%s2330_s5 + $0xb0] sm:$0xff] %v1589_v11  ;;  %488 = vst [vmem:[%s2329_s3 + $0xa0] sm:$0xff] %v293_v12  ;;  %v551_v14 = vadd.f32 %v550_v8, %v293_v12  ;;  %v622_v15 = vmul.f32 %v293_v12, %v293_v12  ;;  %v684_v16 = vadd.f32 %v683_v6, %v621_v5  ;;  %v915_v17 = vpop.f32.mrb[21].mxu1  ;;  %v1510_v18 = vpop.f32.mrb[22].mxu0 }
 0x120   :  { %1110 = vst [vmem:[%s2330_s5 + $0xa0] sm:$0xff] %v915_v17  ;;  %v1173_v19 = vadd.f32 %v1172_v13, %v915_v17  ;;  %v1244_v20 = vmul.f32 %v915_v17, %v915_v17  ;;  %v1306_v21 = vadd.f32 %v1305_v10, %v1243_v9  ;;  %491 = vst [vmem:[%s2329_s3 + $0xb8] sm:$0xff] %v1510_v18  ;;  %v1590_v22 = vpop.f32.mrb[22].mxu1  ;;  %v296_v23 = vpop.f32.mrb[23].mxu0 }
 0x121   :  { %v685_v24 = vadd.f32 %v684_v16, %v622_v15  ;;  %1113 = vst [vmem:[%s2330_s5 + $0xb8] sm:$0xff] %v1590_v22  ;;  %489 = vst [vmem:[%s2329_s3 + $0xa8] sm:$0xff] %v296_v23  ;;  %v552_v25 = vadd.f32 %v551_v14, %v296_v23  ;;  %v623_v26 = vmul.f32 %v296_v23, %v296_v23  ;;  %v918_v27 = vpop.f32.mrb[23].mxu1 }
 0x122   :  { %v1307_v28 = vadd.f32 %v1306_v21, %v1244_v20  ;;  %1111 = vst [vmem:[%s2330_s5 + $0xa8] sm:$0xff] %v918_v27  ;;  %v1174_v29 = vadd.f32 %v1173_v19, %v918_v27  ;;  %v1245_v30 = vmul.f32 %v918_v27, %v918_v27  ;;  %v1246_v34 = vmul.f32 %v1589_v11, %v1589_v11 }
 0x123   :  { %v553_v32 = vadd.f32 %v1509_v7, %v552_v25  ;;  %v686_v33 = vadd.f32 %v685_v24, %v623_v26  ;;  %v625_v37 = vmul.f32 %v1510_v18, %v1510_v18  ;;  %v1247_v41 = vmul.f32 %v1590_v22, %v1590_v22 }
 0x124   :  { %v1175_v35 = vadd.f32 %v1589_v11, %v1174_v29  ;;  %v1308_v36 = vadd.f32 %v1307_v28, %v1245_v30 }
 0x125   :  { %v687_v38 = vadd.f32 %v686_v33, %v624_v31  ;;  %v1513_v39 = vpop.f32.mrb[24].mxu0  ;;  %v554_v40 = vadd.f32 %v1510_v18, %v553_v32 }
 0x126   :  { %v1309_v42 = vadd.f32 %v1308_v36, %v1246_v34  ;;  %494 = vst [vmem:[%s2329_s3 + $0xd0] sm:$0xff] %v1513_v39  ;;  %v1593_v43 = vpop.f32.mrb[24].mxu1  ;;  %v309_v44 = vpop.f32.mrb[25].mxu0  ;;  %v1176_v45 = vadd.f32 %v1590_v22, %v1175_v35  ;;  %v628_v63 = vmul.f32 %v1513_v39, %v1513_v39 }
 0x127   :  { %1116 = vst [vmem:[%s2330_s5 + $0xd0] sm:$0xff] %v1593_v43  ;;  %492 = vst [vmem:[%s2329_s3 + $0xc0] sm:$0xff] %v309_v44  ;;  %v555_v46 = vadd.f32 %v554_v40, %v309_v44  ;;  %v626_v47 = vmul.f32 %v309_v44, %v309_v44  ;;  %v688_v48 = vadd.f32 %v687_v38, %v625_v37  ;;  %v931_v49 = vpop.f32.mrb[25].mxu1  ;;  %v1514_v50 = vpop.f32.mrb[26].mxu0 }
 0x128   :  { %1114 = vst [vmem:[%s2330_s5 + $0xc0] sm:$0xff] %v931_v49  ;;  %v1177_v51 = vadd.f32 %v1176_v45, %v931_v49  ;;  %v1248_v52 = vmul.f32 %v931_v49, %v931_v49  ;;  %v1310_v53 = vadd.f32 %v1309_v42, %v1247_v41  ;;  %495 = vst [vmem:[%s2329_s3 + $0xd8] sm:$0xff] %v1514_v50  ;;  %v1594_v54 = vpop.f32.mrb[26].mxu1  ;;  %v312_v55 = vpop.f32.mrb[27].mxu0 }
 0x129   :  { %v689_v56 = vadd.f32 %v688_v48, %v626_v47  ;;  %1117 = vst [vmem:[%s2330_s5 + $0xd8] sm:$0xff] %v1594_v54  ;;  %493 = vst [vmem:[%s2329_s3 + $0xc8] sm:$0xff] %v312_v55  ;;  %v556_v57 = vadd.f32 %v555_v46, %v312_v55  ;;  %v627_v58 = vmul.f32 %v312_v55, %v312_v55  ;;  %v934_v59 = vpop.f32.mrb[27].mxu1 }
 0x12a   :  { %v1311_v60 = vadd.f32 %v1310_v53, %v1248_v52  ;;  %1115 = vst [vmem:[%s2330_s5 + $0xc8] sm:$0xff] %v934_v59  ;;  %v1178_v61 = vadd.f32 %v1177_v51, %v934_v59  ;;  %v1249_v62 = vmul.f32 %v934_v59, %v934_v59  ;;  %v1250_v2 = vmul.f32 %v1593_v43, %v1593_v43 }
 0x12b   :  { %v557_v0 = vadd.f32 %v1513_v39, %v556_v57  ;;  %v690_v1 = vadd.f32 %v689_v56, %v627_v58  ;;  %v629_v5 = vmul.f32 %v1514_v50, %v1514_v50  ;;  %v1251_v9 = vmul.f32 %v1594_v54, %v1594_v54 }
 0x12c   :  { %v1179_v3 = vadd.f32 %v1593_v43, %v1178_v61  ;;  %v1312_v4 = vadd.f32 %v1311_v60, %v1249_v62 }
 0x12d   :  { %v691_v6 = vadd.f32 %v690_v1, %v628_v63  ;;  %v1517_v7 = vpop.f32.mrb[28].mxu0  ;;  %v558_v8 = vadd.f32 %v1514_v50, %v557_v0 }
 0x12e   :  { %v1313_v10 = vadd.f32 %v1312_v4, %v1250_v2  ;;  %498 = vst [vmem:[%s2329_s3 + $0xf0] sm:$0xff] %v1517_v7  ;;  %v1597_v11 = vpop.f32.mrb[28].mxu1  ;;  %v325_v12 = vpop.f32.mrb[29].mxu0  ;;  %v1180_v13 = vadd.f32 %v1594_v54, %v1179_v3  ;;  %v632_v31 = vmul.f32 %v1517_v7, %v1517_v7 }
 0x12f   :  { %1120 = vst [vmem:[%s2330_s5 + $0xf0] sm:$0xff] %v1597_v11  ;;  %496 = vst [vmem:[%s2329_s3 + $0xe0] sm:$0xff] %v325_v12  ;;  %v559_v14 = vadd.f32 %v558_v8, %v325_v12  ;;  %v630_v15 = vmul.f32 %v325_v12, %v325_v12  ;;  %v692_v16 = vadd.f32 %v691_v6, %v629_v5  ;;  %v947_v17 = vpop.f32.mrb[29].mxu1  ;;  %v1518_v18 = vpop.f32.mrb[30].mxu0 }
 0x130   :  { %1118 = vst [vmem:[%s2330_s5 + $0xe0] sm:$0xff] %v947_v17  ;;  %v1181_v19 = vadd.f32 %v1180_v13, %v947_v17  ;;  %v1252_v20 = vmul.f32 %v947_v17, %v947_v17  ;;  %v1314_v21 = vadd.f32 %v1313_v10, %v1251_v9  ;;  %499 = vst [vmem:[%s2329_s3 + $0xf8] sm:$0xff] %v1518_v18  ;;  %v1598_v22 = vpop.f32.mrb[30].mxu1  ;;  %v328_v23 = vpop.f32.mrb[31].mxu0 }
 0x131   :  { %v693_v24 = vadd.f32 %v692_v16, %v630_v15  ;;  %1121 = vst [vmem:[%s2330_s5 + $0xf8] sm:$0xff] %v1598_v22  ;;  %497 = vst [vmem:[%s2329_s3 + $0xe8] sm:$0xff] %v328_v23  ;;  %v560_v25 = vadd.f32 %v559_v14, %v328_v23  ;;  %v631_v26 = vmul.f32 %v328_v23, %v328_v23  ;;  %v950_v27 = vpop.f32.mrb[31].mxu1 }
 0x132   :  { %v1315_v28 = vadd.f32 %v1314_v21, %v1252_v20  ;;  %1119 = vst [vmem:[%s2330_s5 + $0xe8] sm:$0xff] %v950_v27  ;;  %v1182_v29 = vadd.f32 %v1181_v19, %v950_v27  ;;  %v1253_v30 = vmul.f32 %v950_v27, %v950_v27  ;;  %v1254_v34 = vmul.f32 %v1597_v11, %v1597_v11 }
 0x133   :  { %v561_v32 = vadd.f32 %v1517_v7, %v560_v25  ;;  %v694_v33 = vadd.f32 %v693_v24, %v631_v26  ;;  %v633_v37 = vmul.f32 %v1518_v18, %v1518_v18  ;;  %v1255_v41 = vmul.f32 %v1598_v22, %v1598_v22 }
 0x134   :  { %v1183_v35 = vadd.f32 %v1597_v11, %v1182_v29  ;;  %v1316_v36 = vadd.f32 %v1315_v28, %v1253_v30 }
 0x135   :  { %v695_v38 = vadd.f32 %v694_v33, %v632_v31  ;;  %v1521_v39 = vpop.f32.mrb[32].mxu0  ;;  %v562_v40 = vadd.f32 %v1518_v18, %v561_v32 }
 0x136   :  { %v1317_v42 = vadd.f32 %v1316_v36, %v1254_v34  ;;  %502 = vst [vmem:[%s2329_s3 + $0x110] sm:$0xff] %v1521_v39  ;;  %v1601_v43 = vpop.f32.mrb[32].mxu1  ;;  %v341_v44 = vpop.f32.mrb[33].mxu0  ;;  %v1184_v45 = vadd.f32 %v1598_v22, %v1183_v35  ;;  %v636_v63 = vmul.f32 %v1521_v39, %v1521_v39 }
 0x137   :  { %1124 = vst [vmem:[%s2330_s5 + $0x110] sm:$0xff] %v1601_v43  ;;  %500 = vst [vmem:[%s2329_s3 + $0x100] sm:$0xff] %v341_v44  ;;  %v563_v46 = vadd.f32 %v562_v40, %v341_v44  ;;  %v634_v47 = vmul.f32 %v341_v44, %v341_v44  ;;  %v696_v48 = vadd.f32 %v695_v38, %v633_v37  ;;  %v963_v49 = vpop.f32.mrb[33].mxu1  ;;  %v1522_v50 = vpop.f32.mrb[34].mxu0 }
 0x138   :  { %1122 = vst [vmem:[%s2330_s5 + $0x100] sm:$0xff] %v963_v49  ;;  %v1185_v51 = vadd.f32 %v1184_v45, %v963_v49  ;;  %v1256_v52 = vmul.f32 %v963_v49, %v963_v49  ;;  %v1318_v53 = vadd.f32 %v1317_v42, %v1255_v41  ;;  %503 = vst [vmem:[%s2329_s3 + $0x118] sm:$0xff] %v1522_v50  ;;  %v1602_v54 = vpop.f32.mrb[34].mxu1  ;;  %v344_v55 = vpop.f32.mrb[35].mxu0 }
 0x139   :  { %v697_v56 = vadd.f32 %v696_v48, %v634_v47  ;;  %1125 = vst [vmem:[%s2330_s5 + $0x118] sm:$0xff] %v1602_v54  ;;  %501 = vst [vmem:[%s2329_s3 + $0x108] sm:$0xff] %v344_v55  ;;  %v564_v57 = vadd.f32 %v563_v46, %v344_v55  ;;  %v635_v58 = vmul.f32 %v344_v55, %v344_v55  ;;  %v966_v59 = vpop.f32.mrb[35].mxu1 }
 0x13a   :  { %v1319_v60 = vadd.f32 %v1318_v53, %v1256_v52  ;;  %1123 = vst [vmem:[%s2330_s5 + $0x108] sm:$0xff] %v966_v59  ;;  %v1186_v61 = vadd.f32 %v1185_v51, %v966_v59  ;;  %v1257_v62 = vmul.f32 %v966_v59, %v966_v59  ;;  %v1258_v2 = vmul.f32 %v1601_v43, %v1601_v43 }
 0x13b   :  { %v565_v0 = vadd.f32 %v1521_v39, %v564_v57  ;;  %v698_v1 = vadd.f32 %v697_v56, %v635_v58  ;;  %v637_v5 = vmul.f32 %v1522_v50, %v1522_v50  ;;  %v1259_v9 = vmul.f32 %v1602_v54, %v1602_v54 }
 0x13c   :  { %v1187_v3 = vadd.f32 %v1601_v43, %v1186_v61  ;;  %v1320_v4 = vadd.f32 %v1319_v60, %v1257_v62 }
 0x13d   :  { %v699_v6 = vadd.f32 %v698_v1, %v636_v63  ;;  %v1525_v7 = vpop.f32.mrb[36].mxu0  ;;  %v566_v8 = vadd.f32 %v1522_v50, %v565_v0 }
 0x13e   :  { %v1321_v10 = vadd.f32 %v1320_v4, %v1258_v2  ;;  %506 = vst [vmem:[%s2329_s3 + $0x130] sm:$0xff] %v1525_v7  ;;  %v1605_v11 = vpop.f32.mrb[36].mxu1  ;;  %v357_v12 = vpop.f32.mrb[37].mxu0  ;;  %v1188_v13 = vadd.f32 %v1602_v54, %v1187_v3  ;;  %v640_v31 = vmul.f32 %v1525_v7, %v1525_v7 }
 0x13f   :  { %1128 = vst [vmem:[%s2330_s5 + $0x130] sm:$0xff] %v1605_v11  ;;  %504 = vst [vmem:[%s2329_s3 + $0x120] sm:$0xff] %v357_v12  ;;  %v567_v14 = vadd.f32 %v566_v8, %v357_v12  ;;  %v638_v15 = vmul.f32 %v357_v12, %v357_v12  ;;  %v700_v16 = vadd.f32 %v699_v6, %v637_v5  ;;  %v979_v17 = vpop.f32.mrb[37].mxu1  ;;  %v1526_v18 = vpop.f32.mrb[38].mxu0 }
 0x140   :  { %1126 = vst [vmem:[%s2330_s5 + $0x120] sm:$0xff] %v979_v17  ;;  %v1189_v19 = vadd.f32 %v1188_v13, %v979_v17  ;;  %v1260_v20 = vmul.f32 %v979_v17, %v979_v17  ;;  %v1322_v21 = vadd.f32 %v1321_v10, %v1259_v9  ;;  %507 = vst [vmem:[%s2329_s3 + $0x138] sm:$0xff] %v1526_v18  ;;  %v1606_v22 = vpop.f32.mrb[38].mxu1  ;;  %v360_v23 = vpop.f32.mrb[39].mxu0 }
 0x141   :  { %v701_v24 = vadd.f32 %v700_v16, %v638_v15  ;;  %1129 = vst [vmem:[%s2330_s5 + $0x138] sm:$0xff] %v1606_v22  ;;  %505 = vst [vmem:[%s2329_s3 + $0x128] sm:$0xff] %v360_v23  ;;  %v568_v25 = vadd.f32 %v567_v14, %v360_v23  ;;  %v639_v26 = vmul.f32 %v360_v23, %v360_v23  ;;  %v982_v27 = vpop.f32.mrb[39].mxu1 }
 0x142   :  { %v1323_v28 = vadd.f32 %v1322_v21, %v1260_v20  ;;  %1127 = vst [vmem:[%s2330_s5 + $0x128] sm:$0xff] %v982_v27  ;;  %v1190_v29 = vadd.f32 %v1189_v19, %v982_v27  ;;  %v1261_v30 = vmul.f32 %v982_v27, %v982_v27  ;;  %v1262_v34 = vmul.f32 %v1605_v11, %v1605_v11 }
 0x143   :  { %v569_v32 = vadd.f32 %v1525_v7, %v568_v25  ;;  %v702_v33 = vadd.f32 %v701_v24, %v639_v26  ;;  %v641_v37 = vmul.f32 %v1526_v18, %v1526_v18  ;;  %v1263_v41 = vmul.f32 %v1606_v22, %v1606_v22 }
 0x144   :  { %v1191_v35 = vadd.f32 %v1605_v11, %v1190_v29  ;;  %v1324_v36 = vadd.f32 %v1323_v28, %v1261_v30 }
 0x145   :  { %v703_v38 = vadd.f32 %v702_v33, %v640_v31  ;;  %v1529_v39 = vpop.f32.mrb[40].mxu0  ;;  %v570_v40 = vadd.f32 %v1526_v18, %v569_v32 }
 0x146   :  { %v1325_v42 = vadd.f32 %v1324_v36, %v1262_v34  ;;  %510 = vst [vmem:[%s2329_s3 + $0x150] sm:$0xff] %v1529_v39  ;;  %v1609_v43 = vpop.f32.mrb[40].mxu1  ;;  %v373_v44 = vpop.f32.mrb[41].mxu0  ;;  %v1192_v45 = vadd.f32 %v1606_v22, %v1191_v35  ;;  %v644_v63 = vmul.f32 %v1529_v39, %v1529_v39 }
 0x147   :  { %1132 = vst [vmem:[%s2330_s5 + $0x150] sm:$0xff] %v1609_v43  ;;  %508 = vst [vmem:[%s2329_s3 + $0x140] sm:$0xff] %v373_v44  ;;  %v571_v46 = vadd.f32 %v570_v40, %v373_v44  ;;  %v642_v47 = vmul.f32 %v373_v44, %v373_v44  ;;  %v704_v48 = vadd.f32 %v703_v38, %v641_v37  ;;  %v995_v49 = vpop.f32.mrb[41].mxu1  ;;  %v1530_v50 = vpop.f32.mrb[42].mxu0 }
 0x148   :  { %1130 = vst [vmem:[%s2330_s5 + $0x140] sm:$0xff] %v995_v49  ;;  %v1193_v51 = vadd.f32 %v1192_v45, %v995_v49  ;;  %v1264_v52 = vmul.f32 %v995_v49, %v995_v49  ;;  %v1326_v53 = vadd.f32 %v1325_v42, %v1263_v41  ;;  %511 = vst [vmem:[%s2329_s3 + $0x158] sm:$0xff] %v1530_v50  ;;  %v1610_v54 = vpop.f32.mrb[42].mxu1  ;;  %v376_v55 = vpop.f32.mrb[43].mxu0 }
 0x149   :  { %v705_v56 = vadd.f32 %v704_v48, %v642_v47  ;;  %1133 = vst [vmem:[%s2330_s5 + $0x158] sm:$0xff] %v1610_v54  ;;  %509 = vst [vmem:[%s2329_s3 + $0x148] sm:$0xff] %v376_v55  ;;  %v572_v57 = vadd.f32 %v571_v46, %v376_v55  ;;  %v643_v58 = vmul.f32 %v376_v55, %v376_v55  ;;  %v998_v59 = vpop.f32.mrb[43].mxu1 }
 0x14a   :  { %v1327_v60 = vadd.f32 %v1326_v53, %v1264_v52  ;;  %1131 = vst [vmem:[%s2330_s5 + $0x148] sm:$0xff] %v998_v59  ;;  %v1194_v61 = vadd.f32 %v1193_v51, %v998_v59  ;;  %v1265_v62 = vmul.f32 %v998_v59, %v998_v59  ;;  %v1266_v2 = vmul.f32 %v1609_v43, %v1609_v43 }
 0x14b   :  { %v573_v0 = vadd.f32 %v1529_v39, %v572_v57  ;;  %v706_v1 = vadd.f32 %v705_v56, %v643_v58  ;;  %v645_v5 = vmul.f32 %v1530_v50, %v1530_v50  ;;  %v1267_v9 = vmul.f32 %v1610_v54, %v1610_v54 }
 0x14c   :  { %v1195_v3 = vadd.f32 %v1609_v43, %v1194_v61  ;;  %v1328_v4 = vadd.f32 %v1327_v60, %v1265_v62 }
 0x14d   :  { %v707_v6 = vadd.f32 %v706_v1, %v644_v63  ;;  %v1533_v7 = vpop.f32.mrb[44].mxu0  ;;  %v574_v8 = vadd.f32 %v1530_v50, %v573_v0 }
 0x14e   :  { %v1329_v10 = vadd.f32 %v1328_v4, %v1266_v2  ;;  %514 = vst [vmem:[%s2329_s3 + $0x170] sm:$0xff] %v1533_v7  ;;  %v1613_v11 = vpop.f32.mrb[44].mxu1  ;;  %v389_v12 = vpop.f32.mrb[45].mxu0  ;;  %v1196_v13 = vadd.f32 %v1610_v54, %v1195_v3  ;;  %v648_v31 = vmul.f32 %v1533_v7, %v1533_v7 }
 0x14f   :  { %1136 = vst [vmem:[%s2330_s5 + $0x170] sm:$0xff] %v1613_v11  ;;  %512 = vst [vmem:[%s2329_s3 + $0x160] sm:$0xff] %v389_v12  ;;  %v575_v14 = vadd.f32 %v574_v8, %v389_v12  ;;  %v646_v15 = vmul.f32 %v389_v12, %v389_v12  ;;  %v708_v16 = vadd.f32 %v707_v6, %v645_v5  ;;  %v1011_v17 = vpop.f32.mrb[45].mxu1  ;;  %v1534_v18 = vpop.f32.mrb[46].mxu0 }
 0x150   :  { %1134 = vst [vmem:[%s2330_s5 + $0x160] sm:$0xff] %v1011_v17  ;;  %v1197_v19 = vadd.f32 %v1196_v13, %v1011_v17  ;;  %v1268_v20 = vmul.f32 %v1011_v17, %v1011_v17  ;;  %v1330_v21 = vadd.f32 %v1329_v10, %v1267_v9  ;;  %515 = vst [vmem:[%s2329_s3 + $0x178] sm:$0xff] %v1534_v18  ;;  %v1614_v22 = vpop.f32.mrb[46].mxu1  ;;  %v392_v23 = vpop.f32.mrb[47].mxu0 }
 0x151   :  { %v709_v24 = vadd.f32 %v708_v16, %v646_v15  ;;  %1137 = vst [vmem:[%s2330_s5 + $0x178] sm:$0xff] %v1614_v22  ;;  %513 = vst [vmem:[%s2329_s3 + $0x168] sm:$0xff] %v392_v23  ;;  %v576_v25 = vadd.f32 %v575_v14, %v392_v23  ;;  %v647_v26 = vmul.f32 %v392_v23, %v392_v23  ;;  %v1014_v27 = vpop.f32.mrb[47].mxu1 }
 0x152   :  { %v1331_v28 = vadd.f32 %v1330_v21, %v1268_v20  ;;  %1135 = vst [vmem:[%s2330_s5 + $0x168] sm:$0xff] %v1014_v27  ;;  %v1198_v29 = vadd.f32 %v1197_v19, %v1014_v27  ;;  %v1269_v30 = vmul.f32 %v1014_v27, %v1014_v27  ;;  %v1270_v34 = vmul.f32 %v1613_v11, %v1613_v11 }
 0x153   :  { %v577_v32 = vadd.f32 %v1533_v7, %v576_v25  ;;  %v710_v33 = vadd.f32 %v709_v24, %v647_v26  ;;  %v649_v37 = vmul.f32 %v1534_v18, %v1534_v18  ;;  %v1271_v41 = vmul.f32 %v1614_v22, %v1614_v22 }
 0x154   :  { %v1199_v35 = vadd.f32 %v1613_v11, %v1198_v29  ;;  %v1332_v36 = vadd.f32 %v1331_v28, %v1269_v30 }
 0x155   :  { %v711_v38 = vadd.f32 %v710_v33, %v648_v31  ;;  %v1537_v39 = vpop.f32.mrb[48].mxu0  ;;  %v578_v40 = vadd.f32 %v1534_v18, %v577_v32 }
 0x156   :  { %v1333_v42 = vadd.f32 %v1332_v36, %v1270_v34  ;;  %518 = vst [vmem:[%s2329_s3 + $0x190] sm:$0xff] %v1537_v39  ;;  %v1617_v43 = vpop.f32.mrb[48].mxu1  ;;  %v405_v44 = vpop.f32.mrb[49].mxu0  ;;  %v1200_v45 = vadd.f32 %v1614_v22, %v1199_v35  ;;  %v652_v63 = vmul.f32 %v1537_v39, %v1537_v39 }
 0x157   :  { %1140 = vst [vmem:[%s2330_s5 + $0x190] sm:$0xff] %v1617_v43  ;;  %516 = vst [vmem:[%s2329_s3 + $0x180] sm:$0xff] %v405_v44  ;;  %v579_v46 = vadd.f32 %v578_v40, %v405_v44  ;;  %v650_v47 = vmul.f32 %v405_v44, %v405_v44  ;;  %v712_v48 = vadd.f32 %v711_v38, %v649_v37  ;;  %v1027_v49 = vpop.f32.mrb[49].mxu1  ;;  %v1538_v50 = vpop.f32.mrb[50].mxu0 }
 0x158   :  { %1138 = vst [vmem:[%s2330_s5 + $0x180] sm:$0xff] %v1027_v49  ;;  %v1201_v51 = vadd.f32 %v1200_v45, %v1027_v49  ;;  %v1272_v52 = vmul.f32 %v1027_v49, %v1027_v49  ;;  %v1334_v53 = vadd.f32 %v1333_v42, %v1271_v41  ;;  %519 = vst [vmem:[%s2329_s3 + $0x198] sm:$0xff] %v1538_v50  ;;  %v1618_v54 = vpop.f32.mrb[50].mxu1  ;;  %v408_v55 = vpop.f32.mrb[51].mxu0 }
 0x159   :  { %v713_v56 = vadd.f32 %v712_v48, %v650_v47  ;;  %1141 = vst [vmem:[%s2330_s5 + $0x198] sm:$0xff] %v1618_v54  ;;  %517 = vst [vmem:[%s2329_s3 + $0x188] sm:$0xff] %v408_v55  ;;  %v580_v57 = vadd.f32 %v579_v46, %v408_v55  ;;  %v651_v58 = vmul.f32 %v408_v55, %v408_v55  ;;  %v1030_v59 = vpop.f32.mrb[51].mxu1 }
 0x15a   :  { %v1335_v60 = vadd.f32 %v1334_v53, %v1272_v52  ;;  %1139 = vst [vmem:[%s2330_s5 + $0x188] sm:$0xff] %v1030_v59  ;;  %v1202_v61 = vadd.f32 %v1201_v51, %v1030_v59  ;;  %v1273_v62 = vmul.f32 %v1030_v59, %v1030_v59  ;;  %v1274_v2 = vmul.f32 %v1617_v43, %v1617_v43 }
 0x15b   :  { %v581_v0 = vadd.f32 %v1537_v39, %v580_v57  ;;  %v714_v1 = vadd.f32 %v713_v56, %v651_v58  ;;  %v653_v5 = vmul.f32 %v1538_v50, %v1538_v50  ;;  %v1275_v9 = vmul.f32 %v1618_v54, %v1618_v54 }
 0x15c   :  { %v1203_v3 = vadd.f32 %v1617_v43, %v1202_v61  ;;  %v1336_v4 = vadd.f32 %v1335_v60, %v1273_v62 }
 0x15d   :  { %v715_v6 = vadd.f32 %v714_v1, %v652_v63  ;;  %v1541_v7 = vpop.f32.mrb[52].mxu0  ;;  %v582_v8 = vadd.f32 %v1538_v50, %v581_v0 }
 0x15e   :  { %v1337_v10 = vadd.f32 %v1336_v4, %v1274_v2  ;;  %522 = vst [vmem:[%s2329_s3 + $0x1b0] sm:$0xff] %v1541_v7  ;;  %v1621_v11 = vpop.f32.mrb[52].mxu1  ;;  %v421_v12 = vpop.f32.mrb[53].mxu0  ;;  %v1204_v13 = vadd.f32 %v1618_v54, %v1203_v3  ;;  %v656_v31 = vmul.f32 %v1541_v7, %v1541_v7 }
 0x15f   :  { %1144 = vst [vmem:[%s2330_s5 + $0x1b0] sm:$0xff] %v1621_v11  ;;  %520 = vst [vmem:[%s2329_s3 + $0x1a0] sm:$0xff] %v421_v12  ;;  %v583_v14 = vadd.f32 %v582_v8, %v421_v12  ;;  %v654_v15 = vmul.f32 %v421_v12, %v421_v12  ;;  %v716_v16 = vadd.f32 %v715_v6, %v653_v5  ;;  %v1043_v17 = vpop.f32.mrb[53].mxu1  ;;  %v1542_v18 = vpop.f32.mrb[54].mxu0 }
 0x160   :  { %1142 = vst [vmem:[%s2330_s5 + $0x1a0] sm:$0xff] %v1043_v17  ;;  %v1205_v19 = vadd.f32 %v1204_v13, %v1043_v17  ;;  %v1276_v20 = vmul.f32 %v1043_v17, %v1043_v17  ;;  %v1338_v21 = vadd.f32 %v1337_v10, %v1275_v9  ;;  %523 = vst [vmem:[%s2329_s3 + $0x1b8] sm:$0xff] %v1542_v18  ;;  %v1622_v22 = vpop.f32.mrb[54].mxu1  ;;  %v424_v23 = vpop.f32.mrb[55].mxu0 }
 0x161   :  { %v717_v24 = vadd.f32 %v716_v16, %v654_v15  ;;  %1145 = vst [vmem:[%s2330_s5 + $0x1b8] sm:$0xff] %v1622_v22  ;;  %521 = vst [vmem:[%s2329_s3 + $0x1a8] sm:$0xff] %v424_v23  ;;  %v584_v25 = vadd.f32 %v583_v14, %v424_v23  ;;  %v655_v26 = vmul.f32 %v424_v23, %v424_v23  ;;  %v1046_v27 = vpop.f32.mrb[55].mxu1 }
 0x162   :  { %v1339_v28 = vadd.f32 %v1338_v21, %v1276_v20  ;;  %1143 = vst [vmem:[%s2330_s5 + $0x1a8] sm:$0xff] %v1046_v27  ;;  %v1206_v29 = vadd.f32 %v1205_v19, %v1046_v27  ;;  %v1277_v30 = vmul.f32 %v1046_v27, %v1046_v27  ;;  %v1278_v34 = vmul.f32 %v1621_v11, %v1621_v11 }
 0x163   :  { %v585_v32 = vadd.f32 %v1541_v7, %v584_v25  ;;  %v718_v33 = vadd.f32 %v717_v24, %v655_v26  ;;  %v657_v37 = vmul.f32 %v1542_v18, %v1542_v18  ;;  %v1279_v41 = vmul.f32 %v1622_v22, %v1622_v22 }
 0x164   :  { %v1207_v35 = vadd.f32 %v1621_v11, %v1206_v29  ;;  %v1340_v36 = vadd.f32 %v1339_v28, %v1277_v30 }
 0x165   :  { %v719_v38 = vadd.f32 %v718_v33, %v656_v31  ;;  %v1545_v39 = vpop.f32.mrb[56].mxu0  ;;  %v586_v40 = vadd.f32 %v1542_v18, %v585_v32 }
 0x166   :  { %v1341_v42 = vadd.f32 %v1340_v36, %v1278_v34  ;;  %526 = vst [vmem:[%s2329_s3 + $0x1d0] sm:$0xff] %v1545_v39  ;;  %v1625_v43 = vpop.f32.mrb[56].mxu1  ;;  %v437_v44 = vpop.f32.mrb[57].mxu0  ;;  %v1208_v45 = vadd.f32 %v1622_v22, %v1207_v35  ;;  %v660_v63 = vmul.f32 %v1545_v39, %v1545_v39 }
 0x167   :  { %1148 = vst [vmem:[%s2330_s5 + $0x1d0] sm:$0xff] %v1625_v43  ;;  %524 = vst [vmem:[%s2329_s3 + $0x1c0] sm:$0xff] %v437_v44  ;;  %v587_v46 = vadd.f32 %v586_v40, %v437_v44  ;;  %v658_v47 = vmul.f32 %v437_v44, %v437_v44  ;;  %v720_v48 = vadd.f32 %v719_v38, %v657_v37  ;;  %v1059_v49 = vpop.f32.mrb[57].mxu1  ;;  %v1546_v50 = vpop.f32.mrb[58].mxu0 }
 0x168   :  { %1146 = vst [vmem:[%s2330_s5 + $0x1c0] sm:$0xff] %v1059_v49  ;;  %v1209_v51 = vadd.f32 %v1208_v45, %v1059_v49  ;;  %v1280_v52 = vmul.f32 %v1059_v49, %v1059_v49  ;;  %v1342_v53 = vadd.f32 %v1341_v42, %v1279_v41  ;;  %527 = vst [vmem:[%s2329_s3 + $0x1d8] sm:$0xff] %v1546_v50  ;;  %v1626_v54 = vpop.f32.mrb[58].mxu1  ;;  %v440_v55 = vpop.f32.mrb[59].mxu0 }
 0x169   :  { %v721_v56 = vadd.f32 %v720_v48, %v658_v47  ;;  %1149 = vst [vmem:[%s2330_s5 + $0x1d8] sm:$0xff] %v1626_v54  ;;  %525 = vst [vmem:[%s2329_s3 + $0x1c8] sm:$0xff] %v440_v55  ;;  %v588_v57 = vadd.f32 %v587_v46, %v440_v55  ;;  %v659_v58 = vmul.f32 %v440_v55, %v440_v55  ;;  %v1062_v59 = vpop.f32.mrb[59].mxu1 }
 0x16a   :  { %v1343_v60 = vadd.f32 %v1342_v53, %v1280_v52  ;;  %1147 = vst [vmem:[%s2330_s5 + $0x1c8] sm:$0xff] %v1062_v59  ;;  %v1210_v61 = vadd.f32 %v1209_v51, %v1062_v59  ;;  %v1281_v62 = vmul.f32 %v1062_v59, %v1062_v59  ;;  %v1282_v2 = vmul.f32 %v1625_v43, %v1625_v43 }
 0x16b   :  { %v589_v0 = vadd.f32 %v1545_v39, %v588_v57  ;;  %v722_v1 = vadd.f32 %v721_v56, %v659_v58  ;;  %v661_v5 = vmul.f32 %v1546_v50, %v1546_v50  ;;  %v1283_v9 = vmul.f32 %v1626_v54, %v1626_v54 }
 0x16c   :  { %v1211_v3 = vadd.f32 %v1625_v43, %v1210_v61  ;;  %v1344_v4 = vadd.f32 %v1343_v60, %v1281_v62 }
 0x16d   :  { %v723_v6 = vadd.f32 %v722_v1, %v660_v63  ;;  %v1549_v7 = vpop.f32.mrb[60].mxu0  ;;  %v590_v8 = vadd.f32 %v1546_v50, %v589_v0 }
 0x16e   :  { %v1345_v10 = vadd.f32 %v1344_v4, %v1282_v2  ;;  %530 = vst [vmem:[%s2329_s3 + $0x1f0] sm:$0xff] %v1549_v7  ;;  %v1629_v11 = vpop.f32.mrb[60].mxu1  ;;  %v453_v12 = vpop.f32.mrb[61].mxu0  ;;  %v1212_v13 = vadd.f32 %v1626_v54, %v1211_v3  ;;  %v664_v31 = vmul.f32 %v1549_v7, %v1549_v7 }
 0x16f   :  { %1152 = vst [vmem:[%s2330_s5 + $0x1f0] sm:$0xff] %v1629_v11  ;;  %528 = vst [vmem:[%s2329_s3 + $0x1e0] sm:$0xff] %v453_v12  ;;  %v591_v14 = vadd.f32 %v590_v8, %v453_v12  ;;  %v662_v15 = vmul.f32 %v453_v12, %v453_v12  ;;  %v724_v16 = vadd.f32 %v723_v6, %v661_v5  ;;  %v1075_v17 = vpop.f32.mrb[61].mxu1  ;;  %v1550_v18 = vpop.f32.mrb[62].mxu0 }
 0x170   :  { %1150 = vst [vmem:[%s2330_s5 + $0x1e0] sm:$0xff] %v1075_v17  ;;  %v1213_v19 = vadd.f32 %v1212_v13, %v1075_v17  ;;  %v1284_v20 = vmul.f32 %v1075_v17, %v1075_v17  ;;  %v1346_v21 = vadd.f32 %v1345_v10, %v1283_v9  ;;  %531 = vst [vmem:[%s2329_s3 + $0x1f8] sm:$0xff] %v1550_v18  ;;  %v1630_v22 = vpop.f32.mrb[62].mxu1  ;;  %v456_v23 = vpop.f32.mrb[63].mxu0 }
 0x171   :  { %v725_v24 = vadd.f32 %v724_v16, %v662_v15  ;;  %1153 = vst [vmem:[%s2330_s5 + $0x1f8] sm:$0xff] %v1630_v22  ;;  %529 = vst [vmem:[%s2329_s3 + $0x1e8] sm:$0xff] %v456_v23  ;;  %v592_v25 = vadd.f32 %v591_v14, %v456_v23  ;;  %v663_v26 = vmul.f32 %v456_v23, %v456_v23  ;;  %v1078_v27 = vpop.f32.mrb[63].mxu1 }
 0x172   :  { %v1347_v28 = vadd.f32 %v1346_v21, %v1284_v20  ;;  %1151 = vst [vmem:[%s2330_s5 + $0x1e8] sm:$0xff] %v1078_v27  ;;  %v1214_v29 = vadd.f32 %v1213_v19, %v1078_v27  ;;  %v1285_v30 = vmul.f32 %v1078_v27, %v1078_v27  ;;  %v1286_v34 = vmul.f32 %v1629_v11, %v1629_v11 }
 0x173   :  { %v593_v32 = vadd.f32 %v1549_v7, %v592_v25  ;;  %v726_v33 = vadd.f32 %v725_v24, %v663_v26  ;;  %v665_v37 = vmul.f32 %v1550_v18, %v1550_v18  ;;  %v1287_v40 = vmul.f32 %v1630_v22, %v1630_v22 }
 0x174   :  { %v1215_v35 = vadd.f32 %v1629_v11, %v1214_v29  ;;  %v1348_v36 = vadd.f32 %v1347_v28, %v1285_v30 }
 0x175   :  { %v594_v38 = vadd.f32 %v1550_v18, %v593_v32  ;;  %v727_v39 = vadd.f32 %v726_v33, %v664_v31 }
 0x176   :  { %v1216_v41 = vadd.f32 %v1630_v22, %v1215_v35  ;;  %v1349_v42 = vadd.f32 %v1348_v36, %v1286_v34 }
 0x177   :  { %v595_v43 = vrot.slane %v594_v38, 4  ;;  %v728_v44 = vadd.f32 %v727_v39, %v665_v37 }
 0x178   :  { %v1217_v45 = vrot.slane %v1216_v41, 4  ;;  %v1350_v46 = vadd.f32 %v1349_v42, %v1287_v40 }
 0x179   :  { %v596_v47 = vadd.f32 %v595_v43, %v594_v38  ;;  %v729_v48 = vrot.slane %v728_v44, 4 }
 0x17a   :  { %v1218_v49 = vadd.f32 %v1217_v45, %v1216_v41  ;;  %v1351_v50 = vrot.slane %v1350_v46, 4 }
 0x17b   :  { %v597_v51 = vrot.slane %v596_v47, 2  ;;  %v730_v52 = vadd.f32 %v729_v48, %v728_v44 }
 0x17c   :  { %v1219_v53 = vrot.slane %v1218_v49, 2  ;;  %v1352_v54 = vadd.f32 %v1351_v50, %v1350_v46 }
 0x17d   :  { %v598_v55 = vadd.f32 %v597_v51, %v596_v47  ;;  %v731_v56 = vrot.slane %v730_v52, 2 }
 0x17e   :  { %v1220_v57 = vadd.f32 %v1219_v53, %v1218_v49  ;;  %v1353_v58 = vrot.slane %v1352_v54, 2 }
 0x17f   :  { %v599_v59 = vrot.slane %v598_v55, 1  ;;  %v732_v60 = vadd.f32 %v731_v56, %v730_v52 }
 0x180   :  { %v1221_v61 = vrot.slane %v1220_v57, 1  ;;  %v1354_v62 = vadd.f32 %v1353_v58, %v1352_v54 }
 0x181   :  { %v600_v63 = vadd.f32 %v599_v59, %v598_v55  ;;  %v733_v0 = vrot.slane %v732_v60, 1 }
 0x182   :  { %v1222_v1 = vadd.f32 %v1221_v61, %v1220_v57  ;;  %v1355_v2 = vrot.slane %v1354_v62, 1 }
 0x183   :  { %601 = vst [vmem:[%s2331_s4] sm:$0x1] %v600_v63  ;;  %v734_v3 = vadd.f32 %v733_v0, %v732_v60 }
 0x184   :  { %1223 = vst [vmem:[%s2332_s6] sm:$0x1] %v1222_v1  ;;  %v1356_v4 = vadd.f32 %v1355_v2, %v1354_v62 }
 0x185   :  { %735 = vst [vmem:[%s2331_s4 + $0x1] sm:$0x1] %v734_v3 }
 0x186   :  { %1357 = vst [vmem:[%s2332_s6 + $0x1] sm:$0x1] %v1356_v4 }

// kernel: bottleneck_block.5
= control target key start
LH: loop header
LB: loop body
LE: loop exit
PB: predicated region body
PF: predicated region fallthrough
CT: control target
= control target key end

     0   :  { %s4668_s18 = smov 0   ;;  %s5984_s0 = inlined_call_operand.vmem [shape: f32[2,18,18,128], index: 0, kind: input, shape index: {}]   ;;  %s5985_s1 = inlined_call_operand.vmem [shape: bf16[3,3,128,128], index: 1, kind: input, shape index: {}]   ;;  %s5986_s2 = inlined_call_operand.vmem [shape: f32[18,18,128], index: 2, kind: input, shape index: {}]   ;;  %s5987_s3 = inlined_call_operand.vmem [shape: f32[18,18,128], index: 3, kind: input, shape index: {}]   ;;  %s5988_s4 = inlined_call_operand.vmem [shape: f32[2,256,128], index: 4, kind: output, shape index: {0}]   ;;  %s5989_s5 = inlined_call_operand.vmem [shape: f32[16,128], index: 5, kind: output, shape index: {1}]  }
   0x1 LB: > { %s3407_s19 = sadd.s32 4294967295, %s4635_s18   ;;  %p3411_p0 = scmp.ge.s32.totalorder %s4635_s18, 1  ;;  %s4635_s18 = sphi %s4668_s18, %s16_s18  }
   0x2   : > { %p190_p1 = scmp.lt.s32.totalorder %s4635_s18, 3 }
   0x4   : > { %p191_p2 = pnand %p3411_p0, %p190_p1 }
   0x6   : > { %194 = sbr.rel (%p191_p2) target bundleno = 572 (0x23c), region = 36 }
   0xd   : > { %v4549_v0 = vld [vmem:[%s5985_s1 + $0x40] sm:$0xff]   ;;  %p222_p3 = scmp.lt.s32.totalorder %s3407_s19, 1  ;;  %v4551_v2 = vld [vmem:[%s5985_s1 + $0x48] sm:$0xff]   ;;  %v4553_v4 = vld [vmem:[%s5985_s1 + $0x50] sm:$0xff]   ;;  %vm641_vm0 = vcmask 1046528   ;;  %vm1205_vm1 = vcmask 1045504  }
   0xe   : > { %v4550_v1 = vld [vmem:[%s5985_s1 + $0x100] sm:$0xff]   ;;  %3835 = vmatprep.subr.bf16.mxu1 %v4549_v0  ;;  %v4552_v3 = vld [vmem:[%s5985_s1 + $0x108] sm:$0xff]   ;;  %v4554_v5 = vld [vmem:[%s5985_s1 + $0x110] sm:$0xff]  }
   0xf   : > { %4027 = vmatprep.subr.bf16.mxu0 %v4550_v1  ;;  %3836 = vmatpush3.bf16.msra.mxu1 %v4549_v0  ;;  %s6053_s19 = smov (!%p222_p3, %s3407_s19), 1  ;;  %v4555_v6 = vld [vmem:[%s5985_s1 + $0x58] sm:$0xff]   ;;  %v4557_v8 = vld [vmem:[%s5985_s1 + $0x60] sm:$0xff]   ;;  %v4559_v10 = vld [vmem:[%s5985_s1 + $0x68] sm:$0xff]  }
  0x10   : > { %4028 = vmatpush3.bf16.msra.mxu0 %v4550_v1  ;;  %3837 = vmatprep.subr.bf16.mxu1 %v4551_v2  ;;  %v4556_v7 = vld [vmem:[%s5985_s1 + $0x118] sm:$0xff]   ;;  %s4539_s11 = smul.u32 432, %s6053_s19  ;;  %v4558_v9 = vld [vmem:[%s5985_s1 + $0x120] sm:$0xff]   ;;  %v4560_v11 = vld [vmem:[%s5985_s1 + $0x128] sm:$0xff]   ;;  %s3415_s24 = sshll.u32 %s6053_s19, 3 }
  0x11   : > { %4029 = vmatprep.subr.bf16.mxu0 %v4552_v3  ;;  %v291_v15 = vld [vmem:[%s5986_s2] sm:$0xff]  ;;  %v292_v16 = vld [vmem:[%s5986_s2 + $0x8] sm:$0xff]  ;;  %v293_v17 = vld [vmem:[%s5986_s2 + $0x10] sm:$0x3]  ;;  %s5923_s27 = scalar_lea.vmem %s5989_s5, %s3415_s24  ;;  %s3618_s28 = sshll.u32 %s6053_s19, 8 }
  0x12   : > { %s4712_s20 = scalar_lea.vmem %s5984_s0, %s4539_s11  ;;  %v4561_v18 = vld [vmem:[%s5985_s1 + $0x70] sm:$0xff]   ;;  %v399_v22 = vld [vmem:[%s5987_s3] sm:$0xff]  ;;  %v400_v23 = vld [vmem:[%s5987_s3 + $0x8] sm:$0xff]  ;;  %s5940_s6 = scalar_lea.vmem %s5988_s4, %s3618_s28 }
  0x13   : > { %3838 = vmatpush3.bf16.msra.mxu1 %v4551_v2  ;;  %v237_v12 = vld [vmem:[%s4712_s20] sm:$0xff]  ;;  %v238_v13 = vld [vmem:[%s4712_s20 + $0x8] sm:$0xff]  ;;  %v239_v14 = vld [vmem:[%s4712_s20 + $0x10] sm:$0x3] }
  0x14   : > { %4030 = vmatpush3.bf16.msra.mxu0 %v4552_v3  ;;  %3839 = vmatprep.subr.bf16.mxu1 %v4553_v4  ;;  %v345_v19 = vmul.f32 %v291_v15, %v237_v12  ;;  %v346_v20 = vmul.f32 %v292_v16, %v238_v13  ;;  %v347_v21 = vmul.f32 %v293_v17, %v239_v14  ;;  %v401_v24 = vld [vmem:[%s5987_s3 + $0x10] sm:$0x3]  ;;  %v240_v26 = vld [vmem:[%s4712_s20 + $0x18] sm:$0xff]  ;;  %v241_v27 = vld [vmem:[%s4712_s20 + $0x20] sm:$0xff] }
  0x15   : > { %4031 = vmatprep.subr.bf16.mxu0 %v4554_v5  ;;  %v4562_v25 = vld [vmem:[%s5985_s1 + $0x130] sm:$0xff]   ;;  %v242_v28 = vld [vmem:[%s4712_s20 + $0x28] sm:$0x3]  ;;  %v294_v32 = vld [vmem:[%s5986_s2 + $0x18] sm:$0xff] }
  0x16   : > { %v453_v29 = vadd.f32 %v399_v22, %v345_v19  ;;  %v454_v30 = vadd.f32 %v400_v23, %v346_v20  ;;  %v4750_v31 = vadd.f32 %v401_v24, %v347_v21  ;;  %v295_v33 = vld [vmem:[%s5986_s2 + $0x20] sm:$0xff]  ;;  %v296_v34 = vld [vmem:[%s5986_s2 + $0x28] sm:$0x3]  ;;  %v348_v35 = vmul.f32 %v294_v32, %v240_v26  ;;  %v402_v38 = vld [vmem:[%s5987_s3 + $0x18] sm:$0xff] }
  0x17   : > { %3840 = vmatpush3.bf16.msra.mxu1 %v4553_v4  ;;  %v349_v36 = vmul.f32 %v295_v33, %v241_v27  ;;  %v350_v37 = vmul.f32 %v296_v34, %v242_v28  ;;  %v403_v39 = vld [vmem:[%s5987_s3 + $0x20] sm:$0xff]  ;;  %v404_v40 = vld [vmem:[%s5987_s3 + $0x28] sm:$0x3]  ;;  %v4563_v41 = vld [vmem:[%s5985_s1 + $0x78] sm:$0xff]  }
  0x18   : > { %4032 = vmatpush3.bf16.msra.mxu0 %v4554_v5  ;;  %3841 = vmatprep.subr.bf16.mxu1 %v4555_v6  ;;  %v4773_v42 = vmax.f32 %v453_v29, 0.0  ;;  %v4775_v43 = vmax.f32 %v454_v30, 0.0  ;;  %v5990_v44 = vmax.f32 %v4750_v31, 0.0  ;;  %v4564_v45 = vld [vmem:[%s5985_s1 + $0x138] sm:$0xff]   ;;  %v456_v46 = vadd.f32 %v402_v38, %v348_v35  ;;  %v243_v49 = vld [vmem:[%s4712_s20 + $0x30] sm:$0xff]  ;;  %v4566_v15 = vld [vmem:[%s5985_s1 + $0x140] sm:$0xff]  }
  0x19   : > { %4033 = vmatprep.subr.bf16.mxu0 %v4556_v7  ;;  %v457_v47 = vadd.f32 %v403_v39, %v349_v36  ;;  %v4781_v48 = vadd.f32 %v404_v40, %v350_v37  ;;  %v244_v50 = vld [vmem:[%s4712_s20 + $0x38] sm:$0xff]  ;;  %v245_v54 = vld [vmem:[%s4712_s20 + $0x40] sm:$0x3]  ;;  %v297_v55 = vld [vmem:[%s5986_s2 + $0x30] sm:$0xff] }
  0x1a   : > { %v642_v51 = vrot.slane %v4773_v42, 1  ;;  %v643_v52 = vrot.slane %v4775_v43, 1  ;;  %v645_v53 = vrot.slane %v5990_v44, 1  ;;  %v510_v56 = vmax.f32 %v456_v46, 0.0  ;;  %v298_v59 = vld [vmem:[%s5986_s2 + $0x38] sm:$0xff]  ;;  %v405_v2 = vld [vmem:[%s5987_s3 + $0x30] sm:$0xff] }
  0x1b   : > { %3842 = vmatpush3.bf16.msra.mxu1 %v4555_v6  ;;  %v4793_v57 = vmax.f32 %v457_v47, 0.0  ;;  %v512_v58 = vmax.f32 %v4781_v48, 0.0  ;;  %v299_v60 = vld [vmem:[%s5986_s2 + $0x40] sm:$0x3]  ;;  %v351_v61 = vmul.f32 %v297_v55, %v243_v49  ;;  %v352_v0 = vmul.f32 %v298_v59, %v244_v50  ;;  %v406_v3 = vld [vmem:[%s5987_s3 + $0x38] sm:$0xff]  ;;  %v246_v16 = vld [vmem:[%s4712_s20 + $0x48] sm:$0xff] }
  0x1c   : > { %4034 = vmatpush3.bf16.msra.mxu0 %v4556_v7  ;;  %3843 = vmatprep.subr.bf16.mxu1 %v4557_v8  ;;  %v644_v62 = vsel %vm641_vm0, %v642_v51, %v643_v52  ;;  %v646_v63 = vsel %vm641_vm0, %v643_v52, %v645_v53  ;;  %v353_v1 = vmul.f32 %v299_v60, %v245_v54  ;;  %v407_v4 = vld [vmem:[%s5987_s3 + $0x40] sm:$0x3]  ;;  %v647_v6 = vrot.slane %v510_v56, 1  ;;  %v247_v17 = vld [vmem:[%s4712_s20 + $0x50] sm:$0xff]  ;;  %v248_v24 = vld [vmem:[%s4712_s20 + $0x58] sm:$0x3] }
  0x1d   : > { %4035 = vmatprep.subr.bf16.mxu0 %v4558_v9  ;;  %v754_v5 = vpack.c.bf16 %v646_v63, %v644_v62  ;;  %v648_v7 = vrot.slane %v4793_v57, 1  ;;  %v1212_v19 = vrot.slane %v4793_v57, 2  ;;  %v301_v26 = vld [vmem:[%s5986_s2 + $0x50] sm:$0xff]  ;;  %v302_v27 = vld [vmem:[%s5986_s2 + $0x58] sm:$0x3]  ;;  %v408_v29 = vld [vmem:[%s5987_s3 + $0x48] sm:$0xff]  ;;  %v4845_v30 = vpack.c.bf16 %v4793_v57, %v510_v56 }
  0x1e   : > { %v461_v12 = vadd.f32 %v407_v4, %v353_v1  ;;  %v409_v35 = vld [vmem:[%s5987_s3 + $0x50] sm:$0xff]  ;;  %v4568_v36 = vld [vmem:[%s5985_s1 + $0x8] sm:$0xff]   ;;  %v355_v39 = vmul.f32 %v301_v26, %v247_v17  ;;  %v356_v40 = vmul.f32 %v302_v27, %v248_v24  ;;  %v249_v50 = vld [vmem:[%s4712_s20 + $0x60] sm:$0xff]  ;;  %v1214_v53 = vrot.slane %v512_v58, 2 }
  0x1f   : > { %3844 = vmatpush3.bf16.msra.mxu1 %v4557_v8  ;;  %v650_v8 = vrot.slane %v512_v58, 1  ;;  %3851 = vmatprep.mubr.bf16.mxu1 %v754_v5  ;;  %v649_v13 = vsel %vm641_vm0, %v647_v6, %v648_v7  ;;  %v4567_v38 = vld [vmem:[%s5985_s1 + $0x148] sm:$0xff]   ;;  %v251_v52 = vld [vmem:[%s4712_s20 + $0x70] sm:$0x3]  ;;  %v303_v60 = vld [vmem:[%s5986_s2 + $0x60] sm:$0xff] }
  0x20   : > { %4036 = vmatpush3.bf16.msra.mxu0 %v4558_v9  ;;  %3845 = vmatprep.subr.bf16.mxu1 %v4559_v10  ;;  %v4565_v9 = vld [vmem:[%s5985_s1] sm:$0xff]   ;;  %v515_v23 = vmax.f32 %v461_v12, 0.0  ;;  %v250_v51 = vld [vmem:[%s4712_s20 + $0x68] sm:$0xff]  ;;  %v463_v55 = vadd.f32 %v409_v35, %v355_v39  ;;  %v305_v48 = vld [vmem:[%s5986_s2 + $0x70] sm:$0x3]  ;;  %v357_v58 = vmul.f32 %v303_v60, %v249_v50 }
  0x21   : > { %4037 = vmatprep.subr.bf16.mxu0 %v4560_v11  ;;  %v651_v14 = vsel %vm641_vm0, %v648_v7, %v650_v8  ;;  %v359_v63 = vmul.f32 %v305_v48, %v251_v52  ;;  %v412_v1 = vld [vmem:[%s5987_s3 + $0x68] sm:$0xff]  ;;  %v307_v26 = vld [vmem:[%s5986_s2 + $0x80] sm:$0xff]  ;;  %v256_v52 = vld [vmem:[%s4712_s20 + $0x98] sm:$0xff] }
  0x22   : > { %v755_v20 = vpack.c.bf16 %v651_v14, %v649_v13  ;;  %v655_v34 = vrot.slane %v515_v23, 1  ;;  %v4868_v49 = vrot.slane %v515_v23, 2  ;;  %v4902_v4 = vmax.f32 %v463_v55, 0.0  ;;  %v4569_v14 = vld [vmem:[%s5985_s1 + $0x150] sm:$0xff]   ;;  %v306_v23 = vld [vmem:[%s5986_s2 + $0x78] sm:$0xff]  ;;  %v415_v39 = vld [vmem:[%s5987_s3 + $0x80] sm:$0xff] }
  0x23   : > { %3846 = vmatpush3.bf16.msra.mxu1 %v4559_v10  ;;  %v459_v10 = vadd.f32 %v405_v2, %v351_v61  ;;  %v304_v61 = vld [vmem:[%s5986_s2 + $0x68] sm:$0xff]  ;;  %v413_v2 = vld [vmem:[%s5987_s3 + $0x70] sm:$0x3]  ;;  %v276_v44 = vld [vmem:[%s4712_s20 + $0x138] sm:$0xff] }
  0x24   : > { %4038 = vmatpush3.bf16.msra.mxu0 %v4560_v11  ;;  %3847 = vmatprep.subr.bf16.mxu1 %v4561_v18  ;;  %v460_v11 = vadd.f32 %v406_v3, %v352_v0  ;;  %v358_v62 = vmul.f32 %v304_v61, %v250_v51  ;;  %v411_v0 = vld [vmem:[%s5987_s3 + $0x60] sm:$0xff]  ;;  %v658_v12 = vrot.slane %v4902_v4, 1  ;;  %v308_v27 = vld [vmem:[%s5986_s2 + $0x88] sm:$0x3]  ;;  %v255_v51 = vld [vmem:[%s4712_s20 + $0x90] sm:$0xff] }
  0x25   : > { %4039 = vmatprep.subr.bf16.mxu0 %v4562_v25  ;;  %v4827_v21 = vmax.f32 %v459_v10, 0.0  ;;  %4043 = vmatprep.mubr.bf16.mxu0 %v755_v20  ;;  %v465_v8 = vadd.f32 %v411_v0, %v357_v58  ;;  %v4910_v10 = vadd.f32 %v413_v2, %v359_v63  ;;  %v309_v63 = vld [vmem:[%s5986_s2 + $0x90] sm:$0xff]  ;;  %v310_v0 = vld [vmem:[%s5986_s2 + $0x98] sm:$0xff] }
  0x26   : > { %v4829_v22 = vmax.f32 %v460_v11, 0.0  ;;  %v1215_v11 = vsel %vm1205_vm1, %v1212_v19, %v1214_v53  ;;  %v257_v53 = vld [vmem:[%s4712_s20 + $0xa0] sm:$0x3] }
  0x27   : > { %3848 = vmatpush3.bf16.msra.mxu1 %v4561_v18  ;;  %v1211_v18 = vrot.slane %v510_v56, 2  ;;  %v652_v32 = vrot.slane %v4827_v21, 1  ;;  %v1216_v3 = vrot.slane %v4827_v21, 2 }
  0x28   : > { %4040 = vmatpush3.bf16.msra.mxu0 %v4562_v25  ;;  %3849 = vmatprep.subr.bf16.mxu1 %v4563_v41  ;;  %v300_v25 = vld [vmem:[%s5986_s2 + $0x48] sm:$0xff]  ;;  %v653_v33 = vrot.slane %v4829_v22, 1  ;;  %v4908_v7 = vpack.c.bf16 %v4829_v22, %v4827_v21  ;;  %v1217_v17 = vrot.slane %v4829_v22, 2  ;;  %v4942_v22 = vld [vmem:[%s5985_s1 + $0x158] sm:$0xff]  }
  0x29   : > { %4041 = vmatprep.subr.bf16.mxu0 %v4564_v45  ;;  %v354_v28 = vmul.f32 %v300_v25, %v246_v16  ;;  %v4858_v37 = vsel %vm1205_vm1, %v1211_v18, %v1212_v19  ;;  %v253_v16 = vld [vmem:[%s4712_s20 + $0x80] sm:$0xff]  ;;  %v4928_v18 = vmax.f32 %v465_v8, 0.0  ;;  %v254_v21 = vld [vmem:[%s4712_s20 + $0x88] sm:$0x3] }
  0x2a   : > { %v654_v46 = vsel %vm641_vm0, %v652_v32, %v653_v33  ;;  %v656_v47 = vsel %vm641_vm0, %v653_v33, %v655_v34  ;;  %v4954_v32 = vpack.c.bf16 %v1215_v11, %v4858_v37  ;;  %v416_v37 = vld [vmem:[%s5987_s3 + $0x88] sm:$0x3]  ;;  %v1220_v55 = vsel %vm1205_vm1, %v1217_v17, %v4868_v49  ;;  %v311_v49 = vld [vmem:[%s5986_s2 + $0xa0] sm:$0x3] }
  0x2b   : > { %3850 = vmatpush3.bf16.msra.mxu1 %v4563_v41  ;;  %v410_v41 = vld [vmem:[%s5987_s3 + $0x58] sm:$0x3]  ;;  %v4875_v54 = vpack.c.bf16 %v656_v47, %v654_v46  ;;  %v662_v34 = vrot.slane %v4928_v18, 1  ;;  %v1218_v46 = vsel %vm1205_vm1, %v1216_v3, %v1217_v17  ;;  %v365_v2 = vmul.f32 %v311_v49, %v257_v53  ;;  %v417_v3 = vld [vmem:[%s5987_s3 + $0x90] sm:$0xff]  ;;  %v419_v8 = vld [vmem:[%s5987_s3 + $0xa0] sm:$0x3] }
  0x2c   : > { %4042 = vmatpush3.bf16.msra.mxu0 %v4564_v45  ;;  %3883 = vmatprep.subr.bf16.mxu1 %v4565_v9  ;;  %v462_v45 = vadd.f32 %v408_v29, %v354_v28  ;;  %v4877_v56 = vadd.f32 %v410_v41, %v356_v40  ;;  %v414_v29 = vld [vmem:[%s5987_s3 + $0x78] sm:$0xff]  ;;  %v362_v40 = vmul.f32 %v308_v27, %v254_v21  ;;  %v421_v53 = vld [vmem:[%s5987_s3 + $0xb0] sm:$0xff] }
  0x2d   : > { %4075 = vmatprep.subr.bf16.mxu0 %v4566_v15  ;;  %6017 = vst [vmem:[#allocation2_spill] sm:$0xff] %v4875_v54  ;;  %v5021_v17 = vadd.f32 %v419_v8, %v365_v2  ;;  %v5023_v21 = vpack.c.bf16 %v1220_v55, %v1218_v46  ;;  %v422_v55 = vld [vmem:[%s5987_s3 + $0xb8] sm:$0x3]  ;;  %v261_v2 = vld [vmem:[%s4712_s20 + $0xc0] sm:$0xff]  ;;  %v1226_v8 = vrot.slane %v4928_v18, 2 }
  0x2e   : > { %3852 = vmatmul.mubr.bf16.vlgmr.msra.gmra.mrb[0].mxu1 %v755_v20  ;;  %v4879_v59 = vmax.f32 %v462_v45, 0.0  ;;  %v518_v5 = vmax.f32 %v4877_v56, 0.0  ;;  %v521_v20 = vmax.f32 %v4910_v10, 0.0  ;;  %v4571_v45 = vld [vmem:[%s5985_s1 + $0x10] sm:$0xff]   ;;  %v4984_v58 = vadd.f32 %v416_v37, %v362_v40  ;;  %v312_v56 = vld [vmem:[%s5986_s2 + $0xa8] sm:$0xff] }
  0x2f   : > { %3884 = vmatpush3.bf16.msra.mxu1 %v4565_v9  ;;  %4044 = vmatmul.mubr.bf16.vlgmr.msra.gmra.mrb[0].mxu0 %v4875_v54  ;;  %v466_v9 = vadd.f32 %v412_v1, %v358_v62  ;;  %v364_v1 = vmul.f32 %v310_v0, %v256_v52  ;;  %v314_v40 = vld [vmem:[%s5986_s2 + $0xb8] sm:$0x3] }
  0x30   : > { %3885 = vmatprep.subr.bf16.mxu1 %v4568_v36  ;;  %3855 = vmatprep.mubr.bf16.mxu1 %v4875_v54  ;;  %v657_v6 = vrot.slane %v4879_v59, 1  ;;  %v660_v13 = vrot.slane %v518_v5, 1  ;;  %v4926_v57 = vpack.c.bf16 %v4902_v4, %v4879_v59  ;;  %v1221_v60 = vrot.slane %v4879_v59, 2  ;;  %v4574_v0 = vld [vmem:[%s5985_s1 + $0x18] sm:$0xff]  }
  0x31   : > { %4076 = vmatpush3.bf16.msra.mxu0 %v4566_v15  ;;  %v252_v15 = vld [vmem:[%s4712_s20 + $0x78] sm:$0xff]  ;;  %v4930_v19 = vmax.f32 %v466_v9, 0.0  ;;  %v363_v59 = vmul.f32 %v309_v63, %v255_v51  ;;  %v1222_v9 = vrot.slane %v4902_v4, 2  ;;  %v1224_v27 = vrot.slane %v518_v5, 2 }
  0x32   : > { %4077 = vmatprep.subr.bf16.mxu0 %v4567_v38  ;;  %v659_v24 = vsel %vm641_vm0, %v657_v6, %v658_v12  ;;  %v661_v25 = vsel %vm641_vm0, %v658_v12, %v660_v13  ;;  %v360_v28 = vmul.f32 %v306_v23, %v252_v15  ;;  %v418_v6 = vld [vmem:[%s5987_s3 + $0x98] sm:$0xff]  ;;  %v524_v12 = vmax.f32 %v4984_v58, 0.0  ;;  %v321_v58 = vld [vmem:[%s5986_s2 + $0xf0] sm:$0xff] }
  0x33   : > { %3886 = vmatpush3.bf16.msra.mxu1 %v4568_v36  ;;  %v4956_v33 = vpack.c.bf16 %v661_v25, %v659_v24  ;;  %v663_v35 = vrot.slane %v4930_v19, 1  ;;  %v665_v36 = vrot.slane %v521_v20, 1  ;;  %v5018_v15 = vpack.c.bf16 %v4930_v19, %v4928_v18  ;;  %v258_v25 = vld [vmem:[%s4712_s20 + $0xa8] sm:$0xff]  ;;  %v317_v18 = vld [vmem:[%s5986_s2 + $0xd0] sm:$0x3] }
  0x34   : > { %v468_v41 = vadd.f32 %v414_v29, %v360_v28  ;;  %3887 = vmatprep.subr.bf16.mxu1 %v4571_v45  ;;  %v471_v4 = vadd.f32 %v417_v3, %v363_v59  ;;  %v670_v24 = vrot.slane %v524_v12, 1  ;;  %v1223_v5 = vsel %vm1205_vm1, %v1221_v60, %v1222_v9  ;;  %v262_v3 = vld [vmem:[%s4712_s20 + $0xc8] sm:$0xff] }
  0x35   : > { %4078 = vmatpush3.bf16.msra.mxu0 %v4567_v38  ;;  %6018 = vst [vmem:[#allocation3_spill] sm:$0xff] %v4956_v33  ;;  %v361_v38 = vmul.f32 %v307_v26, %v253_v16  ;;  %4047 = vmatprep.mubr.bf16.mxu0 %v4956_v33  ;;  %v664_v47 = vsel %vm641_vm0, %v662_v34, %v663_v35  ;;  %v259_v26 = vld [vmem:[%s4712_s20 + $0xb0] sm:$0xff] }
  0x36   : > { %4079 = vmatprep.subr.bf16.mxu0 %v4569_v14  ;;  %3856 = vmatmul.mubr.bf16.gmra.mrb[4].mxu1 %v4956_v33  ;;  %v666_v50 = vsel %vm641_vm0, %v663_v35, %v665_v36  ;;  %v4986_v62 = vmax.f32 %v468_v41, 0.0  ;;  %v472_v16 = vadd.f32 %v418_v6, %v364_v1  ;;  %v5037_v29 = vmax.f32 %v471_v4, 0.0  ;;  %v4573_v36 = vld [vmem:[%s5985_s1 + $0x168] sm:$0xff]   ;;  %v263_v6 = vld [vmem:[%s4712_s20 + $0xd0] sm:$0x3] }
  0x37   : > { %v4982_v61 = vpack.c.bf16 %v666_v50, %v664_v47  ;;  %v469_v48 = vadd.f32 %v415_v39, %v361_v38  ;;  %3888 = vmatpush3.bf16.msra.mxu1 %v4571_v45  ;;  %v527_v35 = vmax.f32 %v5021_v17, 0.0  ;;  %v260_v39 = vld [vmem:[%s4712_s20 + $0xb8] sm:$0x3]  ;;  %v313_v38 = vld [vmem:[%s5986_s2 + $0xb0] sm:$0xff]  ;;  %v366_v41 = vmul.f32 %v312_v56, %v258_v25  ;;  %v420_v45 = vld [vmem:[%s5987_s3 + $0xa8] sm:$0xff] }
  0x38   : > { %v667_v13 = vrot.slane %v4986_v62, 1  ;;  %v5039_v34 = vmax.f32 %v472_v16, 0.0  ;;  %v1225_v46 = vsel %vm1205_vm1, %v1222_v9, %v1224_v27  ;;  %v672_v50 = vrot.slane %v5037_v29, 1  ;;  %3889 = vmatprep.subr.bf16.mxu1 %v4574_v0  ;;  %v316_v25 = vld [vmem:[%s5986_s2 + $0xc8] sm:$0xff]  ;;  %v423_v27 = vld [vmem:[%s5987_s3 + $0xc0] sm:$0xff] }
  0x39   : > { %6019 = vst [vmem:[#allocation4_spill] sm:$0xff] %v4982_v61  ;;  %4080 = vmatpush3.bf16.msra.mxu0 %v4569_v14  ;;  %v5009_v11 = vmax.f32 %v469_v48, 0.0  ;;  %v4572_v14 = vld [vmem:[%s5985_s1 + $0x160] sm:$0xff]   ;;  %3859 = vmatprep.mubr.bf16.mxu1 %v4982_v61  ;;  %v675_v52 = vrot.slane %v527_v35, 1  ;;  %v367_v60 = vmul.f32 %v313_v38, %v259_v26  ;;  %v368_v48 = vmul.f32 %v314_v40, %v260_v39  ;;  %v424_v39 = vld [vmem:[%s5987_s3 + $0xc8] sm:$0xff]  ;;  %v4575_v40 = vld [vmem:[%s5985_s1 + $0x170] sm:$0xff]  }
  0x3a   : > { %4048 = vmatmul.mubr.bf16.gmra.mrb[4].mxu0 %v4982_v61  ;;  %4081 = vmatprep.subr.bf16.mxu0 %v4942_v22  ;;  %v673_v51 = vrot.slane %v5039_v34, 1  ;;  %v474_v63 = vadd.f32 %v420_v45, %v366_v41  ;;  %v5077_v49 = vpack.c.bf16 %v1225_v46, %v1223_v5  ;;  %v1227_v9 = vrot.slane %v4930_v19, 2  ;;  %v425_v56 = vld [vmem:[%s5987_s3 + $0xd0] sm:$0x3]  ;;  %v326_v17 = vld [vmem:[%s5986_s2 + $0x118] sm:$0x3] }
  0x3b   : > { %v668_v23 = vrot.slane %v5009_v11, 1  ;;  %v5034_v28 = vpack.c.bf16 %v5009_v11, %v4986_v62  ;;  %v475_v4 = vadd.f32 %v421_v53, %v367_v60  ;;  %v5090_v16 = vadd.f32 %v422_v55, %v368_v48  ;;  %3890 = vmatpush3.bf16.msra.mxu1 %v4574_v0  ;;  %v264_v53 = vld [vmem:[%s4712_s20 + $0xd8] sm:$0xff]  ;;  %v265_v55 = vld [vmem:[%s4712_s20 + $0xe0] sm:$0xff] }
  0x3c   : > { %v674_v59 = vsel %vm641_vm0, %v672_v50, %v673_v51  ;;  %v676_v1 = vsel %vm641_vm0, %v673_v51, %v675_v52  ;;  %v371_v26 = vmul.f32 %v317_v18, %v263_v6  ;;  %v1229_v5 = vrot.slane %v521_v20, 2  ;;  %v5133_v52 = vld [vmem:[%s5985_s1 + $0x178] sm:$0xff]   ;;  %v319_v6 = vld [vmem:[%s5986_s2 + $0xe0] sm:$0xff] }
  0x3d   : > { %4082 = vmatpush3.bf16.msra.mxu0 %v4942_v22  ;;  %v669_v37 = vsel %vm641_vm0, %v667_v13, %v668_v23  ;;  %v671_v22 = vsel %vm641_vm0, %v668_v23, %v670_v24  ;;  %v5088_v13 = vpack.c.bf16 %v676_v1, %v674_v59  ;;  %v5092_v23 = vmax.f32 %v474_v63, 0.0  ;;  %v315_v24 = vld [vmem:[%s5986_s2 + $0xc0] sm:$0xff]  ;;  %v266_v59 = vld [vmem:[%s4712_s20 + $0xe8] sm:$0x3]  ;;  %v318_v1 = vld [vmem:[%s5986_s2 + $0xd8] sm:$0xff] }
  0x3e   : > { %4083 = vmatprep.subr.bf16.mxu0 %v4572_v14  ;;  %v5062_v47 = vpack.c.bf16 %v671_v22, %v669_v37  ;;  %v369_v19 = vmul.f32 %v315_v24, %v261_v2  ;;  %v5116_v37 = vmax.f32 %v475_v4, 0.0  ;;  %v5994_v22 = vmax.f32 %v5090_v16, 0.0  ;;  %v426_v4 = vld [vmem:[%s5987_s3 + $0xd8] sm:$0xff] }
  0x3f   : > { %6021 = vst [vmem:[#allocation6_spill] sm:$0xff] %v5088_v13  ;;  %v677_v38 = vrot.slane %v5092_v23, 1  ;;  %v1228_v41 = vsel %vm1205_vm1, %v1226_v8, %v1227_v9  ;;  %v5124_v45 = vadd.f32 %v425_v56, %v371_v26  ;;  %v1230_v46 = vsel %vm1205_vm1, %v1227_v9, %v1229_v5  ;;  %v320_v8 = vld [vmem:[%s5986_s2 + $0xe8] sm:$0x3]  ;;  %v427_v26 = vld [vmem:[%s5987_s3 + $0xe0] sm:$0xff] }
  0x40   : > { %6020 = vst [vmem:[#allocation5_spill] sm:$0xff] %v5062_v47  ;;  %4051 = vmatprep.mubr.bf16.mxu0 %v5062_v47  ;;  %3860 = vmatmul.mubr.bf16.gmra.mrb[8].mxu1 %v5062_v47  ;;  %v477_v10 = vadd.f32 %v423_v27, %v369_v19  ;;  %v678_v50 = vrot.slane %v5116_v37, 1  ;;  %v680_v51 = vrot.slane %v5994_v22, 1  ;;  %v5137_v60 = vpack.c.bf16 %v1230_v46, %v1228_v41  ;;  %v428_v27 = vld [vmem:[%s5987_s3 + $0xe8] sm:$0x3]  ;;  %v4577_v5 = vld [vmem:[%s5985_s1 + $0x20] sm:$0xff]  }
  0x41   : > { %4084 = vmatpush3.bf16.msra.mxu0 %v4572_v14  ;;  %v370_v14 = vmul.f32 %v316_v25, %v262_v3  ;;  %3863 = vmatprep.mubr.bf16.mxu1 %v5088_v13  ;;  %v1231_v48 = vrot.slane %v4986_v62, 2  ;;  %v5151_v2 = vpack.c.bf16 %v5039_v34, %v5037_v29  ;;  %v372_v9 = vmul.f32 %v318_v1, %v264_v53  ;;  %v269_v1 = vld [vmem:[%s4712_s20 + $0x100] sm:$0x3]  ;;  %v284_v33 = vld [vmem:[%s4712_s20 + $0x178] sm:$0x3] }
  0x42   : > { %4085 = vmatprep.subr.bf16.mxu0 %v4573_v36  ;;  %4052 = vmatmul.mubr.bf16.gmra.mrb[8].mxu0 %v5088_v13  ;;  %6022 = vst [vmem:[#allocation7_spill] sm:$0xff] %v5137_v60  ;;  %v5140_v63 = vmax.f32 %v477_v10, 0.0  ;;  %v679_v3 = vsel %vm641_vm0, %v677_v38, %v678_v50  ;;  %v681_v62 = vsel %vm641_vm0, %v678_v50, %v680_v51  ;;  %v1232_v24 = vrot.slane %v5009_v11, 2  ;;  %v5188_v10 = vld [vmem:[%s5985_s1 + $0x180] sm:$0xff]  }
  0x43   : > { %v478_v20 = vadd.f32 %v424_v39, %v370_v14  ;;  %v5165_v25 = vpack.c.bf16 %v681_v62, %v679_v3  ;;  %v373_v39 = vmul.f32 %v319_v6, %v265_v55  ;;  %v374_v11 = vmul.f32 %v320_v8, %v266_v59  ;;  %3891 = vmatprep.subr.bf16.mxu1 %v4577_v5  ;;  %v268_v59 = vld [vmem:[%s4712_s20 + $0xf8] sm:$0xff]  ;;  %v323_v3 = vld [vmem:[%s5986_s2 + $0x100] sm:$0x3] }
  0x44   : > { %v682_v18 = vrot.slane %v5140_v63, 1  ;;  %v480_v56 = vadd.f32 %v426_v4, %v372_v9  ;;  %v1233_v38 = vsel %vm1205_vm1, %v1231_v48, %v1232_v24  ;;  %v5194_v46 = vpack.c.bf16 %v5116_v37, %v5092_v23  ;;  %v267_v48 = vld [vmem:[%s4712_s20 + $0xf0] sm:$0xff]  ;;  %3892 = vmatpush3.bf16.msra.mxu1 %v4577_v5 }
  0x45   : > { %4086 = vmatpush3.bf16.msra.mxu0 %v4573_v36  ;;  %v5142_v0 = vmax.f32 %v478_v20, 0.0  ;;  %v5993_v36 = vmax.f32 %v5124_v45, 0.0  ;;  %6023 = vst [vmem:[#allocation8_spill] sm:$0xff] %v5165_v25  ;;  %4055 = vmatprep.mubr.bf16.mxu0 %v5165_v25  ;;  %v1234_v20 = vrot.slane %v524_v12, 2  ;;  %v481_v51 = vadd.f32 %v427_v26, %v373_v39  ;;  %v322_v12 = vld [vmem:[%s5986_s2 + $0xf8] sm:$0xff] }
  0x46   : > { %4087 = vmatprep.subr.bf16.mxu0 %v4575_v40  ;;  %v5199_v53 = vadd.f32 %v428_v27, %v374_v11  ;;  %v5201_v55 = vmax.f32 %v480_v56, 0.0  ;;  %v1236_v6 = vrot.slane %v5037_v29, 2  ;;  %v1237_v8 = vrot.slane %v5039_v34, 2  ;;  %v429_v29 = vld [vmem:[%s5987_s3 + $0xf0] sm:$0xff]  ;;  %v430_v34 = vld [vmem:[%s5987_s3 + $0xf8] sm:$0xff] }
  0x47   : > { %v683_v19 = vrot.slane %v5142_v0, 1  ;;  %v685_v14 = vrot.slane %v5993_v36, 1  ;;  %v1235_v62 = vsel %vm1205_vm1, %v1232_v24, %v1234_v20  ;;  %v5220_v9 = vpack.c.bf16 %v5142_v0, %v5140_v63  ;;  %v431_v39 = vld [vmem:[%s5987_s3 + $0x100] sm:$0x3]  ;;  %v271_v11 = vld [vmem:[%s4712_s20 + $0x110] sm:$0xff] }
  0x48   : > { %3864 = vmatmul.mubr.bf16.gmra.mrb[12].mxu1 %v5165_v25  ;;  %v5224_v4 = vmax.f32 %v481_v51, 0.0  ;;  %v687_v24 = vrot.slane %v5201_v55, 1  ;;  %v376_v26 = vmul.f32 %v322_v12, %v268_v59  ;;  %v377_v27 = vmul.f32 %v323_v3, %v269_v1  ;;  %v272_v56 = vld [vmem:[%s4712_s20 + $0x118] sm:$0x3]  ;;  %v324_v51 = vld [vmem:[%s5986_s2 + $0x108] sm:$0xff]  ;;  %v433_v3 = vld [vmem:[%s5987_s3 + $0x110] sm:$0xff] }
  0x49   : > { %4088 = vmatpush3.bf16.msra.mxu0 %v4575_v40  ;;  %v684_v41 = vsel %vm641_vm0, %v682_v18, %v683_v19  ;;  %v686_v40 = vsel %vm641_vm0, %v683_v19, %v685_v14  ;;  %v5992_v18 = vmax.f32 %v5199_v53, 0.0  ;;  %v375_v19 = vmul.f32 %v321_v58, %v267_v48  ;;  %v270_v14 = vld [vmem:[%s4712_s20 + $0x108] sm:$0xff]  ;;  %v442_v25 = vld [vmem:[%s5987_s3 + $0x158] sm:$0xff] }
  0x4a   : > { %v5196_v50 = vpack.c.bf16 %v686_v40, %v684_v41  ;;  %4089 = vmatprep.subr.bf16.mxu0 %v5133_v52  ;;  %v5242_v5 = vpack.c.bf16 %v1235_v62, %v1233_v38  ;;  %v1239_v41 = vrot.slane %v527_v35, 2  ;;  %v688_v40 = vrot.slane %v5224_v4, 1  ;;  %v325_v38 = vld [vmem:[%s5986_s2 + $0x110] sm:$0xff]  ;;  %v432_v12 = vld [vmem:[%s5987_s3 + $0x108] sm:$0xff]  ;;  %v434_v62 = vld [vmem:[%s5987_s3 + $0x118] sm:$0x3] }
  0x4b   : > { %v483_v20 = vadd.f32 %v429_v29, %v375_v19  ;;  %v1238_v35 = vsel %vm1205_vm1, %v1236_v6, %v1237_v8  ;;  %v484_v48 = vadd.f32 %v430_v34, %v376_v26  ;;  %v5260_v59 = vadd.f32 %v431_v39, %v377_v27 }
  0x4c   : > { %6024 = vst [vmem:[#allocation9_spill] sm:$0xff] %v5196_v50  ;;  %4056 = vmatmul.mubr.bf16.gmra.mrb[12].mxu0 %v5196_v50  ;;  %3867 = vmatprep.mubr.bf16.mxu1 %v5196_v50  ;;  %6025 = vst [vmem:[#allocation10_spill] sm:$0xff] %v5242_v5  ;;  %v378_v1 = vmul.f32 %v324_v51, %v270_v14  ;;  %v379_v58 = vmul.f32 %v325_v38, %v271_v11  ;;  %v4579_v14 = vld [vmem:[%s5985_s1 + $0x28] sm:$0xff]   ;;  %v441_v50 = vld [vmem:[%s5987_s3 + $0x150] sm:$0xff] }
  0x4d   : > { %4090 = vmatpush3.bf16.msra.mxu0 %v5133_v52  ;;  %4091 = vmatprep.mubr.bf16.mxu0 %v4954_v32  ;;  %v690_v52 = vrot.slane %v5992_v18, 1  ;;  %v689_v6 = vsel %vm641_vm0, %v687_v24, %v688_v40  ;;  %v5273_v29 = vmax.f32 %v483_v20, 0.0  ;;  %v380_v34 = vmul.f32 %v326_v17, %v272_v56  ;;  %v4580_v56 = vld [vmem:[%s5985_s1 + $0x188] sm:$0xff]  }
  0x4e   : > { %4123 = vmatprep.subr.bf16.mxu0 %v5188_v10  ;;  %v5280_v27 = vmax.f32 %v484_v48, 0.0  ;;  %v5991_v39 = vmax.f32 %v5260_v59, 0.0  ;;  %v486_v11 = vadd.f32 %v432_v12, %v378_v1  ;;  %v487_v24 = vadd.f32 %v433_v3, %v379_v58  ;;  %3893 = vmatprep.subr.bf16.mxu1 %v4579_v14  ;;  %v275_v58 = vld [vmem:[%s4712_s20 + $0x130] sm:$0x3]  ;;  %v327_v12 = vld [vmem:[%s5986_s2 + $0x120] sm:$0xff] }
  0x4f   : > { %v691_v19 = vsel %vm641_vm0, %v688_v40, %v690_v52  ;;  %v692_v51 = vrot.slane %v5273_v29, 1  ;;  %v5284_v38 = vadd.f32 %v434_v62, %v380_v34  ;;  %v273_v40 = vld [vmem:[%s4712_s20 + $0x120] sm:$0xff]  ;;  %v274_v52 = vld [vmem:[%s4712_s20 + $0x128] sm:$0xff]  ;;  %v1240_v20 = vsel %vm1205_vm1, %v1237_v8, %v1239_v41  ;;  %3894 = vmatpush3.bf16.msra.mxu1 %v4579_v14 }
  0x50   : > { %v5278_v26 = vpack.c.bf16 %v691_v19, %v689_v6  ;;  %v693_v17 = vrot.slane %v5280_v27, 1  ;;  %v695_v48 = vrot.slane %v5991_v39, 1  ;;  %v5296_v1 = vmax.f32 %v486_v11, 0.0  ;;  %v328_v41 = vld [vmem:[%s5986_s2 + $0x128] sm:$0xff]  ;;  %v329_v6 = vld [vmem:[%s5986_s2 + $0x130] sm:$0x3] }
  0x51   : > { %v5302_v3 = vpack.c.bf16 %v1240_v20, %v1238_v35  ;;  %v5305_v62 = vmax.f32 %v487_v24, 0.0  ;;  %v5995_v8 = vmax.f32 %v5284_v38, 0.0  ;;  %v381_v19 = vmul.f32 %v327_v12, %v273_v40  ;;  %v435_v35 = vld [vmem:[%s5987_s3 + $0x120] sm:$0xff]  ;;  %v436_v20 = vld [vmem:[%s5987_s3 + $0x128] sm:$0xff]  ;;  %v437_v12 = vld [vmem:[%s5987_s3 + $0x130] sm:$0x3] }
  0x52   : > { %6026 = vst [vmem:[#allocation11_spill] sm:$0xff] %v5278_v26  ;;  %3868 = vmatmul.mubr.bf16.gmra.mrb[16].mxu1 %v5278_v26  ;;  %v5319_v34 = vpack.c.bf16 %v5224_v4, %v5201_v55  ;;  %v694_v14 = vsel %vm641_vm0, %v692_v51, %v693_v17  ;;  %v696_v11 = vsel %vm641_vm0, %v693_v17, %v695_v48  ;;  %v697_v24 = vrot.slane %v5296_v1, 1  ;;  %v277_v48 = vld [vmem:[%s4712_s20 + $0x140] sm:$0xff] }
  0x53   : > { %v382_v40 = vmul.f32 %v328_v41, %v274_v52  ;;  %v5333_v39 = vpack.c.bf16 %v696_v11, %v694_v14  ;;  %v700_v51 = vrot.slane %v5995_v8, 1  ;;  %v383_v17 = vmul.f32 %v329_v6, %v275_v58  ;;  %v278_v52 = vld [vmem:[%s4712_s20 + $0x148] sm:$0x3]  ;;  %v330_v41 = vld [vmem:[%s5986_s2 + $0x138] sm:$0xff]  ;;  %v331_v14 = vld [vmem:[%s5986_s2 + $0x140] sm:$0xff] }
  0x54   : > { %4092 = vmatmul.mubr.bf16.vlgmr.msra.gmra.mrb[0].mxu0 %v5023_v21  ;;  %v489_v18 = vadd.f32 %v435_v35, %v381_v19  ;;  %v332_v11 = vld [vmem:[%s5986_s2 + $0x148] sm:$0x3]  ;;  %v384_v22 = vmul.f32 %v330_v41, %v276_v44  ;;  %v438_v58 = vld [vmem:[%s5987_s3 + $0x138] sm:$0xff]  ;;  %v439_v44 = vld [vmem:[%s5987_s3 + $0x140] sm:$0xff] }
  0x55   : > { %4124 = vmatpush3.bf16.msra.mxu0 %v5188_v10  ;;  %4095 = vmatprep.mubr.bf16.mxu0 %v5077_v49  ;;  %6027 = vst [vmem:[#allocation12_spill] sm:$0xff] %v5333_v39  ;;  %v698_v10 = vrot.slane %v5305_v62, 1  ;;  %v490_v36 = vadd.f32 %v436_v20, %v382_v40  ;;  %v5356_v40 = vadd.f32 %v437_v12, %v383_v17  ;;  %v440_v41 = vld [vmem:[%s5987_s3 + $0x148] sm:$0x3] }
  0x56   : > { %4125 = vmatprep.subr.bf16.mxu0 %v4580_v56  ;;  %3871 = vmatprep.mubr.bf16.mxu1 %v5333_v39  ;;  %v385_v20 = vmul.f32 %v331_v14, %v277_v48  ;;  %v5366_v6 = vmax.f32 %v489_v18, 0.0  ;;  %v386_v12 = vmul.f32 %v332_v11, %v278_v52  ;;  %v492_v48 = vadd.f32 %v438_v58, %v384_v22  ;;  %v333_v22 = vld [vmem:[%s5986_s2 + $0x150] sm:$0xff] }
  0x57   : > { %v699_v19 = vsel %vm641_vm0, %v697_v24, %v698_v10  ;;  %v701_v35 = vsel %vm641_vm0, %v698_v10, %v700_v51  ;;  %v5368_v24 = vmax.f32 %v490_v36, 0.0  ;;  %v4581_v10 = vld [vmem:[%s5985_s1 + $0x30] sm:$0xff]   ;;  %v6002_v17 = vmax.f32 %v5356_v40, 0.0 }
  0x58   : > { %v5364_v8 = vpack.c.bf16 %v701_v35, %v699_v19  ;;  %v4582_v51 = vld [vmem:[%s5985_s1 + $0x190] sm:$0xff]   ;;  %v493_v14 = vadd.f32 %v439_v44, %v385_v20  ;;  %v5380_v18 = vpack.c.bf16 %v5280_v27, %v5273_v29  ;;  %v702_v36 = vrot.slane %v5366_v6, 1  ;;  %3895 = vmatprep.subr.bf16.mxu1 %v4581_v10  ;;  %v280_v19 = vld [vmem:[%s4712_s20 + $0x158] sm:$0xff]  ;;  %v281_v35 = vld [vmem:[%s4712_s20 + $0x160] sm:$0x3] }
  0x59   : > { %4126 = vmatpush3.bf16.msra.mxu0 %v4580_v56  ;;  %v279_v56 = vld [vmem:[%s4712_s20 + $0x150] sm:$0xff]  ;;  %v703_v52 = vrot.slane %v5368_v24, 1  ;;  %v5385_v11 = vadd.f32 %v440_v41, %v386_v12  ;;  %v5394_v58 = vpack.c.bf16 %v5305_v62, %v5296_v1  ;;  %v705_v20 = vrot.slane %v6002_v17, 1  ;;  %v334_v12 = vld [vmem:[%s5986_s2 + $0x158] sm:$0xff]  ;;  %3896 = vmatpush3.bf16.msra.mxu1 %v4581_v10 }
  0x5a   : > { %6028 = vst [vmem:[#allocation13_spill] sm:$0xff] %v5364_v8  ;;  %3872 = vmatmul.mubr.bf16.gmra.mrb[20].mxu1 %v5364_v8  ;;  %v5399_v44 = vmax.f32 %v492_v48, 0.0  ;;  %v5401_v41 = vmax.f32 %v493_v14, 0.0  ;;  %4127 = vmatprep.subr.bf16.mxu0 %v4582_v51  ;;  %v335_v8 = vld [vmem:[%s5986_s2 + $0x160] sm:$0x3]  ;;  %v387_v39 = vmul.f32 %v333_v22, %v279_v56  ;;  %v388_v14 = vmul.f32 %v334_v12, %v280_v19  ;;  %v282_v19 = vld [vmem:[%s4712_s20 + $0x168] sm:$0xff] }
  0x5b   : > { %v704_v26 = vsel %vm641_vm0, %v702_v36, %v703_v52  ;;  %v6009_v48 = vmax.f32 %v5385_v11, 0.0  ;;  %v389_v17 = vmul.f32 %v335_v8, %v281_v35  ;;  %v443_v56 = vld [vmem:[%s5987_s3 + $0x160] sm:$0x3]  ;;  %v706_v36 = vsel %vm641_vm0, %v703_v52, %v705_v20  ;;  %v283_v35 = vld [vmem:[%s4712_s20 + $0x170] sm:$0xff]  ;;  %v336_v52 = vld [vmem:[%s5986_s2 + $0x168] sm:$0xff] }
  0x5c   : > { %4096 = vmatmul.mubr.bf16.gmra.mrb[4].mxu0 %v5137_v60  ;;  %v707_v22 = vrot.slane %v5399_v44, 1  ;;  %v708_v10 = vrot.slane %v5401_v41, 1  ;;  %v495_v8 = vadd.f32 %v441_v50, %v387_v39  ;;  %v5426_v12 = vpack.c.bf16 %v706_v36, %v704_v26  ;;  %v338_v50 = vld [vmem:[%s5986_s2 + $0x178] sm:$0x3] }
  0x5d   : > { %4099 = vmatprep.mubr.bf16.mxu0 %v5242_v5  ;;  %4128 = vmatpush3.bf16.msra.mxu0 %v4582_v51  ;;  %v710_v13 = vrot.slane %v6009_v48, 1  ;;  %v496_v47 = vadd.f32 %v442_v25, %v388_v14  ;;  %v5430_v61 = vadd.f32 %v443_v56, %v389_v17  ;;  %v337_v51 = vld [vmem:[%s5986_s2 + $0x170] sm:$0xff]  ;;  %v1242_v25 = vrot.slane %v5116_v37, 2  ;;  %v444_v14 = vld [vmem:[%s5987_s3 + $0x168] sm:$0xff]  ;;  %v4583_v36 = vld [vmem:[%s5985_s1 + $0x38] sm:$0xff]  }
  0x5e   : > { %6029 = vst [vmem:[#allocation14_spill] sm:$0xff] %v5426_v12  ;;  %v709_v26 = vsel %vm641_vm0, %v707_v22, %v708_v10  ;;  %v5443_v39 = vmax.f32 %v495_v8, 0.0  ;;  %v6030_v17 = vmax.f32 %v5090_v16, 0.0  ;;  %v445_v56 = vld [vmem:[%s5987_s3 + $0x170] sm:$0xff]  ;;  %3875 = vmatprep.mubr.bf16.mxu1 %v5426_v12  ;;  %v390_v8 = vmul.f32 %v336_v52, %v282_v19  ;;  %3897 = vmatprep.subr.bf16.mxu1 %v4583_v36 }
  0x5f   : > { %v711_v22 = vsel %vm641_vm0, %v708_v10, %v710_v13  ;;  %v5459_v37 = vmax.f32 %v496_v47, 0.0  ;;  %v551_v16 = vmax.f32 %v5430_v61, 0.0  ;;  %v6031_v5 = vrot.slane %v5092_v23, 2  ;;  %v4584_v47 = vld [vmem:[%s5985_s1 + $0x198] sm:$0xff]   ;;  %3898 = vmatpush3.bf16.msra.mxu1 %v4583_v36 }
  0x60   : > { %v1244_v20 = vrot.slane %v6030_v17, 2  ;;  %v446_v17 = vld [vmem:[%s5987_s3 + $0x178] sm:$0x3]  ;;  %v5465_v48 = vpack.c.bf16 %v711_v22, %v709_v26  ;;  %v712_v54 = vrot.slane %v5443_v39, 1  ;;  %v391_v52 = vmul.f32 %v337_v51, %v283_v35  ;;  %4129 = vmatprep.subr.bf16.mxu0 %v4584_v47 }
  0x61   : > { %v1243_v60 = vsel %vm1205_vm1, %v6031_v5, %v1242_v25  ;;  %v713_v13 = vrot.slane %v5459_v37, 1  ;;  %v715_v10 = vrot.slane %v551_v16, 1  ;;  %v392_v23 = vmul.f32 %v338_v50, %v284_v33  ;;  %4130 = vmatpush3.bf16.msra.mxu0 %v4584_v47  ;;  %v4591_v61 = vld [vmem:[%s5985_s1 + $0x98] sm:$0xff]  }
  0x62   : > { %v1245_v12 = vsel %vm1205_vm1, %v1242_v25, %v1244_v20  ;;  %3876 = vmatmul.mubr.bf16.gmra.mrb[24].mxu1 %v5465_v48  ;;  %v498_v5 = vadd.f32 %v444_v14, %v390_v8  ;;  %v1246_v26 = vrot.slane %v5140_v63, 2  ;;  %v1247_v25 = vrot.slane %v5142_v0, 2  ;;  %v5487_v20 = vld [vmem:[%s5985_s1 + $0x80] sm:$0xff]   ;;  %v4588_v8 = vld [vmem:[%s5985_s1 + $0x1a8] sm:$0xff]  }
  0x63   : > { %v5478_v19 = vpack.c.bf16 %v1245_v12, %v1243_v60  ;;  %v4586_v60 = vld [vmem:[%s5985_s1 + $0x1a0] sm:$0xff]   ;;  %v714_v35 = vsel %vm641_vm0, %v712_v54, %v713_v13  ;;  %v716_v12 = vsel %vm641_vm0, %v713_v13, %v715_v10  ;;  %v499_v33 = vadd.f32 %v445_v56, %v391_v52  ;;  %3931 = vmatprep.subr.bf16.mxu1 %v5487_v20 }
  0x64   : > { %4100 = vmatmul.mubr.bf16.gmra.mrb[8].mxu0 %v5302_v3  ;;  %v6032_v63 = vmax.f32 %v5124_v45, 0.0  ;;  %v5497_v0 = vpack.c.bf16 %v716_v12, %v714_v35  ;;  %v5499_v50 = vadd.f32 %v446_v17, %v392_v23  ;;  %v5501_v14 = vmax.f32 %v498_v5, 0.0  ;;  %4131 = vmatprep.subr.bf16.mxu0 %v4586_v60 }
  0x65   : > { %4103 = vmatprep.mubr.bf16.mxu0 %v5478_v19  ;;  %v1248_v36 = vsel %vm1205_vm1, %v1246_v26, %v1247_v25  ;;  %v5505_v54 = vmax.f32 %v499_v33, 0.0  ;;  %v1251_v56 = vrot.slane %v5201_v55, 2  ;;  %v1252_v45 = vrot.slane %v5224_v4, 2  ;;  %4132 = vmatpush3.bf16.msra.mxu0 %v4586_v60 }
  0x66   : > { %v1249_v51 = vrot.slane %v6032_v63, 2  ;;  %3879 = vmatprep.mubr.bf16.mxu1 %v5497_v0  ;;  %v554_v17 = vmax.f32 %v5499_v50, 0.0  ;;  %v717_v47 = vrot.slane %v5501_v14, 1  ;;  %v6033_v10 = vmax.f32 %v5199_v53, 0.0  ;;  %4133 = vmatprep.subr.bf16.mxu0 %v4588_v8 }
  0x67   : > { %v718_v55 = vrot.slane %v5505_v54, 1  ;;  %v1253_v4 = vsel %vm1205_vm1, %v1251_v56, %v1252_v45  ;;  %v1256_v23 = vrot.slane %v5273_v29, 2  ;;  %v1257_v5 = vrot.slane %v5280_v27, 2  ;;  %v4590_v29 = vld [vmem:[%s5985_s1 + $0x1b0] sm:$0xff]  }
  0x68   : > { %v1250_v22 = vsel %vm1205_vm1, %v1247_v25, %v1249_v51  ;;  %v1254_v52 = vrot.slane %v6033_v10, 2  ;;  %v720_v26 = vrot.slane %v554_v17, 1  ;;  %v6034_v35 = vmax.f32 %v5260_v59, 0.0  ;;  %v285_v10 = vld [vmem:[%s4712_s20 + $0x180] sm:$0xff] }
  0x69   : > { %v5516_v13 = vpack.c.bf16 %v1250_v22, %v1248_v36  ;;  %v1261_v53 = vrot.slane %v5296_v1, 2  ;;  %v719_v33 = vsel %vm641_vm0, %v717_v47, %v718_v55  ;;  %v1262_v51 = vrot.slane %v5305_v62, 2  ;;  %4134 = vmatpush3.bf16.msra.mxu0 %v4588_v8 }
  0x6a   : > { %v1255_v25 = vsel %vm1205_vm1, %v1252_v45, %v1254_v52  ;;  %v1259_v12 = vrot.slane %v6034_v35, 2  ;;  %v721_v27 = vsel %vm641_vm0, %v718_v55, %v720_v26  ;;  %v561_v59 = vpack.c.bf16 %v4775_v43, %v4773_v42  ;;  %4135 = vmatprep.subr.bf16.mxu0 %v4590_v29  ;;  %v339_v52 = vld [vmem:[%s5986_s2 + $0x180] sm:$0xff]  ;;  %v4592_v55 = vld [vmem:[%s5985_s1 + $0x1b8] sm:$0xff]   ;;  %v286_v26 = vld [vmem:[%s4712_s20 + $0x188] sm:$0xff] }
  0x6b   : > { %v5531_v63 = vpack.c.bf16 %v1255_v25, %v1253_v4  ;;  %v6035_v1 = vmax.f32 %v5284_v38, 0.0  ;;  %v5543_v36 = vpack.c.bf16 %v721_v27, %v719_v33  ;;  %v1258_v62 = vsel %vm1205_vm1, %v1256_v23, %v1257_v5  ;;  %v287_v25 = vld [vmem:[%s4712_s20 + $0x190] sm:$0x3]  ;;  %v340_v35 = vld [vmem:[%s5986_s2 + $0x188] sm:$0xff] }
  0x6c   : > { %4104 = vmatmul.mubr.bf16.gmra.mrb[12].mxu0 %v5516_v13  ;;  %v1260_v22 = vsel %vm1205_vm1, %v1257_v5, %v1259_v12  ;;  %v1263_v56 = vsel %vm1205_vm1, %v1261_v53, %v1262_v51  ;;  %v1266_v38 = vrot.slane %v5366_v6, 2  ;;  %v1267_v47 = vrot.slane %v5368_v24, 2  ;;  %v341_v53 = vld [vmem:[%s5986_s2 + $0x190] sm:$0x3]  ;;  %v4587_v27 = vld [vmem:[%s5985_s1 + $0x88] sm:$0xff]  }
  0x6d   : > { %v1264_v60 = vrot.slane %v6035_v1, 2  ;;  %4107 = vmatprep.mubr.bf16.mxu0 %v5531_v63  ;;  %3880 = vmatmul.mubr.bf16.gmra.mrb[28].mxu1 %v5543_v36  ;;  %v5560_v4 = vpack.c.bf16 %v1260_v22, %v1258_v62  ;;  %v6036_v8 = vmax.f32 %v5356_v40, 0.0  ;;  %v1271_v5 = vrot.slane %v5399_v44, 2 }
  0x6e   : > { %3899 = vmatprep.mubr.bf16.mxu1 %v561_v59  ;;  %v1272_v33 = vrot.slane %v5401_v41, 2  ;;  %4136 = vmatpush3.bf16.msra.mxu0 %v4590_v29  ;;  %v5584_v59 = vld [vmem:[%s5985_s1 + $0x1c0] sm:$0xff]   ;;  %v1268_v1 = vsel %vm1205_vm1, %v1266_v38, %v1267_v47  ;;  %v5593_v29 = vpack.c.bf16 %v5368_v24, %v5366_v6  ;;  %v5597_v62 = vpack.c.bf16 %v5401_v41, %v5399_v44  ;;  %v448_v38 = vld [vmem:[%s5987_s3 + $0x188] sm:$0xff]  ;;  %v449_v44 = vld [vmem:[%s5987_s3 + $0x190] sm:$0x3] }
  0x6f   : > { %v1265_v45 = vsel %vm1205_vm1, %v1262_v51, %v1264_v60  ;;  %v1269_v23 = vrot.slane %v6036_v8, 2  ;;  %v6037_v51 = vmax.f32 %v5385_v11, 0.0  ;;  %4137 = vmatprep.subr.bf16.mxu0 %v4592_v55  ;;  %v393_v60 = vmul.f32 %v339_v52, %v285_v10  ;;  %v447_v11 = vld [vmem:[%s5987_s3 + $0x180] sm:$0xff] }
  0x70   : > { %v5570_v12 = vpack.c.bf16 %v1265_v45, %v1263_v56  ;;  %v394_v56 = vmul.f32 %v340_v35, %v286_v26  ;;  %v395_v45 = vmul.f32 %v341_v53, %v287_v25  ;;  %v5606_v10 = vpack.c.bf16 %v5459_v37, %v5443_v39 }
  0x71   : > { %v1274_v40 = vrot.slane %v6037_v51, 2  ;;  %v1270_v22 = vsel %vm1205_vm1, %v1267_v47, %v1269_v23  ;;  %v1273_v6 = vsel %vm1205_vm1, %v1271_v5, %v1272_v33  ;;  %v5615_v41 = vpack.c.bf16 %v5505_v54, %v5501_v14 }
  0x72   : > { %4138 = vmatpush3.bf16.msra.mxu0 %v4592_v55  ;;  %v1276_v47 = vrot.slane %v5443_v39, 2  ;;  %v5622_v52 = vpack.c.bf16 %v1270_v22, %v1268_v1  ;;  %v1277_v8 = vrot.slane %v5459_v37, 2  ;;  %v1279_v55 = vrot.slane %v551_v16, 2  ;;  %v4589_v39 = vld [vmem:[%s5985_s1 + $0x90] sm:$0xff]  }
  0x73   : > { %v1275_v24 = vsel %vm1205_vm1, %v1272_v33, %v1274_v40  ;;  %4171 = vmatprep.subr.bf16.mxu0 %v5584_v59  ;;  %v501_v23 = vadd.f32 %v447_v11, %v393_v60  ;;  %v1281_v26 = vrot.slane %v5501_v14, 2  ;;  %v503_v25 = vadd.f32 %v449_v44, %v395_v45  ;;  %v4593_v11 = vld [vmem:[%s5985_s1 + $0xa0] sm:$0xff]   ;;  %v4595_v45 = vld [vmem:[%s5985_s1 + $0xa8] sm:$0xff]  }
  0x74   : > { %4108 = vmatmul.mubr.bf16.gmra.mrb[16].mxu0 %v5560_v4  ;;  %v5627_v5 = vpack.c.bf16 %v1275_v24, %v1273_v6  ;;  %v1282_v35 = vrot.slane %v5505_v54, 2  ;;  %v1284_v37 = vrot.slane %v554_v17, 2  ;;  %v1278_v14 = vsel %vm1205_vm1, %v1276_v47, %v1277_v8  ;;  %v4597_v24 = vld [vmem:[%s5985_s1 + $0xb0] sm:$0xff]  }
  0x75   : > { %4111 = vmatprep.mubr.bf16.mxu0 %v5570_v12  ;;  %3900 = vmatmul.mubr.bf16.vlgmr.msra.gmra.mrb[0].mxu1 %v4845_v30  ;;  %v5640_v16 = vmax.f32 %v501_v23, 0.0  ;;  %v1280_v53 = vsel %vm1205_vm1, %v1277_v8, %v1279_v55  ;;  %v557_v50 = vmax.f32 %v503_v25, 0.0  ;;  %v4599_v23 = vld [vmem:[%s5985_s1 + $0xb8] sm:$0xff]   ;;  %v4598_v25 = vld [vmem:[%s5985_s1 + $0x1d0] sm:$0xff]  }
  0x76   : > { %3932 = vmatpush3.bf16.msra.mxu1 %v5487_v20  ;;  %3903 = vmatprep.mubr.bf16.mxu1 %v4908_v7  ;;  %v502_v20 = vadd.f32 %v448_v38, %v394_v56  ;;  %v1283_v17 = vsel %vm1205_vm1, %v1281_v26, %v1282_v35  ;;  %v1285_v33 = vsel %vm1205_vm1, %v1282_v35, %v1284_v37  ;;  %v4596_v26 = vld [vmem:[%s5985_s1 + $0x1c8] sm:$0xff]   ;;  %v4600_v35 = vld [vmem:[%s5985_s1 + $0x1d8] sm:$0xff]  }
  0x77   : > { %3933 = vmatprep.subr.bf16.mxu1 %v4587_v27  ;;  %v5651_v51 = vpack.c.bf16 %v1280_v53, %v1278_v14  ;;  %v5653_v40 = vpack.c.bf16 %v1285_v33, %v1283_v17  ;;  %v2123_v60 = vrot.slane %v557_v50, 2  ;;  %v1854_v6 = vrot.slane %v5640_v16, 1  ;;  %v4604_v37 = vld [vmem:[%s5985_s1 + $0x1e8] sm:$0xff]   ;;  %v4606_v17 = vld [vmem:[%s5985_s1 + $0x1f0] sm:$0xff]  }
  0x78   : > { %v5645_v54 = vmax.f32 %v502_v20, 0.0  ;;  %v1857_v47 = vrot.slane %v557_v50, 1  ;;  %v4601_v20 = vld [vmem:[%s5985_s1 + $0xc0] sm:$0xff]   ;;  %v1207_v14 = vrot.slane %v4775_v43, 2  ;;  %v6038_v53 = vmax.f32 %v4750_v31, 0.0  ;;  %v4608_v31 = vld [vmem:[%s5985_s1 + $0x1f8] sm:$0xff]  }
  0x79   : > { %v4610_v43 = vld [vmem:[%s5985_s1 + $0x200] sm:$0xff]  }
  0x7a   : > { %3934 = vmatpush3.bf16.msra.mxu1 %v4587_v27  ;;  %v2120_v27 = vrot.slane %v5640_v16, 2  ;;  %v2121_v1 = vrot.slane %v5645_v54, 2  ;;  %v1855_v44 = vrot.slane %v5645_v54, 1  ;;  %v1209_v50 = vrot.slane %v6038_v53, 2  ;;  %v4612_v53 = vld [vmem:[%s5985_s1 + $0x208] sm:$0xff]  }
  0x7b   : > { %3935 = vmatprep.subr.bf16.mxu1 %v4589_v39 }
  0x7c   : > { %4112 = vmatmul.mubr.bf16.gmra.mrb[20].mxu0 %v5622_v52  ;;  %v2122_v22 = vsel %vm1205_vm1, %v2120_v27, %v2121_v1  ;;  %v2124_v56 = vsel %vm1205_vm1, %v2121_v1, %v2123_v60  ;;  %v1856_v8 = vsel %vm641_vm0, %v1854_v6, %v1855_v44  ;;  %v1858_v55 = vsel %vm641_vm0, %v1855_v44, %v1857_v47  ;;  %v4603_v1 = vld [vmem:[%s5985_s1 + $0xc8] sm:$0xff]   ;;  %v4605_v60 = vld [vmem:[%s5985_s1 + $0xd0] sm:$0xff]   ;;  %v450_v44 = vld [vmem:[%s5987_s3 + $0x198] sm:$0xff] }
  0x7d   : > { %4115 = vmatprep.mubr.bf16.mxu0 %v5627_v5  ;;  %3904 = vmatmul.mubr.bf16.gmra.mrb[4].mxu1 %v4926_v57  ;;  %v5669_v38 = vpack.c.bf16 %v2124_v56, %v2122_v22  ;;  %v1210_v27 = vsel %vm1205_vm1, %v1207_v14, %v1209_v50  ;;  %v289_v22 = vld [vmem:[%s4712_s20 + $0x1a0] sm:$0xff]  ;;  %v342_v56 = vld [vmem:[%s5986_s2 + $0x198] sm:$0xff]  ;;  %v6042_v50 = vld [vmem:[#allocation3_spill] sm:$0xff] }
  0x7e   : > { %3907 = vmatprep.mubr.bf16.mxu1 %v5018_v15  ;;  %3936 = vmatpush3.bf16.msra.mxu1 %v4589_v39  ;;  %v5683_v39 = vpack.c.bf16 %v1858_v55, %v1856_v8  ;;  %v451_v47 = vld [vmem:[%s5987_s3 + $0x1a0] sm:$0xff]  ;;  %v6039_v8 = vld [vmem:[#allocation7_spill] sm:$0xff] }
  0x7f   : > { %3937 = vmatprep.subr.bf16.mxu1 %v4591_v61 }
  0x82   : > { %3938 = vmatpush3.bf16.msra.mxu1 %v4591_v61  ;;  %v1206_v61 = vrot.slane %v4773_v42, 2 }
  0x83   : > { %3939 = vmatprep.subr.bf16.mxu1 %v4593_v11 }
  0x84   : > { %4116 = vmatmul.mubr.bf16.gmra.mrb[24].mxu0 %v5651_v51  ;;  %v1208_v33 = vsel %vm1205_vm1, %v1206_v61, %v1207_v14  ;;  %v6041_v61 = vld [vmem:[#allocation2_spill] sm:$0xff]  ;;  %v4615_v14 = vld [vmem:[%s5985_s1 + $0xf8] sm:$0xff]  }
  0x85   : > { %4119 = vmatprep.mubr.bf16.mxu0 %v5653_v40  ;;  %3908 = vmatmul.mubr.bf16.gmra.mrb[8].mxu1 %v5034_v28  ;;  %v1318_v42 = vpack.c.bf16 %v1210_v27, %v1208_v33  ;;  %v4614_v33 = vld [vmem:[%s5985_s1 + $0x210] sm:$0xff]   ;;  %v4621_v27 = vld [vmem:[%s5985_s1 + $0x100] sm:$0xff]  }
  0x86   : > { %3911 = vmatprep.mubr.bf16.mxu1 %v5151_v2  ;;  %3940 = vmatpush3.bf16.msra.mxu1 %v4593_v11  ;;  %v288_v11 = vld [vmem:[%s4712_s20 + $0x198] sm:$0xff] }
  0x87   : > { %3941 = vmatprep.subr.bf16.mxu1 %v4595_v45 }
  0x8a   : > { %3942 = vmatpush3.bf16.msra.mxu1 %v4595_v45  ;;  %v343_v45 = vld [vmem:[%s5986_s2 + $0x1a0] sm:$0xff] }
  0x8b   : > { %3943 = vmatprep.subr.bf16.mxu1 %v4597_v24  ;;  %v397_v6 = vmul.f32 %v343_v45, %v289_v22  ;;  %v6047_v22 = vld [vmem:[#allocation9_spill] sm:$0xff] }
  0x8c   : > { %4120 = vmatmul.mubr.bf16.gmra.mrb[28].mxu0 %v5669_v38  ;;  %v4620_v45 = vld [vmem:[%s5985_s1 + $0x238] sm:$0xff]  }
  0x8d   : > { %4139 = vmatprep.mubr.bf16.mxu0 %v4908_v7  ;;  %3912 = vmatmul.mubr.bf16.gmra.mrb[12].mxu1 %v5194_v46 }
  0x8e   : > { %3915 = vmatprep.mubr.bf16.mxu1 %v5220_v9  ;;  %3944 = vmatpush3.bf16.msra.mxu1 %v4597_v24  ;;  %v4607_v24 = vld [vmem:[%s5985_s1 + $0xd8] sm:$0xff]  }
  0x8f   : > { %3945 = vmatprep.subr.bf16.mxu1 %v4599_v23 }
  0x92   : > { %3946 = vmatpush3.bf16.msra.mxu1 %v4599_v23  ;;  %v505_v23 = vadd.f32 %v451_v47, %v397_v6  ;;  %v6049_v6 = vld [vmem:[#allocation12_spill] sm:$0xff]  ;;  %v6050_v47 = vld [vmem:[#allocation13_spill] sm:$0xff] }
  0x93   : > { %3979 = vmatprep.subr.bf16.mxu1 %v4601_v20 }
  0x94   : > { %4140 = vmatmul.mubr.bf16.vlgmr.msra.gmra.mrb[0].mxu0 %v4926_v57 }
  0x95   : > { %4172 = vmatpush3.bf16.msra.mxu0 %v5584_v59  ;;  %4143 = vmatprep.mubr.bf16.mxu0 %v5018_v15  ;;  %v4602_v59 = vld [vmem:[%s5985_s1 + $0x1e0] sm:$0xff]  }
  0x96   : > { %4173 = vmatprep.subr.bf16.mxu0 %v4596_v26  ;;  %3916 = vmatmul.mubr.bf16.gmra.mrb[16].mxu1 %v5319_v34 }
  0x97   : > { %3919 = vmatprep.mubr.bf16.mxu1 %v5380_v18 }
  0x99   : > { %4174 = vmatpush3.bf16.msra.mxu0 %v4596_v26  ;;  %v5769_v26 = vpack.c.bf16 %v5645_v54, %v5640_v16  ;;  %v4611_v16 = vld [vmem:[%s5985_s1 + $0xe8] sm:$0xff]   ;;  %v6040_v54 = vld [vmem:[#allocation10_spill] sm:$0xff] }
  0x9a   : > { %4175 = vmatprep.subr.bf16.mxu0 %v4598_v25 }
  0x9c   : > { %4144 = vmatmul.mubr.bf16.gmra.mrb[4].mxu0 %v5034_v28 }
  0x9d   : > { %4147 = vmatprep.mubr.bf16.mxu0 %v5151_v2  ;;  %4176 = vmatpush3.bf16.msra.mxu0 %v4598_v25 }
  0x9e   : > { %4177 = vmatprep.subr.bf16.mxu0 %v4600_v35  ;;  %3920 = vmatmul.mubr.bf16.gmra.mrb[20].mxu1 %v5394_v58 }
  0x9f   : > { %3923 = vmatprep.mubr.bf16.mxu1 %v5593_v29 }
  0xa1   : > { %4178 = vmatpush3.bf16.msra.mxu0 %v4600_v35  ;;  %v5777_v35 = vmax.f32 %v505_v23, 0.0 }
  0xa2   : > { %4179 = vmatprep.subr.bf16.mxu0 %v4602_v59 }
  0xa4   : > { %4148 = vmatmul.mubr.bf16.gmra.mrb[8].mxu0 %v5194_v46 }
  0xa5   : > { %4151 = vmatprep.mubr.bf16.mxu0 %v5220_v9  ;;  %4180 = vmatpush3.bf16.msra.mxu0 %v4602_v59 }
  0xa6   : > { %4181 = vmatprep.subr.bf16.mxu0 %v4604_v37  ;;  %3924 = vmatmul.mubr.bf16.gmra.mrb[24].mxu1 %v5597_v62 }
  0xa7   : > { %3927 = vmatprep.mubr.bf16.mxu1 %v5606_v10 }
  0xa9   : > { %4182 = vmatpush3.bf16.msra.mxu0 %v4604_v37  ;;  %v4613_v37 = vld [vmem:[%s5985_s1 + $0xf0] sm:$0xff]  }
  0xaa   : > { %4183 = vmatprep.subr.bf16.mxu0 %v4606_v17 }
  0xac   : > { %4152 = vmatmul.mubr.bf16.gmra.mrb[12].mxu0 %v5319_v34 }
  0xad   : > { %4155 = vmatprep.mubr.bf16.mxu0 %v5380_v18  ;;  %4184 = vmatpush3.bf16.msra.mxu0 %v4606_v17  ;;  %v6043_v17 = vld [vmem:[#allocation4_spill] sm:$0xff] }
  0xae   : > { %4185 = vmatprep.subr.bf16.mxu0 %v4608_v31  ;;  %3928 = vmatmul.mubr.bf16.gmra.mrb[28].mxu1 %v5615_v41 }
  0xaf   : > { %3947 = vmatprep.mubr.bf16.mxu1 %v1318_v42  ;;  %v6044_v42 = vld [vmem:[#allocation5_spill] sm:$0xff] }
  0xb1   : > { %4186 = vmatpush3.bf16.msra.mxu0 %v4608_v31  ;;  %v4616_v31 = vld [vmem:[%s5985_s1 + $0x218] sm:$0xff]  }
  0xb2   : > { %4219 = vmatprep.subr.bf16.mxu0 %v4610_v43 }
  0xb4   : > { %4156 = vmatmul.mubr.bf16.gmra.mrb[16].mxu0 %v5394_v58 }
  0xb5   : > { %4159 = vmatprep.mubr.bf16.mxu0 %v5593_v29 }
  0xb6   : > { %3948 = vmatmul.mubr.bf16.vlgmr.msra.gmra.mrb[0].mxu1 %v4954_v32  ;;  %v396_v32 = vmul.f32 %v342_v56, %v288_v11  ;;  %v6046_v11 = vld [vmem:[#allocation8_spill] sm:$0xff] }
  0xb7   : > { %3980 = vmatpush3.bf16.msra.mxu1 %v4601_v20  ;;  %3951 = vmatprep.mubr.bf16.mxu1 %v5023_v21  ;;  %v4609_v20 = vld [vmem:[%s5985_s1 + $0xe0] sm:$0xff]   ;;  %v4619_v56 = vld [vmem:[%s5985_s1 + $0x230] sm:$0xff]  }
  0xb8   : > { %3981 = vmatprep.subr.bf16.mxu1 %v4603_v1  ;;  %v504_v55 = vadd.f32 %v450_v44, %v396_v32  ;;  %v6048_v32 = vld [vmem:[#allocation11_spill] sm:$0xff] }
  0xb9   : > { %v344_v44 = vld [vmem:[%s5986_s2 + $0x1a8] sm:$0x3] }
  0xba   : > { %v5775_v25 = vmax.f32 %v504_v55, 0.0  ;;  %v6051_v55 = vld [vmem:[#allocation14_spill] sm:$0xff] }
  0xbb   : > { %3982 = vmatpush3.bf16.msra.mxu1 %v4603_v1  ;;  %v4617_v1 = vld [vmem:[%s5985_s1 + $0x220] sm:$0xff]  }
  0xbc   : > { %4160 = vmatmul.mubr.bf16.gmra.mrb[20].mxu0 %v5597_v62  ;;  %3983 = vmatprep.subr.bf16.mxu1 %v4605_v60  ;;  %v2386_v59 = vpack.c.bf16 %v5777_v35, %v5775_v25 }
  0xbd   : > { %4163 = vmatprep.mubr.bf16.mxu0 %v5606_v10 }
  0xbe   : > { %3952 = vmatmul.mubr.bf16.gmra.mrb[4].mxu1 %v5077_v49 }
  0xbf   : > { %3955 = vmatprep.mubr.bf16.mxu1 %v6039_v8  ;;  %3984 = vmatpush3.bf16.msra.mxu1 %v4605_v60  ;;  %v4618_v60 = vld [vmem:[%s5985_s1 + $0x228] sm:$0xff]  }
  0xc0   : > { %3985 = vmatprep.subr.bf16.mxu1 %v4607_v24 }
  0xc3   : > { %3986 = vmatpush3.bf16.msra.mxu1 %v4607_v24  ;;  %v290_v24 = vld [vmem:[%s4712_s20 + $0x1a8] sm:$0x3] }
  0xc4   : > { %4164 = vmatmul.mubr.bf16.gmra.mrb[24].mxu0 %v5615_v41  ;;  %3987 = vmatprep.subr.bf16.mxu1 %v4609_v20  ;;  %v398_v23 = vmul.f32 %v344_v44, %v290_v24 }
  0xc5   : > { %4167 = vmatprep.mubr.bf16.mxu0 %v5769_v26 }
  0xc6   : > { %3956 = vmatmul.mubr.bf16.gmra.mrb[8].mxu1 %v6040_v54 }
  0xc7   : > { %3959 = vmatprep.mubr.bf16.mxu1 %v5302_v3  ;;  %3988 = vmatpush3.bf16.msra.mxu1 %v4609_v20  ;;  %v452_v20 = vld [vmem:[%s5987_s3 + $0x1a8] sm:$0x3] }
  0xc8   : > { %3989 = vmatprep.subr.bf16.mxu1 %v4611_v16 }
  0xcb   : > { %3990 = vmatpush3.bf16.msra.mxu1 %v4611_v16  ;;  %v5850_v16 = vadd.f32 %v452_v20, %v398_v23 }
  0xcc   : > { %4168 = vmatmul.mubr.bf16.gmra.mrb[28].mxu0 %v2386_v59  ;;  %3991 = vmatprep.subr.bf16.mxu1 %v4613_v37  ;;  %v4623_v59 = vld [vmem:[%s5985_s1 + $0x110] sm:$0xff]  }
  0xcd   : > { %4187 = vmatprep.mubr.bf16.mxu0 %v6041_v61  ;;  %v2649_v61 = vrot.slane %v5777_v35, 1 }
  0xce   : > { %3960 = vmatmul.mubr.bf16.gmra.mrb[12].mxu1 %v5478_v19 }
  0xcf   : > { %3963 = vmatprep.mubr.bf16.mxu1 %v5516_v13  ;;  %3992 = vmatpush3.bf16.msra.mxu1 %v4613_v37  ;;  %v2648_v37 = vrot.slane %v5775_v25, 1 }
  0xd0   : > { %3993 = vmatprep.subr.bf16.mxu1 %v4615_v14 }
  0xd3   : > { %3994 = vmatpush3.bf16.msra.mxu1 %v4615_v14 }
  0xd4   : > { %4188 = vmatmul.mubr.bf16.vlgmr.msra.gmra.mrb[0].mxu0 %v6042_v50  ;;  %4267 = vmatprep.subr.bf16.mxu1 %v4621_v27 }
  0xd5   : > { %4220 = vmatpush3.bf16.msra.mxu0 %v4610_v43  ;;  %4191 = vmatprep.mubr.bf16.mxu0 %v6043_v17  ;;  %v6045_v43 = vld [vmem:[#allocation6_spill] sm:$0xff]  ;;  %v4626_v17 = vld [vmem:[%s5985_s1 + $0x128] sm:$0xff]  }
  0xd6   : > { %4221 = vmatprep.subr.bf16.mxu0 %v4612_v53  ;;  %3964 = vmatmul.mubr.bf16.gmra.mrb[16].mxu1 %v5531_v63 }
  0xd7   : > { %3967 = vmatprep.mubr.bf16.mxu1 %v5560_v4 }
  0xd9   : > { %4222 = vmatpush3.bf16.msra.mxu0 %v4612_v53  ;;  %v4625_v53 = vld [vmem:[%s5985_s1 + $0x120] sm:$0xff]  }
  0xda   : > { %4223 = vmatprep.subr.bf16.mxu0 %v4614_v33 }
  0xdc   : > { %4192 = vmatmul.mubr.bf16.gmra.mrb[4].mxu0 %v6044_v42 }
  0xdd   : > { %4195 = vmatprep.mubr.bf16.mxu0 %v6045_v43  ;;  %4224 = vmatpush3.bf16.msra.mxu0 %v4614_v33  ;;  %v4627_v33 = vld [vmem:[%s5985_s1 + $0x130] sm:$0xff]  }
  0xde   : > { %4225 = vmatprep.subr.bf16.mxu0 %v4616_v31  ;;  %3968 = vmatmul.mubr.bf16.gmra.mrb[20].mxu1 %v5570_v12 }
  0xdf   : > { %3971 = vmatprep.mubr.bf16.mxu1 %v5622_v52 }
  0xe1   : > { %4226 = vmatpush3.bf16.msra.mxu0 %v4616_v31 }
  0xe2   : > { %4227 = vmatprep.subr.bf16.mxu0 %v4617_v1 }
  0xe4   : > { %4196 = vmatmul.mubr.bf16.gmra.mrb[8].mxu0 %v6046_v11 }
  0xe5   : > { %4199 = vmatprep.mubr.bf16.mxu0 %v6047_v22  ;;  %4228 = vmatpush3.bf16.msra.mxu0 %v4617_v1 }
  0xe6   : > { %4229 = vmatprep.subr.bf16.mxu0 %v4618_v60  ;;  %3972 = vmatmul.mubr.bf16.gmra.mrb[24].mxu1 %v5627_v5 }
  0xe7   : > { %3975 = vmatprep.mubr.bf16.mxu1 %v5651_v51 }
  0xe9   : > { %4230 = vmatpush3.bf16.msra.mxu0 %v4618_v60 }
  0xea   : > { %4231 = vmatprep.subr.bf16.mxu0 %v4619_v56 }
  0xec   : > { %4200 = vmatmul.mubr.bf16.gmra.mrb[12].mxu0 %v6048_v32 }
  0xed   : > { %4203 = vmatprep.mubr.bf16.mxu0 %v6049_v6  ;;  %4232 = vmatpush3.bf16.msra.mxu0 %v4619_v56 }
  0xee   : > { %4233 = vmatprep.subr.bf16.mxu0 %v4620_v45  ;;  %3976 = vmatmul.mubr.bf16.gmra.mrb[28].mxu1 %v5653_v40 }
  0xef   : > { %3995 = vmatprep.mubr.bf16.mxu1 %v4845_v30  ;;  %v4622_v30 = vld [vmem:[%s5985_s1 + $0x108] sm:$0xff]  }
  0xf1   : > { %4234 = vmatpush3.bf16.msra.mxu0 %v4620_v45 }
  0xf4   : > { %4204 = vmatmul.mubr.bf16.gmra.mrb[16].mxu0 %v6050_v47 }
  0xf5   : > { %4207 = vmatprep.mubr.bf16.mxu0 %v6051_v55 }
  0xf6   : > { %3996 = vmatmul.mubr.bf16.vlgmr.msra.gmra.mrb[0].mxu1 %v4908_v7  ;;  %v560_v7 = vmax.f32 %v5850_v16, 0.0 }
  0xf7   : > { %4275 = vmatpush3.bf16.msra.mxu1 %v4621_v27  ;;  %3999 = vmatprep.mubr.bf16.mxu1 %v4926_v57  ;;  %v4624_v57 = vld [vmem:[%s5985_s1 + $0x118] sm:$0xff]  }
  0xf8   : > { %4268 = vmatprep.subr.bf16.mxu1 %v4622_v30  ;;  %v2651_v14 = vrot.slane %v560_v7, 1 }
  0xfb   : > { %4276 = vmatpush3.bf16.msra.mxu1 %v4622_v30 }
  0xfc   : > { %4208 = vmatmul.mubr.bf16.gmra.mrb[20].mxu0 %v5465_v48  ;;  %4269 = vmatprep.subr.bf16.mxu1 %v4623_v59 }
  0xfd   : > { %4211 = vmatprep.mubr.bf16.mxu0 %v5497_v0 }
  0xfe   : > { %4000 = vmatmul.mubr.bf16.gmra.mrb[4].mxu1 %v5018_v15  ;;  %v2650_v15 = vsel %vm641_vm0, %v2648_v37, %v2649_v61 }
  0xff   : > { %4003 = vmatprep.mubr.bf16.mxu1 %v5034_v28  ;;  %4277 = vmatpush3.bf16.msra.mxu1 %v4623_v59  ;;  %v2652_v28 = vsel %vm641_vm0, %v2649_v61, %v2651_v14 }
 0x100   : > { %4270 = vmatprep.subr.bf16.mxu1 %v4624_v57  ;;  %v2655_v50 = vpack.c.bf16 %v2652_v28, %v2650_v15 }
 0x103   : > { %4278 = vmatpush3.bf16.msra.mxu1 %v4624_v57 }
 0x104   : > { %4212 = vmatmul.mubr.bf16.gmra.mrb[24].mxu0 %v5543_v36  ;;  %4271 = vmatprep.subr.bf16.mxu1 %v4625_v53 }
 0x105   : > { %4215 = vmatprep.mubr.bf16.mxu0 %v5683_v39 }
 0x106   : > { %4004 = vmatmul.mubr.bf16.gmra.mrb[8].mxu1 %v5151_v2  ;;  %v4628_v2 = vld [vmem:[%s5985_s1 + $0x138] sm:$0xff]  }
 0x107   : > { %4007 = vmatprep.mubr.bf16.mxu1 %v5194_v46  ;;  %4279 = vmatpush3.bf16.msra.mxu1 %v4625_v53  ;;  %v2917_v46 = vrot.slane %v560_v7, 2 }
 0x108   : > { %4272 = vmatprep.subr.bf16.mxu1 %v4626_v17 }
 0x10b   : > { %4280 = vmatpush3.bf16.msra.mxu1 %v4626_v17 }
 0x10c   : > { %4216 = vmatmul.mubr.bf16.gmra.mrb[28].mxu0 %v2655_v50  ;;  %4273 = vmatprep.subr.bf16.mxu1 %v4627_v33 }
 0x10d   : > { %4235 = vmatprep.mubr.bf16.mxu0 %v5023_v21  ;;  %v2914_v21 = vrot.slane %v5775_v25, 2 }
 0x10e   : > { %4008 = vmatmul.mubr.bf16.gmra.mrb[12].mxu1 %v5220_v9 }
 0x10f   : > { %4011 = vmatprep.mubr.bf16.mxu1 %v5319_v34  ;;  %4281 = vmatpush3.bf16.msra.mxu1 %v4627_v33 }
 0x110   : > { %4274 = vmatprep.subr.bf16.mxu1 %v4628_v2 }
 0x113   : > { %4282 = vmatpush3.bf16.msra.mxu1 %v4628_v2 }
 0x114   : > { %4236 = vmatmul.mubr.bf16.vlgmr.msra.gmra.mrb[0].mxu0 %v5077_v49  ;;  %v2915_v49 = vrot.slane %v5777_v35, 2 }
 0x115   : > { %4239 = vmatprep.mubr.bf16.mxu0 %v6039_v8 }
 0x116   : > { %4012 = vmatmul.mubr.bf16.gmra.mrb[16].mxu1 %v5380_v18  ;;  %v2916_v9 = vsel %vm1205_vm1, %v2914_v21, %v2915_v49  ;;  %v4637_v18 = vmov 0.0  }
 0x117   : > { %4015 = vmatprep.mubr.bf16.mxu1 %v5394_v58  ;;  %3320 = vst [vmem:[%s5923_s27 + $0x2] sm:$0x3f] %v4637_v18 }
 0x11c   : > { %4240 = vmatmul.mubr.bf16.gmra.mrb[4].mxu0 %v6040_v54 }
 0x11d   : > { %4243 = vmatprep.mubr.bf16.mxu0 %v5302_v3  ;;  %v2918_v3 = vsel %vm1205_vm1, %v2915_v49, %v2917_v46 }
 0x11e   : > { %4016 = vmatmul.mubr.bf16.gmra.mrb[20].mxu1 %v5593_v29  ;;  %v2921_v34 = vpack.c.bf16 %v2918_v3, %v2916_v9 }
 0x11f   : > { %4019 = vmatprep.mubr.bf16.mxu1 %v5597_v62 }
 0x124   : > { %4244 = vmatmul.mubr.bf16.gmra.mrb[8].mxu0 %v5478_v19 }
 0x125   : > { %4247 = vmatprep.mubr.bf16.mxu0 %v5516_v13 }
 0x126   : > { %4020 = vmatmul.mubr.bf16.gmra.mrb[24].mxu1 %v5606_v10 }
 0x127   : > { %4023 = vmatprep.mubr.bf16.mxu1 %v5615_v41 }
 0x12c   : > { %4248 = vmatmul.mubr.bf16.gmra.mrb[12].mxu0 %v5531_v63 }
 0x12d   : > { %4251 = vmatprep.mubr.bf16.mxu0 %v5560_v4 }
 0x12e   : > { %4024 = vmatmul.mubr.bf16.gmra.mrb[28].mxu1 %v5769_v26 }
 0x12f   : > { %4059 = vmatprep.mubr.bf16.mxu1 %v6048_v32 }
 0x134   : > { %4252 = vmatmul.mubr.bf16.gmra.mrb[16].mxu0 %v5570_v12 }
 0x135   : > { %4255 = vmatprep.mubr.bf16.mxu0 %v5622_v52 }
 0x136   : > { %4060 = vmatmul.mubr.bf16.vlgmr.msra.gmra.mrb[16].mxu1 %v6049_v6 }
 0x137   : > { %4063 = vmatprep.mubr.bf16.mxu1 %v6050_v47 }
 0x13c   : > { %4256 = vmatmul.mubr.bf16.gmra.mrb[20].mxu0 %v5627_v5 }
 0x13d   : > { %4259 = vmatprep.mubr.bf16.mxu0 %v5651_v51 }
 0x13e   : > { %4064 = vmatmul.mubr.bf16.gmra.mrb[20].mxu1 %v6051_v55 }
 0x13f   : > { %4067 = vmatprep.mubr.bf16.mxu1 %v5465_v48 }
 0x144   : > { %4260 = vmatmul.mubr.bf16.gmra.mrb[24].mxu0 %v5653_v40 }
 0x145   : > { %4263 = vmatprep.mubr.bf16.mxu0 %v5669_v38 }
 0x146   : > { %4068 = vmatmul.mubr.bf16.gmra.mrb[24].mxu1 %v5497_v0 }
 0x147   : > { %4071 = vmatprep.mubr.bf16.mxu1 %v5543_v36 }
 0x14c   : > { %4264 = vmatmul.mubr.bf16.gmra.mrb[28].mxu0 %v2921_v34 }
 0x14e   : > { %4072 = vmatmul.mubr.bf16.gmra.mrb[28].mxu1 %v5683_v39 }
 0x1c9   : > { %v3997_v58 = vpop.f32.mrb[0].mxu1 }
 0x1ca   : > { %v1692_v48 = vpop.f32.mrb[1].mxu1 }
 0x1cb   : > { %v3998_v19 = vpop.f32.mrb[2].mxu1 }
 0x1cc   : > { %v1695_v0 = vpop.f32.mrb[3].mxu1 }
 0x1d1   : > { %v4001_v13 = vpop.f32.mrb[4].mxu1 }
 0x1d2   : > { %v1708_v63 = vpop.f32.mrb[5].mxu1 }
 0x1d3   : > { %v4002_v36 = vpop.f32.mrb[6].mxu1 }
 0x1d4   : > { %v1711_v4 = vpop.f32.mrb[7].mxu1 }
 0x1d9   : > { %v4005_v12 = vpop.f32.mrb[8].mxu1 }
 0x1da   : > { %v1724_v29 = vpop.f32.mrb[9].mxu1 }
 0x1db   : > { %v4006_v62 = vpop.f32.mrb[10].mxu1 }
 0x1dc   : > { %v5926_v10 = vpop.f32.mrb[11].mxu1 }
 0x1e1   : > { %v5928_v41 = vpop.f32.mrb[12].mxu1 }
 0x1e2   : > { %v5930_v52 = vpop.f32.mrb[13].mxu1 }
 0x1e3   : > { %v5932_v5 = vpop.f32.mrb[14].mxu1 }
 0x1e4   : > { %v5935_v51 = vpop.f32.mrb[15].mxu1 }
 0x1e7   : > { %v4237_v40 = vpop.f32.mrb[0].mxu0 }
 0x1e8   : > { %v4283_v38 = vadd.f32 %v4237_v40, %v3997_v58  ;;  %v3021_v39 = vpop.f32.mrb[1].mxu0 }
 0x1e9   : > { %v4284_v8 = vadd.f32 %v3021_v39, %v1692_v48  ;;  %v4238_v26 = vpop.f32.mrb[2].mxu0 }
 0x1ea   : > { %3182 = vst [vmem:[%s5940_s6 + $0x10] sm:$0xff] %v4283_v38  ;;  %v4285_v25 = vadd.f32 %v4238_v26, %v3998_v19  ;;  %v3024_v35 = vpop.f32.mrb[3].mxu0  ;;  %v3252_v43 = vmul.f32 %v4283_v38, %v4283_v38 }
 0x1eb   : > { %3180 = vst [vmem:[%s5940_s6] sm:$0xff] %v4284_v8  ;;  %v4286_v54 = vadd.f32 %v3024_v35, %v1695_v0  ;;  %v3250_v27 = vmul.f32 %v4284_v8, %v4284_v8 }
 0x1ec   : > { %3183 = vst [vmem:[%s5940_s6 + $0x18] sm:$0xff] %v4285_v25  ;;  %v3253_v45 = vmul.f32 %v4285_v25, %v4285_v25 }
 0x1ed   : > { %3181 = vst [vmem:[%s5940_s6 + $0x8] sm:$0xff] %v4286_v54  ;;  %v3212_v31 = vadd.f32 %v4286_v54, %v4284_v8  ;;  %v3251_v42 = vmul.f32 %v4286_v54, %v4286_v54 }
 0x1ef   : > { %v3213_v1 = vadd.f32 %v4283_v38, %v3212_v31  ;;  %v3282_v60 = vadd.f32 %v3251_v42, %v3250_v27  ;;  %v4241_v11 = vpop.f32.mrb[4].mxu0 }
 0x1f0   : > { %v4287_v22 = vadd.f32 %v4241_v11, %v4001_v13  ;;  %v3037_v56 = vpop.f32.mrb[5].mxu0 }
 0x1f1   : > { %v3283_v32 = vadd.f32 %v3282_v60, %v3252_v43  ;;  %v4288_v6 = vadd.f32 %v3037_v56, %v1708_v63  ;;  %v3214_v24 = vadd.f32 %v4285_v25, %v3213_v1  ;;  %v4242_v44 = vpop.f32.mrb[6].mxu0 }
 0x1f2   : > { %3186 = vst [vmem:[%s5940_s6 + $0x30] sm:$0xff] %v4287_v22  ;;  %v4289_v47 = vadd.f32 %v4242_v44, %v4002_v36  ;;  %v3040_v55 = vpop.f32.mrb[7].mxu0  ;;  %v3256_v37 = vmul.f32 %v4287_v22, %v4287_v22 }
 0x1f3   : > { %3184 = vst [vmem:[%s5940_s6 + $0x20] sm:$0xff] %v4288_v6  ;;  %v3215_v23 = vadd.f32 %v4288_v6, %v3214_v24  ;;  %v3254_v20 = vmul.f32 %v4288_v6, %v4288_v6  ;;  %v3284_v30 = vadd.f32 %v3283_v32, %v3253_v45  ;;  %v4290_v16 = vadd.f32 %v3040_v55, %v1711_v4 }
 0x1f4   : > { %3187 = vst [vmem:[%s5940_s6 + $0x38] sm:$0xff] %v4289_v47  ;;  %v3257_v50 = vmul.f32 %v4289_v47, %v4289_v47 }
 0x1f5   : > { %v3285_v59 = vadd.f32 %v3284_v30, %v3254_v20  ;;  %3185 = vst [vmem:[%s5940_s6 + $0x28] sm:$0xff] %v4290_v16  ;;  %v3216_v7 = vadd.f32 %v4290_v16, %v3215_v23  ;;  %v3255_v57 = vmul.f32 %v4290_v16, %v4290_v16 }
 0x1f7   : > { %v3217_v61 = vadd.f32 %v4287_v22, %v3216_v7  ;;  %v3286_v14 = vadd.f32 %v3285_v59, %v3255_v57  ;;  %v4245_v15 = vpop.f32.mrb[8].mxu0 }
 0x1f8   : > { %v4291_v28 = vadd.f32 %v4245_v15, %v4005_v12  ;;  %v3053_v53 = vpop.f32.mrb[9].mxu0 }
 0x1f9   : > { %v3287_v17 = vadd.f32 %v3286_v14, %v3256_v37  ;;  %v4292_v33 = vadd.f32 %v3053_v53, %v1724_v29  ;;  %v3218_v2 = vadd.f32 %v4289_v47, %v3217_v61  ;;  %v4246_v21 = vpop.f32.mrb[10].mxu0 }
 0x1fa   : > { %3190 = vst [vmem:[%s5940_s6 + $0x50] sm:$0xff] %v4291_v28  ;;  %v4293_v49 = vadd.f32 %v4246_v21, %v4006_v62  ;;  %v3056_v46 = vpop.f32.mrb[11].mxu0  ;;  %v3260_v0 = vmul.f32 %v4291_v28, %v4291_v28 }
 0x1fb   : > { %3188 = vst [vmem:[%s5940_s6 + $0x40] sm:$0xff] %v4292_v33  ;;  %v3219_v9 = vadd.f32 %v4292_v33, %v3218_v2  ;;  %v3258_v3 = vmul.f32 %v4292_v33, %v4292_v33  ;;  %v3288_v34 = vadd.f32 %v3287_v17, %v3257_v50  ;;  %v4294_v18 = vadd.f32 %v3056_v46, %v5926_v10 }
 0x1fc   : > { %3191 = vst [vmem:[%s5940_s6 + $0x58] sm:$0xff] %v4293_v49  ;;  %v3261_v29 = vmul.f32 %v4293_v49, %v4293_v49 }
 0x1fd   : > { %v3289_v58 = vadd.f32 %v3288_v34, %v3258_v3  ;;  %3189 = vst [vmem:[%s5940_s6 + $0x48] sm:$0xff] %v4294_v18  ;;  %v3220_v48 = vadd.f32 %v4294_v18, %v3219_v9  ;;  %v3259_v19 = vmul.f32 %v4294_v18, %v4294_v18 }
 0x1ff   : > { %v3221_v13 = vadd.f32 %v4291_v28, %v3220_v48  ;;  %v3290_v63 = vadd.f32 %v3289_v58, %v3259_v19  ;;  %v4249_v36 = vpop.f32.mrb[12].mxu0 }
 0x200   : > { %v4295_v4 = vadd.f32 %v4249_v36, %v5928_v41  ;;  %v3069_v12 = vpop.f32.mrb[13].mxu0 }
 0x201   : > { %v3291_v62 = vadd.f32 %v3290_v63, %v3260_v0  ;;  %v4296_v10 = vadd.f32 %v3069_v12, %v5930_v52  ;;  %v3222_v40 = vadd.f32 %v4293_v49, %v3221_v13  ;;  %v4250_v38 = vpop.f32.mrb[14].mxu0 }
 0x202   : > { %3194 = vst [vmem:[%s5940_s6 + $0x70] sm:$0xff] %v4295_v4  ;;  %v4297_v39 = vadd.f32 %v4250_v38, %v5932_v5  ;;  %v3072_v8 = vpop.f32.mrb[15].mxu0  ;;  %v3264_v42 = vmul.f32 %v4295_v4, %v4295_v4 }
 0x203   : > { %3192 = vst [vmem:[%s5940_s6 + $0x60] sm:$0xff] %v4296_v10  ;;  %v3223_v26 = vadd.f32 %v4296_v10, %v3222_v40  ;;  %v3262_v25 = vmul.f32 %v4296_v10, %v4296_v10  ;;  %v3292_v35 = vadd.f32 %v3291_v62, %v3261_v29  ;;  %v4298_v54 = vadd.f32 %v3072_v8, %v5935_v51 }
 0x204   : > { %3195 = vst [vmem:[%s5940_s6 + $0x78] sm:$0xff] %v4297_v39  ;;  %v3265_v5 = vmul.f32 %v4297_v39, %v4297_v39 }
 0x205   : > { %v3293_v41 = vadd.f32 %v3292_v35, %v3262_v25  ;;  %3193 = vst [vmem:[%s5940_s6 + $0x68] sm:$0xff] %v4298_v54  ;;  %v3224_v27 = vadd.f32 %v4298_v54, %v3223_v26  ;;  %v3263_v31 = vmul.f32 %v4298_v54, %v4298_v54 }
 0x207   : > { %v3225_v52 = vadd.f32 %v4295_v4, %v3224_v27  ;;  %v3294_v43 = vadd.f32 %v3293_v41, %v3263_v31  ;;  %v4253_v1 = vpop.f32.mrb[16].mxu0 }
 0x208   : > { %v3085_v60 = vpop.f32.mrb[17].mxu0 }
 0x209   : > { %v3295_v11 = vadd.f32 %v3294_v43, %v3264_v42  ;;  %v3226_v22 = vadd.f32 %v4297_v39, %v3225_v52  ;;  %v4254_v56 = vpop.f32.mrb[18].mxu0  ;;  %v4061_v45 = vpop.f32.mrb[16].mxu1 }
 0x20a   : > { %v3088_v32 = vpop.f32.mrb[19].mxu0  ;;  %v4299_v51 = vadd.f32 %v4253_v1, %v4061_v45  ;;  %v2025_v6 = vpop.f32.mrb[17].mxu1 }
 0x20b   : > { %v3296_v24 = vadd.f32 %v3295_v11, %v3265_v5  ;;  %v4300_v44 = vadd.f32 %v3085_v60, %v2025_v6  ;;  %v4062_v47 = vpop.f32.mrb[18].mxu1 }
 0x20c   : > { %3198 = vst [vmem:[%s5940_s6 + $0x90] sm:$0xff] %v4299_v51  ;;  %v4301_v55 = vadd.f32 %v4254_v56, %v4062_v47  ;;  %v2028_v23 = vpop.f32.mrb[19].mxu1  ;;  %v3268_v15 = vmul.f32 %v4299_v51, %v4299_v51 }
 0x20d   : > { %3196 = vst [vmem:[%s5940_s6 + $0x80] sm:$0xff] %v4300_v44  ;;  %v3227_v20 = vadd.f32 %v4300_v44, %v3226_v22  ;;  %v3266_v30 = vmul.f32 %v4300_v44, %v4300_v44  ;;  %v4302_v16 = vadd.f32 %v3088_v32, %v2028_v23 }
 0x20e   : > { %3199 = vst [vmem:[%s5940_s6 + $0x98] sm:$0xff] %v4301_v55  ;;  %v3269_v21 = vmul.f32 %v4301_v55, %v4301_v55 }
 0x20f   : > { %v4257_v59 = vpop.f32.mrb[20].mxu0  ;;  %v3297_v7 = vadd.f32 %v3296_v24, %v3266_v30  ;;  %3197 = vst [vmem:[%s5940_s6 + $0x88] sm:$0xff] %v4302_v16  ;;  %v3228_v57 = vadd.f32 %v4302_v16, %v3227_v20  ;;  %v3267_v37 = vmul.f32 %v4302_v16, %v4302_v16 }
 0x210   : > { %v3101_v61 = vpop.f32.mrb[21].mxu0 }
 0x211   : > { %v4258_v14 = vpop.f32.mrb[22].mxu0  ;;  %v3229_v28 = vadd.f32 %v4299_v51, %v3228_v57  ;;  %v3298_v53 = vadd.f32 %v3297_v7, %v3267_v37  ;;  %v4065_v50 = vpop.f32.mrb[20].mxu1 }
 0x212   : > { %v3104_v17 = vpop.f32.mrb[23].mxu0  ;;  %v4303_v33 = vadd.f32 %v4257_v59, %v4065_v50  ;;  %v2041_v2 = vpop.f32.mrb[21].mxu1 }
 0x213   : > { %v3299_v49 = vadd.f32 %v3298_v53, %v3268_v15  ;;  %v4304_v46 = vadd.f32 %v3101_v61, %v2041_v2  ;;  %v3230_v9 = vadd.f32 %v4301_v55, %v3229_v28  ;;  %v4066_v3 = vpop.f32.mrb[22].mxu1 }
 0x214   : > { %3202 = vst [vmem:[%s5940_s6 + $0xb0] sm:$0xff] %v4303_v33  ;;  %v4305_v34 = vadd.f32 %v4258_v14, %v4066_v3  ;;  %v2044_v18 = vpop.f32.mrb[23].mxu1  ;;  %v3272_v62 = vmul.f32 %v4303_v33, %v4303_v33 }
 0x215   : > { %3200 = vst [vmem:[%s5940_s6 + $0xa0] sm:$0xff] %v4304_v46  ;;  %v3231_v58 = vadd.f32 %v4304_v46, %v3230_v9  ;;  %v3270_v48 = vmul.f32 %v4304_v46, %v4304_v46  ;;  %v3300_v19 = vadd.f32 %v3299_v49, %v3269_v21  ;;  %v4306_v0 = vadd.f32 %v3104_v17, %v2044_v18 }
 0x216   : > { %3203 = vst [vmem:[%s5940_s6 + $0xb8] sm:$0xff] %v4305_v34  ;;  %v3273_v25 = vmul.f32 %v4305_v34, %v4305_v34 }
 0x217   : > { %v4261_v13 = vpop.f32.mrb[24].mxu0  ;;  %v3301_v63 = vadd.f32 %v3300_v19, %v3270_v48  ;;  %3201 = vst [vmem:[%s5940_s6 + $0xa8] sm:$0xff] %v4306_v0  ;;  %v3232_v36 = vadd.f32 %v4306_v0, %v3231_v58  ;;  %v3271_v4 = vmul.f32 %v4306_v0, %v4306_v0 }
 0x218   : > { %v3117_v12 = vpop.f32.mrb[25].mxu0 }
 0x219   : > { %v4262_v29 = vpop.f32.mrb[26].mxu0  ;;  %v3233_v10 = vadd.f32 %v4303_v33, %v3232_v36  ;;  %v3302_v40 = vadd.f32 %v3301_v63, %v3271_v4  ;;  %v4069_v38 = vpop.f32.mrb[24].mxu1 }
 0x21a   : > { %v3120_v39 = vpop.f32.mrb[27].mxu0  ;;  %v4307_v8 = vadd.f32 %v4261_v13, %v4069_v38  ;;  %v2057_v26 = vpop.f32.mrb[25].mxu1 }
 0x21b   : > { %v3303_v35 = vadd.f32 %v3302_v40, %v3272_v62  ;;  %v4308_v54 = vadd.f32 %v3117_v12, %v2057_v26  ;;  %v3234_v41 = vadd.f32 %v4305_v34, %v3233_v10  ;;  %v4070_v27 = vpop.f32.mrb[26].mxu1 }
 0x21c   : > { %3206 = vst [vmem:[%s5940_s6 + $0xd0] sm:$0xff] %v4307_v8  ;;  %v4309_v31 = vadd.f32 %v4262_v29, %v4070_v27  ;;  %v2060_v42 = vpop.f32.mrb[27].mxu1  ;;  %v3276_v51 = vmul.f32 %v4307_v8, %v4307_v8 }
 0x21d   : > { %3204 = vst [vmem:[%s5940_s6 + $0xc0] sm:$0xff] %v4308_v54  ;;  %v3235_v52 = vadd.f32 %v4308_v54, %v3234_v41  ;;  %v3274_v43 = vmul.f32 %v4308_v54, %v4308_v54  ;;  %v3304_v1 = vadd.f32 %v3303_v35, %v3273_v25  ;;  %v4310_v60 = vadd.f32 %v3120_v39, %v2060_v42 }
 0x21e   : > { %3207 = vst [vmem:[%s5940_s6 + $0xd8] sm:$0xff] %v4309_v31  ;;  %v3277_v20 = vmul.f32 %v4309_v31, %v4309_v31 }
 0x21f   : > { %v4265_v5 = vpop.f32.mrb[28].mxu0  ;;  %v3305_v11 = vadd.f32 %v3304_v1, %v3274_v43  ;;  %3205 = vst [vmem:[%s5940_s6 + $0xc8] sm:$0xff] %v4310_v60  ;;  %v3236_v22 = vadd.f32 %v4310_v60, %v3235_v52  ;;  %v3275_v56 = vmul.f32 %v4310_v60, %v4310_v60 }
 0x220   : > { %v3133_v45 = vpop.f32.mrb[29].mxu0 }
 0x221   : > { %v4266_v32 = vpop.f32.mrb[30].mxu0  ;;  %v3237_v6 = vadd.f32 %v4307_v8, %v3236_v22  ;;  %v3306_v24 = vadd.f32 %v3305_v11, %v3275_v56  ;;  %v4073_v44 = vpop.f32.mrb[28].mxu1 }
 0x222   : > { %v3136_v47 = vpop.f32.mrb[31].mxu0  ;;  %v4311_v55 = vadd.f32 %v4265_v5, %v4073_v44  ;;  %v2073_v23 = vpop.f32.mrb[29].mxu1 }
 0x223   : > { %v3307_v30 = vadd.f32 %v3306_v24, %v3276_v51  ;;  %v4312_v16 = vadd.f32 %v3133_v45, %v2073_v23  ;;  %v3238_v59 = vadd.f32 %v4309_v31, %v3237_v6  ;;  %v4074_v7 = vpop.f32.mrb[30].mxu1 }
 0x224   : > { %3210 = vst [vmem:[%s5940_s6 + $0xf0] sm:$0xff] %v4311_v55  ;;  %v4313_v57 = vadd.f32 %v4266_v32, %v4074_v7  ;;  %v2076_v37 = vpop.f32.mrb[31].mxu1  ;;  %v3280_v33 = vmul.f32 %v4311_v55, %v4311_v55 }
 0x225   : > { %3208 = vst [vmem:[%s5940_s6 + $0xe0] sm:$0xff] %v4312_v16  ;;  %v3239_v61 = vadd.f32 %v4312_v16, %v3238_v59  ;;  %v3278_v14 = vmul.f32 %v4312_v16, %v4312_v16  ;;  %v3308_v15 = vadd.f32 %v3307_v30, %v3277_v20  ;;  %v4314_v28 = vadd.f32 %v3136_v47, %v2076_v37 }
 0x226   : > { %3211 = vst [vmem:[%s5940_s6 + $0xf8] sm:$0xff] %v4313_v57  ;;  %v3281_v49 = vmul.f32 %v4313_v57, %v4313_v57 }
 0x227   : > { %v3309_v53 = vadd.f32 %v3308_v15, %v3278_v14  ;;  %3209 = vst [vmem:[%s5940_s6 + $0xe8] sm:$0xff] %v4314_v28  ;;  %v3240_v50 = vadd.f32 %v4314_v28, %v3239_v61  ;;  %v3279_v17 = vmul.f32 %v4314_v28, %v4314_v28 }
 0x229   : > { %v3241_v2 = vadd.f32 %v4311_v55, %v3240_v50  ;;  %v3310_v21 = vadd.f32 %v3309_v53, %v3279_v17 }
 0x22b   : > { %v3242_v46 = vadd.f32 %v4313_v57, %v3241_v2  ;;  %v3311_v9 = vadd.f32 %v3310_v21, %v3280_v33 }
 0x22d   : > { %v3243_v3 = vrot.slane %v3242_v46, 4  ;;  %v3312_v34 = vadd.f32 %v3311_v9, %v3281_v49 }
 0x22f   : > { %v3244_v18 = vadd.f32 %v3243_v3, %v3242_v46  ;;  %v3313_v58 = vrot.slane %v3312_v34, 4 }
 0x231   : > { %v3245_v48 = vrot.slane %v3244_v18, 2  ;;  %v3314_v19 = vadd.f32 %v3313_v58, %v3312_v34 }
 0x233   : > { %v3246_v0 = vadd.f32 %v3245_v48, %v3244_v18  ;;  %v3315_v13 = vrot.slane %v3314_v19, 2 }
 0x235   : > { %v3247_v63 = vrot.slane %v3246_v0, 1  ;;  %v3316_v36 = vadd.f32 %v3315_v13, %v3314_v19 }
 0x237   : > { %v3248_v4 = vadd.f32 %v3247_v63, %v3246_v0  ;;  %v3317_v12 = vrot.slane %v3316_v36, 1 }
 0x239   : > { %3249 = vst [vmem:[%s5923_s27] sm:$0x1] %v3248_v4  ;;  %v3318_v29 = vadd.f32 %v3317_v12, %v3316_v36 }
 0x23b   : > { %3319 = vst [vmem:[%s5923_s27 + $0x1] sm:$0x1] %v3318_v29 }
 0x23c PF: > { %s16_s18 = sadd.s32 1, %s4635_s18  }
 0x23d   : > { %p13_p4 = scmp.ge.s32.totalorder %s16_s18, 4  }
 0x23f   :  { %15 = sbr.rel (!%p13_p4) target bundleno = 1 (0x1), region = 86 }

</bundles_post_ra>
